<compile_context>
chip_gen: v5e
topology: v5e:2x2
jax: 0.10.0
libtpu: 0.0.40
codegen_flags: <defaults>
</compile_context>

<pallas_src>
import functools
import numpy as np

import jax
import jax.numpy as jnp
from jax.experimental import pallas as pl
from jax.experimental.pallas import tpu as pltpu

EPS = 1e-5                      # torch.nn.LayerNorm default eps
_GELU_C = 0.7978845608028654    # sqrt(2 / pi)


# ----------------------------- in-kernel helpers -----------------------------

def _layernorm(x, g, b):
    mu = jnp.mean(x, axis=-1, keepdims=True)
    var = jnp.mean((x - mu) ** 2, axis=-1, keepdims=True)   # biased, like torch LayerNorm
    return (x - mu) * jax.lax.rsqrt(var + EPS) * g + b


def _gelu(x):
    # tanh approximation (see TODO at top).
    return 0.5 * x * (1.0 + jnp.tanh(_GELU_C * (x + 0.044715 * x * x * x)))


# ------------------------------- fused Pallas kernel -------------------------------

def transformer_kernel(x_ref, mask_ref, wa_ref, w2_ref, lnb_ref, b1_ref,
                       scw_ref, scb_ref, o_ref, head_acc,
                       *, depth, heads, dim_head, seq, mode):
    """Whole Transformer forward, batch folded, weights resident in VMEM.

    Refs:
      x_ref    : (B*N, D)                f32   residual stream (flattened batch)
      mask_ref : (B*N, B*N)              f32   0 on same-batch blocks, -1e30 elsewhere
      wa_ref   : (depth, D, 3*inner+D+mlp) bf16  [wqkv(scale-folded) | wo | w1]
      w2_ref   : (depth, mlp, D)         bf16
      lnb_ref  : (depth, 6, D)           f32   [a_ln_g, a_ln_b, f_ln_g, f_ln_b, bo, b2]
      b1_ref   : (depth, 1, mlp)         f32
      scw_ref  : (depth-2, 2, B*N, B*N)  bf16  block-diag skipcat weights (w0, w1)
      scb_ref  : (depth-2, B*N, 1)       f32   skipcat bias, tiled over batch
      o_ref    : (B*N, D)                f32   output
      head_acc : (B*N, inner)            f32   VMEM scratch, per-head p@v lane slots
    """
    f32 = jnp.float32
    cdt = wa_ref.dtype                       # matmul-operand dtype (bf16)
    x = x_ref[...].astype(f32)               # (B*N, D) residual stream, kept f32
    BN, D = x.shape
    inner = heads * dim_head
    neg_mask = mask_ref[...]                 # (B*N, B*N), read once

    prev = None                              # rolling 2-deep history carry
    prev2 = None
    for l in range(depth):                   # static unroll (depth is small)
        cur = x
        if mode == 'CAF' and l > 1:
            # skipcat: Conv2d(N, N, (1, 2)) folded into 2 block-diagonal matmuls on the
            # flattened (B*N, D) stream.
            j = l - 2
            x = (jnp.dot(scw_ref[j, 0], x.astype(cdt), preferred_element_type=f32)
                 + jnp.dot(scw_ref[j, 1], prev2.astype(cdt), preferred_element_type=f32)
                 + scb_ref[j])                                    # (B*N, 1) bias over D

        wa = wa_ref[l]                       # (D, 3*inner + D + mlp) bf16
        lnb = lnb_ref[l]                     # (6, D) f32

        # ---- Residual(PreNorm(Attention)) ----
        y = _layernorm(x, lnb[0:1], lnb[1:2]).astype(cdt)          # (B*N, D)
        # one flat qkv matmul; scale dim_head**-0.5 already folded into the q columns.
        qkv = jnp.dot(y, wa[:, 0:3 * inner], preferred_element_type=f32)  # (B*N, 3*inner)
        for h in range(heads):
            q_h = qkv[:, h * dim_head:(h + 1) * dim_head].astype(cdt)
            k_h = qkv[:, inner + h * dim_head: inner + (h + 1) * dim_head].astype(cdt)
            v_h = qkv[:, 2 * inner + h * dim_head: 2 * inner + (h + 1) * dim_head].astype(cdt)
            # Batch-block-diagonal scores: one (B*N, B*N) matmul per head; cross-batch
            # entries are pushed to -1e30 so their exp underflows to exactly 0.
            s = jnp.einsum('nd,md->nm', q_h, k_h,
                           preferred_element_type=f32) + neg_mask
            s = s - jnp.max(s, axis=-1, keepdims=True)
            e = jnp.exp(s)
            p = e * pl.reciprocal(jnp.sum(e, axis=-1, keepdims=True), approx=True)
            head_acc[:, h * dim_head:(h + 1) * dim_head] = jnp.dot(
                p.astype(cdt), v_h, preferred_element_type=f32)    # (B*N, dh)
        o = head_acc[...].astype(cdt)                              # (B*N, inner)
        x = (jnp.dot(o, wa[:, 3 * inner:3 * inner + D],
                     preferred_element_type=f32)
             + lnb[4:5] + x)                                       # out-proj bias + residual

        # ---- Residual(PreNorm(FeedForward)) ----
        y = _layernorm(x, lnb[2:3], lnb[3:4]).astype(cdt)
        hh = jnp.dot(y, wa[:, 3 * inner + D:], preferred_element_type=f32) + b1_ref[l]
        hh = _gelu(hh).astype(cdt)
        x = jnp.dot(hh, w2_ref[l], preferred_element_type=f32) + lnb[5:6] + x

        prev2 = prev
        prev = cur

    o_ref[...] = x.astype(o_ref.dtype)       # single store for the whole batch


# ------------------------------- pallas_call wrapper -------------------------------

def transformer_forward(x, packed, *, depth, heads, dim_head, mode='CAF'):
    B, N, D = x.shape
    inner = heads * dim_head
    x_flat = x.reshape(B * N, D)

    # 0 on same-batch blocks, -1e30 across batches (computed host-side: tiny, avoids
    # in-kernel integer division for the batch-id of each row).
    row_b = jnp.arange(B * N, dtype=jnp.int32) // N
    neg_mask = jnp.where(row_b[:, None] == row_b[None, :], 0.0, -1e30).astype(jnp.float32)

    kernel = functools.partial(transformer_kernel, depth=depth, heads=heads,
                               dim_head=dim_head, seq=N, mode=mode)
    vspec = pl.BlockSpec(memory_space=pltpu.MemorySpace.VMEM)

    out = pl.pallas_call(
        kernel,
        out_shape=jax.ShapeDtypeStruct((B * N, D), x.dtype),
        in_specs=[vspec] * (2 + len(packed)),
        out_specs=vspec,
        scratch_shapes=[pltpu.VMEM((B * N, inner), jnp.float32)],
    )(x_flat, neg_mask, *packed)
    return out.reshape(B, N, D)


# ------------------------------- parameter packing -------------------------------

def pack_params(params, *, heads, dim_head, batch, matmul_dtype=jnp.bfloat16):
    """Constant-fold / repack raw (module-layout) params into a few coalesced slabs.

    - wa slab (depth, D, 3*inner + D + mlp) bf16 = [wqkv (scale folded into q) | wo | w1]
    - w2 slab (depth, mlp, D) bf16
    - lnb slab (depth, 6, D) f32 = [attn_ln_g, attn_ln_b, ff_ln_g, ff_ln_b, bo, b2]
    - b1 (depth, 1, mlp) f32
    - skipcat weights block-diagonalized over batch: (depth-2, 2, B*N, B*N) bf16
    - skipcat bias tiled over batch: (depth-2, B*N, 1) f32
    """
    f32 = jnp.float32
    cdt = matmul_dtype
    layers = params['layers']
    D = layers[0]['attn']['wqkv'].shape[0]
    inner = heads * dim_head
    assert inner == D, "slab packing assumes heads*dim_head == dim (true for this config)"
    scale = float(dim_head) ** -0.5

    wa, w2, lnb, b1 = [], [], [], []
    for layer in layers:
        a, f = layer['attn'], layer['ff']
        wqkv = jnp.concatenate([a['wqkv'][:, :inner] * scale, a['wqkv'][:, inner:]], axis=1)
        wa.append(jnp.concatenate([wqkv, a['wo'], f['w1']], axis=1).astype(cdt))
        w2.append(f['w2'].astype(cdt))
        lnb.append(jnp.concatenate([a['ln_g'], a['ln_b'], f['ln_g'], f['ln_b'],
                                    a['bo'], f['b2']], axis=0).astype(f32))
        b1.append(f['b1'].astype(f32))

    wa = jnp.stack(wa, axis=0)
    w2 = jnp.stack(w2, axis=0)
    lnb = jnp.stack(lnb, axis=0)
    b1 = jnp.stack(b1, axis=0)

    sk = params.get('skipcat', [])
    if sk:
        eye_b = jnp.eye(batch, dtype=f32)
        scw = jnp.stack(
            [jnp.stack([jnp.kron(eye_b, s['w0']), jnp.kron(eye_b, s['w1'])], axis=0)
             for s in sk], axis=0).astype(cdt)                      # (depth-2, 2, B*N, B*N)
        scb = jnp.stack([jnp.tile(s['bias'], (batch, 1)) for s in sk],
                        axis=0).astype(f32)                         # (depth-2, B*N, 1)
    else:  # unused placeholders (ViT mode, or CAF with depth <= 2)
        scw = jnp.zeros((1, 2, 8, 8), cdt)
        scb = jnp.zeros((1, 8, 1), f32)

    return (wa, w2, lnb, b1, scw, scb)


# ------------------------------- pure-JAX reference -------------------------------
# Faithful to the PyTorch module, with matmul operands cast to bf16 (f32 accumulation) to
# mirror the kernel's compute dtype; elementwise math in f32.

def _ref_forward(x, params, *, heads, dim_head, mode='CAF', cdt=jnp.bfloat16):
    f32 = jnp.float32
    inner = heads * dim_head
    scale = float(dim_head) ** -0.5

    def ln(t, g, b):
        mu = jnp.mean(t, axis=-1, keepdims=True)
        var = jnp.mean((t - mu) ** 2, axis=-1, keepdims=True)
        return (t - mu) * jax.lax.rsqrt(var + EPS) * g + b

    def attn_block(t, p):
        B, N, D = t.shape
        y = ln(t, p['ln_g'], p['ln_b']).astype(cdt)
        qkv = jnp.einsum('bnd,de->bne', y, p['wqkv'].astype(cdt), preferred_element_type=f32)
        q, k, v = qkv[..., :inner], qkv[..., inner:2 * inner], qkv[..., 2 * inner:]
        sh = lambda a: a.reshape(B, N, heads, dim_head).transpose(0, 2, 1, 3)
        q, k, v = sh(q), sh(k), sh(v)
        dots = jnp.einsum('bhid,bhjd->bhij', q.astype(cdt), k.astype(cdt),
                          preferred_element_type=f32) * scale
        a = jax.nn.softmax(dots, axis=-1)
        o = jnp.einsum('bhij,bhjd->bhid', a.astype(cdt), v.astype(cdt),
                       preferred_element_type=f32)
        o = o.transpose(0, 2, 1, 3).reshape(B, N, inner)
        o = jnp.einsum('bnd,de->bne', o.astype(cdt), p['wo'].astype(cdt),
                       preferred_element_type=f32)
        return o + p['bo'] + t

    def ff_block(t, p):
        y = ln(t, p['ln_g'], p['ln_b']).astype(cdt)
        h = jnp.einsum('bnd,df->bnf', y, p['w1'].astype(cdt), preferred_element_type=f32) + p['b1']
        h = _gelu(h).astype(cdt)
        return jnp.einsum('bnf,fd->bnd', h, p['w2'].astype(cdt),
                          preferred_element_type=f32) + p['b2'] + t

    last = []
    for nl, layer in enumerate(params['layers']):
        if mode == 'CAF':
            last.append(x)
            if nl > 1:
                sc = params['skipcat'][nl - 2]
                x = (jnp.einsum('ij,bjd->bid', sc['w0'].astype(cdt), x.astype(cdt),
                                preferred_element_type=f32)
                     + jnp.einsum('ij,bjd->bid', sc['w1'].astype(cdt),
                                  last[nl - 2].astype(cdt), preferred_element_type=f32)
                     + sc['bias'])
        x = attn_block(x, layer['attn'])
        x = ff_block(x, layer['ff'])
    return x


# ------------------------------- parameter init (module layout) -------------------------------

def init_params(key, *, dim, depth, heads, dim_head, mlp_head, num_channel):
    inner = heads * dim_head
    N = num_channel + 1
    keys = iter(jax.random.split(key, 8 * depth + 4 * max(depth - 2, 1) + 4))
    nxt = lambda: next(keys)
    f32 = jnp.float32

    layers = []
    for _ in range(depth):
        attn = dict(
            ln_g=jnp.ones((1, dim), f32),
            ln_b=jnp.zeros((1, dim), f32),
            wqkv=0.05 * jax.random.normal(nxt(), (dim, 3 * inner), f32),  # stored transposed
            wo=0.05 * jax.random.normal(nxt(), (inner, dim), f32),        # stored transposed
            bo=0.05 * jax.random.normal(nxt(), (1, dim), f32),
        )
        ff = dict(
            ln_g=jnp.ones((1, dim), f32),
            ln_b=jnp.zeros((1, dim), f32),
            w1=0.05 * jax.random.normal(nxt(), (dim, mlp_head), f32),
            b1=0.05 * jax.random.normal(nxt(), (1, mlp_head), f32),
            w2=0.05 * jax.random.normal(nxt(), (mlp_head, dim), f32),
            b2=0.05 * jax.random.normal(nxt(), (1, dim), f32),
        )
        layers.append(dict(attn=attn, ff=ff))

    skip = []
    for _ in range(depth - 2):
        skip.append(dict(
            w0=0.2 * jax.random.normal(nxt(), (N, N), f32),   # conv weight[:, :, 0, 0]
            w1=0.2 * jax.random.normal(nxt(), (N, N), f32),   # conv weight[:, :, 0, 1]
            bias=0.05 * jax.random.normal(nxt(), (N, 1), f32),
        ))
    return dict(layers=layers, skipcat=skip)


# ------------------------------- main -------------------------------

if __name__ == "__main__":
    B = 2
    num_channel = 8          # -> sequence length N = 9 (tokens incl. CLS)
    dim = 32
    depth = 4                # >= 3 so the CAF skipcat path is exercised
    heads = 4
    dim_head = 8
    mlp_head = 64
    mode = 'CAF'

    key = jax.random.PRNGKey(0)
    k_x, k_p = jax.random.split(key)
    N = num_channel + 1
    x = jax.random.normal(k_x, (B, N, dim), jnp.float32)

    params = init_params(k_p, dim=dim, depth=depth, heads=heads,
                         dim_head=dim_head, mlp_head=mlp_head,
                         num_channel=num_channel)
    packed = pack_params(params, heads=heads, dim_head=dim_head, batch=B)

    out = transformer_forward(x, packed, depth=depth, heads=heads,
                              dim_head=dim_head, mode=mode)
    out = jax.block_until_ready(out)

    ref = jax.block_until_ready(
        _ref_forward(x, params, heads=heads, dim_head=dim_head, mode=mode))
    # bf16 matmul operands + approx-reciprocal softmax: kernel and reference are not
    # bit-identical, so allow ~1e-2 (typical observed deviation is well under 1e-3).
    np.testing.assert_allclose(np.asarray(out), np.asarray(ref), rtol=1e-2, atol=1e-2)

    print("KERNEL_OK")
</pallas_src>

<mosaic_0001>
module attributes {stable_mosaic.version = 11 : i64} {
  func.func @transformer_kernel(%arg0: memref<18x32xf32, #tpu.memory_space<vmem>>, %arg1: memref<18x18xf32, #tpu.memory_space<vmem>>, %arg2: memref<4x32x192xbf16, #tpu.memory_space<vmem>>, %arg3: memref<4x64x32xbf16, #tpu.memory_space<vmem>>, %arg4: memref<4x6x32xf32, #tpu.memory_space<vmem>>, %arg5: memref<4x1x64xf32, #tpu.memory_space<vmem>>, %arg6: memref<2x2x18x18xbf16, #tpu.memory_space<vmem>>, %arg7: memref<2x18x1xf32, #tpu.memory_space<vmem>>, %arg8: memref<18x32xf32, #tpu.memory_space<vmem>>, %arg9: memref<18x32xf32, #tpu.memory_space<vmem>>) attributes {dimension_semantics = [], scalar_prefetch = 0 : i64, scratch_operands = 1 : i64, tpu.core_type = #tpu.core_type<tc>} {
    %c0 = arith.constant 0 : index
    %c0_0 = arith.constant 0 : index
    %0 = vector.load %arg0[%c0, %c0_0] : memref<18x32xf32, #tpu.memory_space<vmem>>, vector<18x32xf32>
    %c0_1 = arith.constant 0 : index
    %c0_2 = arith.constant 0 : index
    %1 = vector.load %arg1[%c0_1, %c0_2] : memref<18x18xf32, #tpu.memory_space<vmem>>, vector<18x18xf32>
    %c0_3 = arith.constant 0 : index
    %c0_4 = arith.constant 0 : index
    %c0_5 = arith.constant 0 : index
    %2 = vector.load %arg2[%c0_3, %c0_4, %c0_5] : memref<4x32x192xbf16, #tpu.memory_space<vmem>>, vector<1x32x192xbf16>
    %3 = vector.shape_cast %2 : vector<1x32x192xbf16> to vector<32x192xbf16>
    %c0_6 = arith.constant 0 : index
    %c0_7 = arith.constant 0 : index
    %c0_8 = arith.constant 0 : index
    %4 = vector.load %arg4[%c0_6, %c0_7, %c0_8] : memref<4x6x32xf32, #tpu.memory_space<vmem>>, vector<1x6x32xf32>
    %5 = vector.shape_cast %4 : vector<1x6x32xf32> to vector<6x32xf32>
    %6 = vector.extract_strided_slice %5 {offsets = [0, 0], sizes = [1, 32], strides = [1, 1]} : vector<6x32xf32> to vector<1x32xf32>
    %7 = vector.extract_strided_slice %5 {offsets = [1, 0], sizes = [1, 32], strides = [1, 1]} : vector<6x32xf32> to vector<1x32xf32>
    %cst = arith.constant dense<0.000000e+00> : vector<18xf32>
    %8 = vector.multi_reduction <add>, %0, %cst [1] : vector<18x32xf32> to vector<18xf32>
    %9 = vector.shape_cast %8 : vector<18xf32> to vector<18x1xf32>
    %cst_9 = arith.constant 3.200000e+01 : f32
    %10 = vector.broadcast %cst_9 : f32 to vector<18x1xf32>
    %11 = arith.divf %9, %10 : vector<18x1xf32>
    %12 = vector.broadcast %11 : vector<18x1xf32> to vector<18x32xf32>
    %13 = arith.subf %0, %12 : vector<18x32xf32>
    %14 = arith.mulf %13, %13 : vector<18x32xf32>
    %cst_10 = arith.constant dense<0.000000e+00> : vector<18xf32>
    %15 = vector.multi_reduction <add>, %14, %cst_10 [1] : vector<18x32xf32> to vector<18xf32>
    %16 = vector.shape_cast %15 : vector<18xf32> to vector<18x1xf32>
    %cst_11 = arith.constant 3.200000e+01 : f32
    %17 = vector.broadcast %cst_11 : f32 to vector<18x1xf32>
    %18 = arith.divf %16, %17 : vector<18x1xf32>
    %19 = vector.broadcast %11 : vector<18x1xf32> to vector<18x32xf32>
    %20 = arith.subf %0, %19 : vector<18x32xf32>
    %cst_12 = arith.constant 9.99999974E-6 : f32
    %21 = vector.broadcast %cst_12 : f32 to vector<18x1xf32>
    %22 = arith.addf %18, %21 : vector<18x1xf32>
    %23 = math.rsqrt %22 : vector<18x1xf32>
    %24 = vector.broadcast %23 : vector<18x1xf32> to vector<18x32xf32>
    %25 = arith.mulf %20, %24 : vector<18x32xf32>
    %26 = vector.broadcast %6 : vector<1x32xf32> to vector<18x32xf32>
    %27 = arith.mulf %25, %26 : vector<18x32xf32>
    %28 = vector.broadcast %7 : vector<1x32xf32> to vector<18x32xf32>
    %29 = arith.addf %27, %28 : vector<18x32xf32>
    %30 = arith.truncf %29 : vector<18x32xf32> to vector<18x32xbf16>
    %31 = vector.extract_strided_slice %3 {offsets = [0, 0], sizes = [32, 96], strides = [1, 1]} : vector<32x192xbf16> to vector<32x96xbf16>
    %cst_13 = arith.constant dense<0.000000e+00> : vector<18x96xf32>
    %32 = tpu.matmul %30, %31, %cst_13 {dimension_numbers = #tpu.dot_dimension_numbers<[1], [0], [0], [1], [0, 0, 1, 1], [], []>} : vector<18x32xbf16>, vector<32x96xbf16>, vector<18x96xf32> -> vector<18x96xf32>
    %33 = vector.extract_strided_slice %32 {offsets = [0, 0], sizes = [18, 8], strides = [1, 1]} : vector<18x96xf32> to vector<18x8xf32>
    %34 = arith.truncf %33 : vector<18x8xf32> to vector<18x8xbf16>
    %35 = vector.extract_strided_slice %32 {offsets = [0, 32], sizes = [18, 8], strides = [1, 1]} : vector<18x96xf32> to vector<18x8xf32>
    %36 = arith.truncf %35 : vector<18x8xf32> to vector<18x8xbf16>
    %37 = vector.extract_strided_slice %32 {offsets = [0, 64], sizes = [18, 8], strides = [1, 1]} : vector<18x96xf32> to vector<18x8xf32>
    %38 = arith.truncf %37 : vector<18x8xf32> to vector<18x8xbf16>
    "tpu.trace_start"() <{level = 10 : i32, message = "nd,md->nm"}> : () -> ()
    %cst_14 = arith.constant dense<0.000000e+00> : vector<18x18xf32>
    %39 = tpu.matmul %34, %36, %cst_14 {dimension_numbers = #tpu.dot_dimension_numbers<[1], [1], [0], [0], [0, 0, 1, 0], [], []>} : vector<18x8xbf16>, vector<18x8xbf16>, vector<18x18xf32> -> vector<18x18xf32>
    "tpu.trace_stop"() : () -> ()
    %40 = arith.addf %39, %1 : vector<18x18xf32>
    %cst_15 = arith.constant dense<0xFF800000> : vector<18xf32>
    %41 = vector.multi_reduction <maximumf>, %40, %cst_15 [1] : vector<18x18xf32> to vector<18xf32>
    %42 = vector.shape_cast %41 : vector<18xf32> to vector<18x1xf32>
    %43 = vector.broadcast %42 : vector<18x1xf32> to vector<18x18xf32>
    %44 = arith.subf %40, %43 : vector<18x18xf32>
    %45 = math.exp %44 : vector<18x18xf32>
    %cst_16 = arith.constant dense<0.000000e+00> : vector<18xf32>
    %46 = vector.multi_reduction <add>, %45, %cst_16 [1] : vector<18x18xf32> to vector<18xf32>
    %47 = vector.shape_cast %46 : vector<18xf32> to vector<18x1xf32>
    %48 = tpu.reciprocal %47 {approx = true} : vector<18x1xf32> -> vector<18x1xf32>
    %49 = vector.broadcast %48 : vector<18x1xf32> to vector<18x18xf32>
    %50 = arith.mulf %45, %49 : vector<18x18xf32>
    %51 = arith.truncf %50 : vector<18x18xf32> to vector<18x18xbf16>
    %cst_17 = arith.constant dense<0.000000e+00> : vector<18x8xf32>
    %52 = tpu.matmul %51, %38, %cst_17 {dimension_numbers = #tpu.dot_dimension_numbers<[1], [0], [0], [1], [0, 0, 1, 1], [], []>} : vector<18x18xbf16>, vector<18x8xbf16>, vector<18x8xf32> -> vector<18x8xf32>
    %c0_18 = arith.constant 0 : index
    %c0_19 = arith.constant 0 : index
    %53 = vector.load %arg9[%c0_18, %c0_19] : memref<18x32xf32, #tpu.memory_space<vmem>>, vector<18x8xf32>
    tpu.vector_store %arg9[%c0_18, %c0_19], %52 {strides = array<i32>} : memref<18x32xf32, #tpu.memory_space<vmem>>, vector<18x8xf32>,
    %54 = vector.extract_strided_slice %32 {offsets = [0, 8], sizes = [18, 8], strides = [1, 1]} : vector<18x96xf32> to vector<18x8xf32>
    %55 = arith.truncf %54 : vector<18x8xf32> to vector<18x8xbf16>
    %56 = vector.extract_strided_slice %32 {offsets = [0, 40], sizes = [18, 8], strides = [1, 1]} : vector<18x96xf32> to vector<18x8xf32>
    %57 = arith.truncf %56 : vector<18x8xf32> to vector<18x8xbf16>
    %58 = vector.extract_strided_slice %32 {offsets = [0, 72], sizes = [18, 8], strides = [1, 1]} : vector<18x96xf32> to vector<18x8xf32>
    %59 = arith.truncf %58 : vector<18x8xf32> to vector<18x8xbf16>
    "tpu.trace_start"() <{level = 10 : i32, message = "nd,md->nm"}> : () -> ()
    %cst_20 = arith.constant dense<0.000000e+00> : vector<18x18xf32>
    %60 = tpu.matmul %55, %57, %cst_20 {dimension_numbers = #tpu.dot_dimension_numbers<[1], [1], [0], [0], [0, 0, 1, 0], [], []>} : vector<18x8xbf16>, vector<18x8xbf16>, vector<18x18xf32> -> vector<18x18xf32>
    "tpu.trace_stop"() : () -> ()
    %61 = arith.addf %60, %1 : vector<18x18xf32>
    %cst_21 = arith.constant dense<0xFF800000> : vector<18xf32>
    %62 = vector.multi_reduction <maximumf>, %61, %cst_21 [1] : vector<18x18xf32> to vector<18xf32>
    %63 = vector.shape_cast %62 : vector<18xf32> to vector<18x1xf32>
    %64 = vector.broadcast %63 : vector<18x1xf32> to vector<18x18xf32>
    %65 = arith.subf %61, %64 : vector<18x18xf32>
    %66 = math.exp %65 : vector<18x18xf32>
    %cst_22 = arith.constant dense<0.000000e+00> : vector<18xf32>
    %67 = vector.multi_reduction <add>, %66, %cst_22 [1] : vector<18x18xf32> to vector<18xf32>
    %68 = vector.shape_cast %67 : vector<18xf32> to vector<18x1xf32>
    %69 = tpu.reciprocal %68 {approx = true} : vector<18x1xf32> -> vector<18x1xf32>
    %70 = vector.broadcast %69 : vector<18x1xf32> to vector<18x18xf32>
    %71 = arith.mulf %66, %70 : vector<18x18xf32>
    %72 = arith.truncf %71 : vector<18x18xf32> to vector<18x18xbf16>
    %cst_23 = arith.constant dense<0.000000e+00> : vector<18x8xf32>
    %73 = tpu.matmul %72, %59, %cst_23 {dimension_numbers = #tpu.dot_dimension_numbers<[1], [0], [0], [1], [0, 0, 1, 1], [], []>} : vector<18x18xbf16>, vector<18x8xbf16>, vector<18x8xf32> -> vector<18x8xf32>
    %c0_24 = arith.constant 0 : index
    %c8 = arith.constant 8 : index
    %74 = vector.load %arg9[%c0_24, %c8] : memref<18x32xf32, #tpu.memory_space<vmem>>, vector<18x8xf32>
    tpu.vector_store %arg9[%c0_24, %c8], %73 {strides = array<i32>} : memref<18x32xf32, #tpu.memory_space<vmem>>, vector<18x8xf32>,
    %75 = vector.extract_strided_slice %32 {offsets = [0, 16], sizes = [18, 8], strides = [1, 1]} : vector<18x96xf32> to vector<18x8xf32>
    %76 = arith.truncf %75 : vector<18x8xf32> to vector<18x8xbf16>
    %77 = vector.extract_strided_slice %32 {offsets = [0, 48], sizes = [18, 8], strides = [1, 1]} : vector<18x96xf32> to vector<18x8xf32>
    %78 = arith.truncf %77 : vector<18x8xf32> to vector<18x8xbf16>
    %79 = vector.extract_strided_slice %32 {offsets = [0, 80], sizes = [18, 8], strides = [1, 1]} : vector<18x96xf32> to vector<18x8xf32>
    %80 = arith.truncf %79 : vector<18x8xf32> to vector<18x8xbf16>
    "tpu.trace_start"() <{level = 10 : i32, message = "nd,md->nm"}> : () -> ()
    %cst_25 = arith.constant dense<0.000000e+00> : vector<18x18xf32>
    %81 = tpu.matmul %76, %78, %cst_25 {dimension_numbers = #tpu.dot_dimension_numbers<[1], [1], [0], [0], [0, 0, 1, 0], [], []>} : vector<18x8xbf16>, vector<18x8xbf16>, vector<18x18xf32> -> vector<18x18xf32>
    "tpu.trace_stop"() : () -> ()
    %82 = arith.addf %81, %1 : vector<18x18xf32>
    %cst_26 = arith.constant dense<0xFF800000> : vector<18xf32>
    %83 = vector.multi_reduction <maximumf>, %82, %cst_26 [1] : vector<18x18xf32> to vector<18xf32>
    %84 = vector.shape_cast %83 : vector<18xf32> to vector<18x1xf32>
    %85 = vector.broadcast %84 : vector<18x1xf32> to vector<18x18xf32>
    %86 = arith.subf %82, %85 : vector<18x18xf32>
    %87 = math.exp %86 : vector<18x18xf32>
    %cst_27 = arith.constant dense<0.000000e+00> : vector<18xf32>
    %88 = vector.multi_reduction <add>, %87, %cst_27 [1] : vector<18x18xf32> to vector<18xf32>
    %89 = vector.shape_cast %88 : vector<18xf32> to vector<18x1xf32>
    %90 = tpu.reciprocal %89 {approx = true} : vector<18x1xf32> -> vector<18x1xf32>
    %91 = vector.broadcast %90 : vector<18x1xf32> to vector<18x18xf32>
    %92 = arith.mulf %87, %91 : vector<18x18xf32>
    %93 = arith.truncf %92 : vector<18x18xf32> to vector<18x18xbf16>
    %cst_28 = arith.constant dense<0.000000e+00> : vector<18x8xf32>
    %94 = tpu.matmul %93, %80, %cst_28 {dimension_numbers = #tpu.dot_dimension_numbers<[1], [0], [0], [1], [0, 0, 1, 1], [], []>} : vector<18x18xbf16>, vector<18x8xbf16>, vector<18x8xf32> -> vector<18x8xf32>
    %c0_29 = arith.constant 0 : index
    %c16 = arith.constant 16 : index
    %95 = vector.load %arg9[%c0_29, %c16] : memref<18x32xf32, #tpu.memory_space<vmem>>, vector<18x8xf32>
    tpu.vector_store %arg9[%c0_29, %c16], %94 {strides = array<i32>} : memref<18x32xf32, #tpu.memory_space<vmem>>, vector<18x8xf32>,
    %96 = vector.extract_strided_slice %32 {offsets = [0, 24], sizes = [18, 8], strides = [1, 1]} : vector<18x96xf32> to vector<18x8xf32>
    %97 = arith.truncf %96 : vector<18x8xf32> to vector<18x8xbf16>
    %98 = vector.extract_strided_slice %32 {offsets = [0, 56], sizes = [18, 8], strides = [1, 1]} : vector<18x96xf32> to vector<18x8xf32>
    %99 = arith.truncf %98 : vector<18x8xf32> to vector<18x8xbf16>
    %100 = vector.extract_strided_slice %32 {offsets = [0, 88], sizes = [18, 8], strides = [1, 1]} : vector<18x96xf32> to vector<18x8xf32>
    %101 = arith.truncf %100 : vector<18x8xf32> to vector<18x8xbf16>
    "tpu.trace_start"() <{level = 10 : i32, message = "nd,md->nm"}> : () -> ()
    %cst_30 = arith.constant dense<0.000000e+00> : vector<18x18xf32>
    %102 = tpu.matmul %97, %99, %cst_30 {dimension_numbers = #tpu.dot_dimension_numbers<[1], [1], [0], [0], [0, 0, 1, 0], [], []>} : vector<18x8xbf16>, vector<18x8xbf16>, vector<18x18xf32> -> vector<18x18xf32>
    "tpu.trace_stop"() : () -> ()
    %103 = arith.addf %102, %1 : vector<18x18xf32>
    %cst_31 = arith.constant dense<0xFF800000> : vector<18xf32>
    %104 = vector.multi_reduction <maximumf>, %103, %cst_31 [1] : vector<18x18xf32> to vector<18xf32>
    %105 = vector.shape_cast %104 : vector<18xf32> to vector<18x1xf32>
    %106 = vector.broadcast %105 : vector<18x1xf32> to vector<18x18xf32>
    %107 = arith.subf %103, %106 : vector<18x18xf32>
    %108 = math.exp %107 : vector<18x18xf32>
    %cst_32 = arith.constant dense<0.000000e+00> : vector<18xf32>
    %109 = vector.multi_reduction <add>, %108, %cst_32 [1] : vector<18x18xf32> to vector<18xf32>
    %110 = vector.shape_cast %109 : vector<18xf32> to vector<18x1xf32>
    %111 = tpu.reciprocal %110 {approx = true} : vector<18x1xf32> -> vector<18x1xf32>
    %112 = vector.broadcast %111 : vector<18x1xf32> to vector<18x18xf32>
    %113 = arith.mulf %108, %112 : vector<18x18xf32>
    %114 = arith.truncf %113 : vector<18x18xf32> to vector<18x18xbf16>
    %cst_33 = arith.constant dense<0.000000e+00> : vector<18x8xf32>
    %115 = tpu.matmul %114, %101, %cst_33 {dimension_numbers = #tpu.dot_dimension_numbers<[1], [0], [0], [1], [0, 0, 1, 1], [], []>} : vector<18x18xbf16>, vector<18x8xbf16>, vector<18x8xf32> -> vector<18x8xf32>
    %c0_34 = arith.constant 0 : index
    %c24 = arith.constant 24 : index
    %116 = vector.load %arg9[%c0_34, %c24] : memref<18x32xf32, #tpu.memory_space<vmem>>, vector<18x8xf32>
    tpu.vector_store %arg9[%c0_34, %c24], %115 {strides = array<i32>} : memref<18x32xf32, #tpu.memory_space<vmem>>, vector<18x8xf32>,
    %c0_35 = arith.constant 0 : index
    %c0_36 = arith.constant 0 : index
    %117 = vector.load %arg9[%c0_35, %c0_36] : memref<18x32xf32, #tpu.memory_space<vmem>>, vector<18x32xf32>
    %118 = arith.truncf %117 : vector<18x32xf32> to vector<18x32xbf16>
    %119 = vector.extract_strided_slice %3 {offsets = [0, 96], sizes = [32, 32], strides = [1, 1]} : vector<32x192xbf16> to vector<32x32xbf16>
    %cst_37 = arith.constant dense<0.000000e+00> : vector<18x32xf32>
    %120 = tpu.matmul %118, %119, %cst_37 {dimension_numbers = #tpu.dot_dimension_numbers<[1], [0], [0], [1], [0, 0, 1, 1], [], []>} : vector<18x32xbf16>, vector<32x32xbf16>, vector<18x32xf32> -> vector<18x32xf32>
    %121 = vector.extract_strided_slice %5 {offsets = [4, 0], sizes = [1, 32], strides = [1, 1]} : vector<6x32xf32> to vector<1x32xf32>
    %122 = vector.broadcast %121 : vector<1x32xf32> to vector<18x32xf32>
    %123 = arith.addf %120, %122 : vector<18x32xf32>
    %124 = arith.addf %123, %0 : vector<18x32xf32>
    %125 = vector.extract_strided_slice %5 {offsets = [2, 0], sizes = [1, 32], strides = [1, 1]} : vector<6x32xf32> to vector<1x32xf32>
    %126 = vector.extract_strided_slice %5 {offsets = [3, 0], sizes = [1, 32], strides = [1, 1]} : vector<6x32xf32> to vector<1x32xf32>
    %cst_38 = arith.constant dense<0.000000e+00> : vector<18xf32>
    %127 = vector.multi_reduction <add>, %124, %cst_38 [1] : vector<18x32xf32> to vector<18xf32>
    %128 = vector.shape_cast %127 : vector<18xf32> to vector<18x1xf32>
    %cst_39 = arith.constant 3.200000e+01 : f32
    %129 = vector.broadcast %cst_39 : f32 to vector<18x1xf32>
    %130 = arith.divf %128, %129 : vector<18x1xf32>
    %131 = vector.broadcast %130 : vector<18x1xf32> to vector<18x32xf32>
    %132 = arith.subf %124, %131 : vector<18x32xf32>
    %133 = arith.mulf %132, %132 : vector<18x32xf32>
    %cst_40 = arith.constant dense<0.000000e+00> : vector<18xf32>
    %134 = vector.multi_reduction <add>, %133, %cst_40 [1] : vector<18x32xf32> to vector<18xf32>
    %135 = vector.shape_cast %134 : vector<18xf32> to vector<18x1xf32>
    %cst_41 = arith.constant 3.200000e+01 : f32
    %136 = vector.broadcast %cst_41 : f32 to vector<18x1xf32>
    %137 = arith.divf %135, %136 : vector<18x1xf32>
    %138 = vector.broadcast %130 : vector<18x1xf32> to vector<18x32xf32>
    %139 = arith.subf %124, %138 : vector<18x32xf32>
    %cst_42 = arith.constant 9.99999974E-6 : f32
    %140 = vector.broadcast %cst_42 : f32 to vector<18x1xf32>
    %141 = arith.addf %137, %140 : vector<18x1xf32>
    %142 = math.rsqrt %141 : vector<18x1xf32>
    %143 = vector.broadcast %142 : vector<18x1xf32> to vector<18x32xf32>
    %144 = arith.mulf %139, %143 : vector<18x32xf32>
    %145 = vector.broadcast %125 : vector<1x32xf32> to vector<18x32xf32>
    %146 = arith.mulf %144, %145 : vector<18x32xf32>
    %147 = vector.broadcast %126 : vector<1x32xf32> to vector<18x32xf32>
    %148 = arith.addf %146, %147 : vector<18x32xf32>
    %149 = arith.truncf %148 : vector<18x32xf32> to vector<18x32xbf16>
    %150 = vector.extract_strided_slice %3 {offsets = [0, 128], sizes = [32, 64], strides = [1, 1]} : vector<32x192xbf16> to vector<32x64xbf16>
    %cst_43 = arith.constant dense<0.000000e+00> : vector<18x64xf32>
    %151 = tpu.matmul %149, %150, %cst_43 {dimension_numbers = #tpu.dot_dimension_numbers<[1], [0], [0], [1], [0, 0, 1, 1], [], []>} : vector<18x32xbf16>, vector<32x64xbf16>, vector<18x64xf32> -> vector<18x64xf32>
    %c0_44 = arith.constant 0 : index
    %c0_45 = arith.constant 0 : index
    %c0_46 = arith.constant 0 : index
    %152 = vector.load %arg5[%c0_44, %c0_45, %c0_46] : memref<4x1x64xf32, #tpu.memory_space<vmem>>, vector<1x1x64xf32>
    %153 = vector.shape_cast %152 : vector<1x1x64xf32> to vector<1x64xf32>
    %154 = vector.broadcast %153 : vector<1x64xf32> to vector<18x64xf32>
    %155 = arith.addf %151, %154 : vector<18x64xf32>
    %cst_47 = arith.constant 5.000000e-01 : f32
    %156 = vector.broadcast %cst_47 : f32 to vector<18x64xf32>
    %157 = arith.mulf %156, %155 : vector<18x64xf32>
    %cst_48 = arith.constant 4.471500e-02 : f32
    %158 = vector.broadcast %cst_48 : f32 to vector<18x64xf32>
    %159 = arith.mulf %158, %155 : vector<18x64xf32>
    %160 = arith.mulf %159, %155 : vector<18x64xf32>
    %161 = arith.mulf %160, %155 : vector<18x64xf32>
    %162 = arith.addf %155, %161 : vector<18x64xf32>
    %cst_49 = arith.constant 0.797884583 : f32
    %163 = vector.broadcast %cst_49 : f32 to vector<18x64xf32>
    %164 = arith.mulf %163, %162 : vector<18x64xf32>
    %165 = math.tanh %164 : vector<18x64xf32>
    %cst_50 = arith.constant 1.000000e+00 : f32
    %166 = vector.broadcast %cst_50 : f32 to vector<18x64xf32>
    %167 = arith.addf %166, %165 : vector<18x64xf32>
    %168 = arith.mulf %157, %167 : vector<18x64xf32>
    %169 = arith.truncf %168 : vector<18x64xf32> to vector<18x64xbf16>
    %c0_51 = arith.constant 0 : index
    %c0_52 = arith.constant 0 : index
    %c0_53 = arith.constant 0 : index
    %170 = vector.load %arg3[%c0_51, %c0_52, %c0_53] : memref<4x64x32xbf16, #tpu.memory_space<vmem>>, vector<1x64x32xbf16>
    %171 = vector.shape_cast %170 : vector<1x64x32xbf16> to vector<64x32xbf16>
    %cst_54 = arith.constant dense<0.000000e+00> : vector<18x32xf32>
    %172 = tpu.matmul %169, %171, %cst_54 {dimension_numbers = #tpu.dot_dimension_numbers<[1], [0], [0], [1], [0, 0, 1, 1], [], []>} : vector<18x64xbf16>, vector<64x32xbf16>, vector<18x32xf32> -> vector<18x32xf32>
    %173 = vector.extract_strided_slice %5 {offsets = [5, 0], sizes = [1, 32], strides = [1, 1]} : vector<6x32xf32> to vector<1x32xf32>
    %174 = vector.broadcast %173 : vector<1x32xf32> to vector<18x32xf32>
    %175 = arith.addf %172, %174 : vector<18x32xf32>
    %176 = arith.addf %175, %124 : vector<18x32xf32>
    %c1 = arith.constant 1 : index
    %c0_55 = arith.constant 0 : index
    %c0_56 = arith.constant 0 : index
    %177 = vector.load %arg2[%c1, %c0_55, %c0_56] : memref<4x32x192xbf16, #tpu.memory_space<vmem>>, vector<1x32x192xbf16>
    %178 = vector.shape_cast %177 : vector<1x32x192xbf16> to vector<32x192xbf16>
    %c1_57 = arith.constant 1 : index
    %c0_58 = arith.constant 0 : index
    %c0_59 = arith.constant 0 : index
    %179 = vector.load %arg4[%c1_57, %c0_58, %c0_59] : memref<4x6x32xf32, #tpu.memory_space<vmem>>, vector<1x6x32xf32>
    %180 = vector.shape_cast %179 : vector<1x6x32xf32> to vector<6x32xf32>
    %181 = vector.extract_strided_slice %180 {offsets = [0, 0], sizes = [1, 32], strides = [1, 1]} : vector<6x32xf32> to vector<1x32xf32>
    %182 = vector.extract_strided_slice %180 {offsets = [1, 0], sizes = [1, 32], strides = [1, 1]} : vector<6x32xf32> to vector<1x32xf32>
    %cst_60 = arith.constant dense<0.000000e+00> : vector<18xf32>
    %183 = vector.multi_reduction <add>, %176, %cst_60 [1] : vector<18x32xf32> to vector<18xf32>
    %184 = vector.shape_cast %183 : vector<18xf32> to vector<18x1xf32>
    %cst_61 = arith.constant 3.200000e+01 : f32
    %185 = vector.broadcast %cst_61 : f32 to vector<18x1xf32>
    %186 = arith.divf %184, %185 : vector<18x1xf32>
    %187 = vector.broadcast %186 : vector<18x1xf32> to vector<18x32xf32>
    %188 = arith.subf %176, %187 : vector<18x32xf32>
    %189 = arith.mulf %188, %188 : vector<18x32xf32>
    %cst_62 = arith.constant dense<0.000000e+00> : vector<18xf32>
    %190 = vector.multi_reduction <add>, %189, %cst_62 [1] : vector<18x32xf32> to vector<18xf32>
    %191 = vector.shape_cast %190 : vector<18xf32> to vector<18x1xf32>
    %cst_63 = arith.constant 3.200000e+01 : f32
    %192 = vector.broadcast %cst_63 : f32 to vector<18x1xf32>
    %193 = arith.divf %191, %192 : vector<18x1xf32>
    %194 = vector.broadcast %186 : vector<18x1xf32> to vector<18x32xf32>
    %195 = arith.subf %176, %194 : vector<18x32xf32>
    %cst_64 = arith.constant 9.99999974E-6 : f32
    %196 = vector.broadcast %cst_64 : f32 to vector<18x1xf32>
    %197 = arith.addf %193, %196 : vector<18x1xf32>
    %198 = math.rsqrt %197 : vector<18x1xf32>
    %199 = vector.broadcast %198 : vector<18x1xf32> to vector<18x32xf32>
    %200 = arith.mulf %195, %199 : vector<18x32xf32>
    %201 = vector.broadcast %181 : vector<1x32xf32> to vector<18x32xf32>
    %202 = arith.mulf %200, %201 : vector<18x32xf32>
    %203 = vector.broadcast %182 : vector<1x32xf32> to vector<18x32xf32>
    %204 = arith.addf %202, %203 : vector<18x32xf32>
    %205 = arith.truncf %204 : vector<18x32xf32> to vector<18x32xbf16>
    %206 = vector.extract_strided_slice %178 {offsets = [0, 0], sizes = [32, 96], strides = [1, 1]} : vector<32x192xbf16> to vector<32x96xbf16>
    %cst_65 = arith.constant dense<0.000000e+00> : vector<18x96xf32>
    %207 = tpu.matmul %205, %206, %cst_65 {dimension_numbers = #tpu.dot_dimension_numbers<[1], [0], [0], [1], [0, 0, 1, 1], [], []>} : vector<18x32xbf16>, vector<32x96xbf16>, vector<18x96xf32> -> vector<18x96xf32>
    %208 = vector.extract_strided_slice %207 {offsets = [0, 0], sizes = [18, 8], strides = [1, 1]} : vector<18x96xf32> to vector<18x8xf32>
    %209 = arith.truncf %208 : vector<18x8xf32> to vector<18x8xbf16>
    %210 = vector.extract_strided_slice %207 {offsets = [0, 32], sizes = [18, 8], strides = [1, 1]} : vector<18x96xf32> to vector<18x8xf32>
    %211 = arith.truncf %210 : vector<18x8xf32> to vector<18x8xbf16>
    %212 = vector.extract_strided_slice %207 {offsets = [0, 64], sizes = [18, 8], strides = [1, 1]} : vector<18x96xf32> to vector<18x8xf32>
    %213 = arith.truncf %212 : vector<18x8xf32> to vector<18x8xbf16>
    "tpu.trace_start"() <{level = 10 : i32, message = "nd,md->nm"}> : () -> ()
    %cst_66 = arith.constant dense<0.000000e+00> : vector<18x18xf32>
    %214 = tpu.matmul %209, %211, %cst_66 {dimension_numbers = #tpu.dot_dimension_numbers<[1], [1], [0], [0], [0, 0, 1, 0], [], []>} : vector<18x8xbf16>, vector<18x8xbf16>, vector<18x18xf32> -> vector<18x18xf32>
    "tpu.trace_stop"() : () -> ()
    %215 = arith.addf %214, %1 : vector<18x18xf32>
    %cst_67 = arith.constant dense<0xFF800000> : vector<18xf32>
    %216 = vector.multi_reduction <maximumf>, %215, %cst_67 [1] : vector<18x18xf32> to vector<18xf32>
    %217 = vector.shape_cast %216 : vector<18xf32> to vector<18x1xf32>
    %218 = vector.broadcast %217 : vector<18x1xf32> to vector<18x18xf32>
    %219 = arith.subf %215, %218 : vector<18x18xf32>
    %220 = math.exp %219 : vector<18x18xf32>
    %cst_68 = arith.constant dense<0.000000e+00> : vector<18xf32>
    %221 = vector.multi_reduction <add>, %220, %cst_68 [1] : vector<18x18xf32> to vector<18xf32>
    %222 = vector.shape_cast %221 : vector<18xf32> to vector<18x1xf32>
    %223 = tpu.reciprocal %222 {approx = true} : vector<18x1xf32> -> vector<18x1xf32>
    %224 = vector.broadcast %223 : vector<18x1xf32> to vector<18x18xf32>
    %225 = arith.mulf %220, %224 : vector<18x18xf32>
    %226 = arith.truncf %225 : vector<18x18xf32> to vector<18x18xbf16>
    %cst_69 = arith.constant dense<0.000000e+00> : vector<18x8xf32>
    %227 = tpu.matmul %226, %213, %cst_69 {dimension_numbers = #tpu.dot_dimension_numbers<[1], [0], [0], [1], [0, 0, 1, 1], [], []>} : vector<18x18xbf16>, vector<18x8xbf16>, vector<18x8xf32> -> vector<18x8xf32>
    %c0_70 = arith.constant 0 : index
    %c0_71 = arith.constant 0 : index
    %228 = vector.load %arg9[%c0_70, %c0_71] : memref<18x32xf32, #tpu.memory_space<vmem>>, vector<18x8xf32>
    tpu.vector_store %arg9[%c0_70, %c0_71], %227 {strides = array<i32>} : memref<18x32xf32, #tpu.memory_space<vmem>>, vector<18x8xf32>,
    %229 = vector.extract_strided_slice %207 {offsets = [0, 8], sizes = [18, 8], strides = [1, 1]} : vector<18x96xf32> to vector<18x8xf32>
    %230 = arith.truncf %229 : vector<18x8xf32> to vector<18x8xbf16>
    %231 = vector.extract_strided_slice %207 {offsets = [0, 40], sizes = [18, 8], strides = [1, 1]} : vector<18x96xf32> to vector<18x8xf32>
    %232 = arith.truncf %231 : vector<18x8xf32> to vector<18x8xbf16>
    %233 = vector.extract_strided_slice %207 {offsets = [0, 72], sizes = [18, 8], strides = [1, 1]} : vector<18x96xf32> to vector<18x8xf32>
    %234 = arith.truncf %233 : vector<18x8xf32> to vector<18x8xbf16>
    "tpu.trace_start"() <{level = 10 : i32, message = "nd,md->nm"}> : () -> ()
    %cst_72 = arith.constant dense<0.000000e+00> : vector<18x18xf32>
    %235 = tpu.matmul %230, %232, %cst_72 {dimension_numbers = #tpu.dot_dimension_numbers<[1], [1], [0], [0], [0, 0, 1, 0], [], []>} : vector<18x8xbf16>, vector<18x8xbf16>, vector<18x18xf32> -> vector<18x18xf32>
    "tpu.trace_stop"() : () -> ()
    %236 = arith.addf %235, %1 : vector<18x18xf32>
    %cst_73 = arith.constant dense<0xFF800000> : vector<18xf32>
    %237 = vector.multi_reduction <maximumf>, %236, %cst_73 [1] : vector<18x18xf32> to vector<18xf32>
    %238 = vector.shape_cast %237 : vector<18xf32> to vector<18x1xf32>
    %239 = vector.broadcast %238 : vector<18x1xf32> to vector<18x18xf32>
    %240 = arith.subf %236, %239 : vector<18x18xf32>
    %241 = math.exp %240 : vector<18x18xf32>
    %cst_74 = arith.constant dense<0.000000e+00> : vector<18xf32>
    %242 = vector.multi_reduction <add>, %241, %cst_74 [1] : vector<18x18xf32> to vector<18xf32>
    %243 = vector.shape_cast %242 : vector<18xf32> to vector<18x1xf32>
    %244 = tpu.reciprocal %243 {approx = true} : vector<18x1xf32> -> vector<18x1xf32>
    %245 = vector.broadcast %244 : vector<18x1xf32> to vector<18x18xf32>
    %246 = arith.mulf %241, %245 : vector<18x18xf32>
    %247 = arith.truncf %246 : vector<18x18xf32> to vector<18x18xbf16>
    %cst_75 = arith.constant dense<0.000000e+00> : vector<18x8xf32>
    %248 = tpu.matmul %247, %234, %cst_75 {dimension_numbers = #tpu.dot_dimension_numbers<[1], [0], [0], [1], [0, 0, 1, 1], [], []>} : vector<18x18xbf16>, vector<18x8xbf16>, vector<18x8xf32> -> vector<18x8xf32>
    %c0_76 = arith.constant 0 : index
    %c8_77 = arith.constant 8 : index
    %249 = vector.load %arg9[%c0_76, %c8_77] : memref<18x32xf32, #tpu.memory_space<vmem>>, vector<18x8xf32>
    tpu.vector_store %arg9[%c0_76, %c8_77], %248 {strides = array<i32>} : memref<18x32xf32, #tpu.memory_space<vmem>>, vector<18x8xf32>,
    %250 = vector.extract_strided_slice %207 {offsets = [0, 16], sizes = [18, 8], strides = [1, 1]} : vector<18x96xf32> to vector<18x8xf32>
    %251 = arith.truncf %250 : vector<18x8xf32> to vector<18x8xbf16>
    %252 = vector.extract_strided_slice %207 {offsets = [0, 48], sizes = [18, 8], strides = [1, 1]} : vector<18x96xf32> to vector<18x8xf32>
    %253 = arith.truncf %252 : vector<18x8xf32> to vector<18x8xbf16>
    %254 = vector.extract_strided_slice %207 {offsets = [0, 80], sizes = [18, 8], strides = [1, 1]} : vector<18x96xf32> to vector<18x8xf32>
    %255 = arith.truncf %254 : vector<18x8xf32> to vector<18x8xbf16>
    "tpu.trace_start"() <{level = 10 : i32, message = "nd,md->nm"}> : () -> ()
    %cst_78 = arith.constant dense<0.000000e+00> : vector<18x18xf32>
    %256 = tpu.matmul %251, %253, %cst_78 {dimension_numbers = #tpu.dot_dimension_numbers<[1], [1], [0], [0], [0, 0, 1, 0], [], []>} : vector<18x8xbf16>, vector<18x8xbf16>, vector<18x18xf32> -> vector<18x18xf32>
    "tpu.trace_stop"() : () -> ()
    %257 = arith.addf %256, %1 : vector<18x18xf32>
    %cst_79 = arith.constant dense<0xFF800000> : vector<18xf32>
    %258 = vector.multi_reduction <maximumf>, %257, %cst_79 [1] : vector<18x18xf32> to vector<18xf32>
    %259 = vector.shape_cast %258 : vector<18xf32> to vector<18x1xf32>
    %260 = vector.broadcast %259 : vector<18x1xf32> to vector<18x18xf32>
    %261 = arith.subf %257, %260 : vector<18x18xf32>
    %262 = math.exp %261 : vector<18x18xf32>
    %cst_80 = arith.constant dense<0.000000e+00> : vector<18xf32>
    %263 = vector.multi_reduction <add>, %262, %cst_80 [1] : vector<18x18xf32> to vector<18xf32>
    %264 = vector.shape_cast %263 : vector<18xf32> to vector<18x1xf32>
    %265 = tpu.reciprocal %264 {approx = true} : vector<18x1xf32> -> vector<18x1xf32>
    %266 = vector.broadcast %265 : vector<18x1xf32> to vector<18x18xf32>
    %267 = arith.mulf %262, %266 : vector<18x18xf32>
    %268 = arith.truncf %267 : vector<18x18xf32> to vector<18x18xbf16>
    %cst_81 = arith.constant dense<0.000000e+00> : vector<18x8xf32>
    %269 = tpu.matmul %268, %255, %cst_81 {dimension_numbers = #tpu.dot_dimension_numbers<[1], [0], [0], [1], [0, 0, 1, 1], [], []>} : vector<18x18xbf16>, vector<18x8xbf16>, vector<18x8xf32> -> vector<18x8xf32>
    %c0_82 = arith.constant 0 : index
    %c16_83 = arith.constant 16 : index
    %270 = vector.load %arg9[%c0_82, %c16_83] : memref<18x32xf32, #tpu.memory_space<vmem>>, vector<18x8xf32>
    tpu.vector_store %arg9[%c0_82, %c16_83], %269 {strides = array<i32>} : memref<18x32xf32, #tpu.memory_space<vmem>>, vector<18x8xf32>,
    %271 = vector.extract_strided_slice %207 {offsets = [0, 24], sizes = [18, 8], strides = [1, 1]} : vector<18x96xf32> to vector<18x8xf32>
    %272 = arith.truncf %271 : vector<18x8xf32> to vector<18x8xbf16>
    %273 = vector.extract_strided_slice %207 {offsets = [0, 56], sizes = [18, 8], strides = [1, 1]} : vector<18x96xf32> to vector<18x8xf32>
    %274 = arith.truncf %273 : vector<18x8xf32> to vector<18x8xbf16>
    %275 = vector.extract_strided_slice %207 {offsets = [0, 88], sizes = [18, 8], strides = [1, 1]} : vector<18x96xf32> to vector<18x8xf32>
    %276 = arith.truncf %275 : vector<18x8xf32> to vector<18x8xbf16>
    "tpu.trace_start"() <{level = 10 : i32, message = "nd,md->nm"}> : () -> ()
    %cst_84 = arith.constant dense<0.000000e+00> : vector<18x18xf32>
    %277 = tpu.matmul %272, %274, %cst_84 {dimension_numbers = #tpu.dot_dimension_numbers<[1], [1], [0], [0], [0, 0, 1, 0], [], []>} : vector<18x8xbf16>, vector<18x8xbf16>, vector<18x18xf32> -> vector<18x18xf32>
    "tpu.trace_stop"() : () -> ()
    %278 = arith.addf %277, %1 : vector<18x18xf32>
    %cst_85 = arith.constant dense<0xFF800000> : vector<18xf32>
    %279 = vector.multi_reduction <maximumf>, %278, %cst_85 [1] : vector<18x18xf32> to vector<18xf32>
    %280 = vector.shape_cast %279 : vector<18xf32> to vector<18x1xf32>
    %281 = vector.broadcast %280 : vector<18x1xf32> to vector<18x18xf32>
    %282 = arith.subf %278, %281 : vector<18x18xf32>
    %283 = math.exp %282 : vector<18x18xf32>
    %cst_86 = arith.constant dense<0.000000e+00> : vector<18xf32>
    %284 = vector.multi_reduction <add>, %283, %cst_86 [1] : vector<18x18xf32> to vector<18xf32>
    %285 = vector.shape_cast %284 : vector<18xf32> to vector<18x1xf32>
    %286 = tpu.reciprocal %285 {approx = true} : vector<18x1xf32> -> vector<18x1xf32>
    %287 = vector.broadcast %286 : vector<18x1xf32> to vector<18x18xf32>
    %288 = arith.mulf %283, %287 : vector<18x18xf32>
    %289 = arith.truncf %288 : vector<18x18xf32> to vector<18x18xbf16>
    %cst_87 = arith.constant dense<0.000000e+00> : vector<18x8xf32>
    %290 = tpu.matmul %289, %276, %cst_87 {dimension_numbers = #tpu.dot_dimension_numbers<[1], [0], [0], [1], [0, 0, 1, 1], [], []>} : vector<18x18xbf16>, vector<18x8xbf16>, vector<18x8xf32> -> vector<18x8xf32>
    %c0_88 = arith.constant 0 : index
    %c24_89 = arith.constant 24 : index
    %291 = vector.load %arg9[%c0_88, %c24_89] : memref<18x32xf32, #tpu.memory_space<vmem>>, vector<18x8xf32>
    tpu.vector_store %arg9[%c0_88, %c24_89], %290 {strides = array<i32>} : memref<18x32xf32, #tpu.memory_space<vmem>>, vector<18x8xf32>,
    %c0_90 = arith.constant 0 : index
    %c0_91 = arith.constant 0 : index
    %292 = vector.load %arg9[%c0_90, %c0_91] : memref<18x32xf32, #tpu.memory_space<vmem>>, vector<18x32xf32>
    %293 = arith.truncf %292 : vector<18x32xf32> to vector<18x32xbf16>
    %294 = vector.extract_strided_slice %178 {offsets = [0, 96], sizes = [32, 32], strides = [1, 1]} : vector<32x192xbf16> to vector<32x32xbf16>
    %cst_92 = arith.constant dense<0.000000e+00> : vector<18x32xf32>
    %295 = tpu.matmul %293, %294, %cst_92 {dimension_numbers = #tpu.dot_dimension_numbers<[1], [0], [0], [1], [0, 0, 1, 1], [], []>} : vector<18x32xbf16>, vector<32x32xbf16>, vector<18x32xf32> -> vector<18x32xf32>
    %296 = vector.extract_strided_slice %180 {offsets = [4, 0], sizes = [1, 32], strides = [1, 1]} : vector<6x32xf32> to vector<1x32xf32>
    %297 = vector.broadcast %296 : vector<1x32xf32> to vector<18x32xf32>
    %298 = arith.addf %295, %297 : vector<18x32xf32>
    %299 = arith.addf %298, %176 : vector<18x32xf32>
    %300 = vector.extract_strided_slice %180 {offsets = [2, 0], sizes = [1, 32], strides = [1, 1]} : vector<6x32xf32> to vector<1x32xf32>
    %301 = vector.extract_strided_slice %180 {offsets = [3, 0], sizes = [1, 32], strides = [1, 1]} : vector<6x32xf32> to vector<1x32xf32>
    %cst_93 = arith.constant dense<0.000000e+00> : vector<18xf32>
    %302 = vector.multi_reduction <add>, %299, %cst_93 [1] : vector<18x32xf32> to vector<18xf32>
    %303 = vector.shape_cast %302 : vector<18xf32> to vector<18x1xf32>
    %cst_94 = arith.constant 3.200000e+01 : f32
    %304 = vector.broadcast %cst_94 : f32 to vector<18x1xf32>
    %305 = arith.divf %303, %304 : vector<18x1xf32>
    %306 = vector.broadcast %305 : vector<18x1xf32> to vector<18x32xf32>
    %307 = arith.subf %299, %306 : vector<18x32xf32>
    %308 = arith.mulf %307, %307 : vector<18x32xf32>
    %cst_95 = arith.constant dense<0.000000e+00> : vector<18xf32>
    %309 = vector.multi_reduction <add>, %308, %cst_95 [1] : vector<18x32xf32> to vector<18xf32>
    %310 = vector.shape_cast %309 : vector<18xf32> to vector<18x1xf32>
    %cst_96 = arith.constant 3.200000e+01 : f32
    %311 = vector.broadcast %cst_96 : f32 to vector<18x1xf32>
    %312 = arith.divf %310, %311 : vector<18x1xf32>
    %313 = vector.broadcast %305 : vector<18x1xf32> to vector<18x32xf32>
    %314 = arith.subf %299, %313 : vector<18x32xf32>
    %cst_97 = arith.constant 9.99999974E-6 : f32
    %315 = vector.broadcast %cst_97 : f32 to vector<18x1xf32>
    %316 = arith.addf %312, %315 : vector<18x1xf32>
    %317 = math.rsqrt %316 : vector<18x1xf32>
    %318 = vector.broadcast %317 : vector<18x1xf32> to vector<18x32xf32>
    %319 = arith.mulf %314, %318 : vector<18x32xf32>
    %320 = vector.broadcast %300 : vector<1x32xf32> to vector<18x32xf32>
    %321 = arith.mulf %319, %320 : vector<18x32xf32>
    %322 = vector.broadcast %301 : vector<1x32xf32> to vector<18x32xf32>
    %323 = arith.addf %321, %322 : vector<18x32xf32>
    %324 = arith.truncf %323 : vector<18x32xf32> to vector<18x32xbf16>
    %325 = vector.extract_strided_slice %178 {offsets = [0, 128], sizes = [32, 64], strides = [1, 1]} : vector<32x192xbf16> to vector<32x64xbf16>
    %cst_98 = arith.constant dense<0.000000e+00> : vector<18x64xf32>
    %326 = tpu.matmul %324, %325, %cst_98 {dimension_numbers = #tpu.dot_dimension_numbers<[1], [0], [0], [1], [0, 0, 1, 1], [], []>} : vector<18x32xbf16>, vector<32x64xbf16>, vector<18x64xf32> -> vector<18x64xf32>
    %c1_99 = arith.constant 1 : index
    %c0_100 = arith.constant 0 : index
    %c0_101 = arith.constant 0 : index
    %327 = vector.load %arg5[%c1_99, %c0_100, %c0_101] : memref<4x1x64xf32, #tpu.memory_space<vmem>>, vector<1x1x64xf32>
    %328 = vector.shape_cast %327 : vector<1x1x64xf32> to vector<1x64xf32>
    %329 = vector.broadcast %328 : vector<1x64xf32> to vector<18x64xf32>
    %330 = arith.addf %326, %329 : vector<18x64xf32>
    %cst_102 = arith.constant 5.000000e-01 : f32
    %331 = vector.broadcast %cst_102 : f32 to vector<18x64xf32>
    %332 = arith.mulf %331, %330 : vector<18x64xf32>
    %cst_103 = arith.constant 4.471500e-02 : f32
    %333 = vector.broadcast %cst_103 : f32 to vector<18x64xf32>
    %334 = arith.mulf %333, %330 : vector<18x64xf32>
    %335 = arith.mulf %334, %330 : vector<18x64xf32>
    %336 = arith.mulf %335, %330 : vector<18x64xf32>
    %337 = arith.addf %330, %336 : vector<18x64xf32>
    %cst_104 = arith.constant 0.797884583 : f32
    %338 = vector.broadcast %cst_104 : f32 to vector<18x64xf32>
    %339 = arith.mulf %338, %337 : vector<18x64xf32>
    %340 = math.tanh %339 : vector<18x64xf32>
    %cst_105 = arith.constant 1.000000e+00 : f32
    %341 = vector.broadcast %cst_105 : f32 to vector<18x64xf32>
    %342 = arith.addf %341, %340 : vector<18x64xf32>
    %343 = arith.mulf %332, %342 : vector<18x64xf32>
    %344 = arith.truncf %343 : vector<18x64xf32> to vector<18x64xbf16>
    %c1_106 = arith.constant 1 : index
    %c0_107 = arith.constant 0 : index
    %c0_108 = arith.constant 0 : index
    %345 = vector.load %arg3[%c1_106, %c0_107, %c0_108] : memref<4x64x32xbf16, #tpu.memory_space<vmem>>, vector<1x64x32xbf16>
    %346 = vector.shape_cast %345 : vector<1x64x32xbf16> to vector<64x32xbf16>
    %cst_109 = arith.constant dense<0.000000e+00> : vector<18x32xf32>
    %347 = tpu.matmul %344, %346, %cst_109 {dimension_numbers = #tpu.dot_dimension_numbers<[1], [0], [0], [1], [0, 0, 1, 1], [], []>} : vector<18x64xbf16>, vector<64x32xbf16>, vector<18x32xf32> -> vector<18x32xf32>
    %348 = vector.extract_strided_slice %180 {offsets = [5, 0], sizes = [1, 32], strides = [1, 1]} : vector<6x32xf32> to vector<1x32xf32>
    %349 = vector.broadcast %348 : vector<1x32xf32> to vector<18x32xf32>
    %350 = arith.addf %347, %349 : vector<18x32xf32>
    %351 = arith.addf %350, %299 : vector<18x32xf32>
    %c0_110 = arith.constant 0 : index
    %c0_111 = arith.constant 0 : index
    %c0_112 = arith.constant 0 : index
    %c0_113 = arith.constant 0 : index
    %352 = vector.load %arg6[%c0_110, %c0_111, %c0_112, %c0_113] : memref<2x2x18x18xbf16, #tpu.memory_space<vmem>>, vector<1x1x18x18xbf16>
    %353 = vector.shape_cast %352 : vector<1x1x18x18xbf16> to vector<18x18xbf16>
    %354 = arith.truncf %351 : vector<18x32xf32> to vector<18x32xbf16>
    %cst_114 = arith.constant dense<0.000000e+00> : vector<18x32xf32>
    %355 = tpu.matmul %353, %354, %cst_114 {dimension_numbers = #tpu.dot_dimension_numbers<[1], [0], [0], [1], [0, 0, 1, 1], [], []>} : vector<18x18xbf16>, vector<18x32xbf16>, vector<18x32xf32> -> vector<18x32xf32>
    %c0_115 = arith.constant 0 : index
    %c1_116 = arith.constant 1 : index
    %c0_117 = arith.constant 0 : index
    %c0_118 = arith.constant 0 : index
    %356 = vector.load %arg6[%c0_115, %c1_116, %c0_117, %c0_118] : memref<2x2x18x18xbf16, #tpu.memory_space<vmem>>, vector<1x1x18x18xbf16>
    %357 = vector.shape_cast %356 : vector<1x1x18x18xbf16> to vector<18x18xbf16>
    %358 = arith.truncf %0 : vector<18x32xf32> to vector<18x32xbf16>
    %cst_119 = arith.constant dense<0.000000e+00> : vector<18x32xf32>
    %359 = tpu.matmul %357, %358, %cst_119 {dimension_numbers = #tpu.dot_dimension_numbers<[1], [0], [0], [1], [0, 0, 1, 1], [], []>} : vector<18x18xbf16>, vector<18x32xbf16>, vector<18x32xf32> -> vector<18x32xf32>
    %360 = arith.addf %355, %359 : vector<18x32xf32>
    %c0_120 = arith.constant 0 : index
    %c0_121 = arith.constant 0 : index
    %c0_122 = arith.constant 0 : index
    %361 = vector.load %arg7[%c0_120, %c0_121, %c0_122] : memref<2x18x1xf32, #tpu.memory_space<vmem>>, vector<1x18x1xf32>
    %362 = vector.shape_cast %361 : vector<1x18x1xf32> to vector<18x1xf32>
    %363 = vector.broadcast %362 : vector<18x1xf32> to vector<18x32xf32>
    %364 = arith.addf %360, %363 : vector<18x32xf32>
    %c2 = arith.constant 2 : index
    %c0_123 = arith.constant 0 : index
    %c0_124 = arith.constant 0 : index
    %365 = vector.load %arg2[%c2, %c0_123, %c0_124] : memref<4x32x192xbf16, #tpu.memory_space<vmem>>, vector<1x32x192xbf16>
    %366 = vector.shape_cast %365 : vector<1x32x192xbf16> to vector<32x192xbf16>
    %c2_125 = arith.constant 2 : index
    %c0_126 = arith.constant 0 : index
    %c0_127 = arith.constant 0 : index
    %367 = vector.load %arg4[%c2_125, %c0_126, %c0_127] : memref<4x6x32xf32, #tpu.memory_space<vmem>>, vector<1x6x32xf32>
    %368 = vector.shape_cast %367 : vector<1x6x32xf32> to vector<6x32xf32>
    %369 = vector.extract_strided_slice %368 {offsets = [0, 0], sizes = [1, 32], strides = [1, 1]} : vector<6x32xf32> to vector<1x32xf32>
    %370 = vector.extract_strided_slice %368 {offsets = [1, 0], sizes = [1, 32], strides = [1, 1]} : vector<6x32xf32> to vector<1x32xf32>
    %cst_128 = arith.constant dense<0.000000e+00> : vector<18xf32>
    %371 = vector.multi_reduction <add>, %364, %cst_128 [1] : vector<18x32xf32> to vector<18xf32>
    %372 = vector.shape_cast %371 : vector<18xf32> to vector<18x1xf32>
    %cst_129 = arith.constant 3.200000e+01 : f32
    %373 = vector.broadcast %cst_129 : f32 to vector<18x1xf32>
    %374 = arith.divf %372, %373 : vector<18x1xf32>
    %375 = vector.broadcast %374 : vector<18x1xf32> to vector<18x32xf32>
    %376 = arith.subf %364, %375 : vector<18x32xf32>
    %377 = arith.mulf %376, %376 : vector<18x32xf32>
    %cst_130 = arith.constant dense<0.000000e+00> : vector<18xf32>
    %378 = vector.multi_reduction <add>, %377, %cst_130 [1] : vector<18x32xf32> to vector<18xf32>
    %379 = vector.shape_cast %378 : vector<18xf32> to vector<18x1xf32>
    %cst_131 = arith.constant 3.200000e+01 : f32
    %380 = vector.broadcast %cst_131 : f32 to vector<18x1xf32>
    %381 = arith.divf %379, %380 : vector<18x1xf32>
    %382 = vector.broadcast %374 : vector<18x1xf32> to vector<18x32xf32>
    %383 = arith.subf %364, %382 : vector<18x32xf32>
    %cst_132 = arith.constant 9.99999974E-6 : f32
    %384 = vector.broadcast %cst_132 : f32 to vector<18x1xf32>
    %385 = arith.addf %381, %384 : vector<18x1xf32>
    %386 = math.rsqrt %385 : vector<18x1xf32>
    %387 = vector.broadcast %386 : vector<18x1xf32> to vector<18x32xf32>
    %388 = arith.mulf %383, %387 : vector<18x32xf32>
    %389 = vector.broadcast %369 : vector<1x32xf32> to vector<18x32xf32>
    %390 = arith.mulf %388, %389 : vector<18x32xf32>
    %391 = vector.broadcast %370 : vector<1x32xf32> to vector<18x32xf32>
    %392 = arith.addf %390, %391 : vector<18x32xf32>
    %393 = arith.truncf %392 : vector<18x32xf32> to vector<18x32xbf16>
    %394 = vector.extract_strided_slice %366 {offsets = [0, 0], sizes = [32, 96], strides = [1, 1]} : vector<32x192xbf16> to vector<32x96xbf16>
    %cst_133 = arith.constant dense<0.000000e+00> : vector<18x96xf32>
    %395 = tpu.matmul %393, %394, %cst_133 {dimension_numbers = #tpu.dot_dimension_numbers<[1], [0], [0], [1], [0, 0, 1, 1], [], []>} : vector<18x32xbf16>, vector<32x96xbf16>, vector<18x96xf32> -> vector<18x96xf32>
    %396 = vector.extract_strided_slice %395 {offsets = [0, 0], sizes = [18, 8], strides = [1, 1]} : vector<18x96xf32> to vector<18x8xf32>
    %397 = arith.truncf %396 : vector<18x8xf32> to vector<18x8xbf16>
    %398 = vector.extract_strided_slice %395 {offsets = [0, 32], sizes = [18, 8], strides = [1, 1]} : vector<18x96xf32> to vector<18x8xf32>
    %399 = arith.truncf %398 : vector<18x8xf32> to vector<18x8xbf16>
    %400 = vector.extract_strided_slice %395 {offsets = [0, 64], sizes = [18, 8], strides = [1, 1]} : vector<18x96xf32> to vector<18x8xf32>
    %401 = arith.truncf %400 : vector<18x8xf32> to vector<18x8xbf16>
    "tpu.trace_start"() <{level = 10 : i32, message = "nd,md->nm"}> : () -> ()
    %cst_134 = arith.constant dense<0.000000e+00> : vector<18x18xf32>
    %402 = tpu.matmul %397, %399, %cst_134 {dimension_numbers = #tpu.dot_dimension_numbers<[1], [1], [0], [0], [0, 0, 1, 0], [], []>} : vector<18x8xbf16>, vector<18x8xbf16>, vector<18x18xf32> -> vector<18x18xf32>
    "tpu.trace_stop"() : () -> ()
    %403 = arith.addf %402, %1 : vector<18x18xf32>
    %cst_135 = arith.constant dense<0xFF800000> : vector<18xf32>
    %404 = vector.multi_reduction <maximumf>, %403, %cst_135 [1] : vector<18x18xf32> to vector<18xf32>
    %405 = vector.shape_cast %404 : vector<18xf32> to vector<18x1xf32>
    %406 = vector.broadcast %405 : vector<18x1xf32> to vector<18x18xf32>
    %407 = arith.subf %403, %406 : vector<18x18xf32>
    %408 = math.exp %407 : vector<18x18xf32>
    %cst_136 = arith.constant dense<0.000000e+00> : vector<18xf32>
    %409 = vector.multi_reduction <add>, %408, %cst_136 [1] : vector<18x18xf32> to vector<18xf32>
    %410 = vector.shape_cast %409 : vector<18xf32> to vector<18x1xf32>
    %411 = tpu.reciprocal %410 {approx = true} : vector<18x1xf32> -> vector<18x1xf32>
    %412 = vector.broadcast %411 : vector<18x1xf32> to vector<18x18xf32>
    %413 = arith.mulf %408, %412 : vector<18x18xf32>
    %414 = arith.truncf %413 : vector<18x18xf32> to vector<18x18xbf16>
    %cst_137 = arith.constant dense<0.000000e+00> : vector<18x8xf32>
    %415 = tpu.matmul %414, %401, %cst_137 {dimension_numbers = #tpu.dot_dimension_numbers<[1], [0], [0], [1], [0, 0, 1, 1], [], []>} : vector<18x18xbf16>, vector<18x8xbf16>, vector<18x8xf32> -> vector<18x8xf32>
    %c0_138 = arith.constant 0 : index
    %c0_139 = arith.constant 0 : index
    %416 = vector.load %arg9[%c0_138, %c0_139] : memref<18x32xf32, #tpu.memory_space<vmem>>, vector<18x8xf32>
    tpu.vector_store %arg9[%c0_138, %c0_139], %415 {strides = array<i32>} : memref<18x32xf32, #tpu.memory_space<vmem>>, vector<18x8xf32>,
    %417 = vector.extract_strided_slice %395 {offsets = [0, 8], sizes = [18, 8], strides = [1, 1]} : vector<18x96xf32> to vector<18x8xf32>
    %418 = arith.truncf %417 : vector<18x8xf32> to vector<18x8xbf16>
    %419 = vector.extract_strided_slice %395 {offsets = [0, 40], sizes = [18, 8], strides = [1, 1]} : vector<18x96xf32> to vector<18x8xf32>
    %420 = arith.truncf %419 : vector<18x8xf32> to vector<18x8xbf16>
    %421 = vector.extract_strided_slice %395 {offsets = [0, 72], sizes = [18, 8], strides = [1, 1]} : vector<18x96xf32> to vector<18x8xf32>
    %422 = arith.truncf %421 : vector<18x8xf32> to vector<18x8xbf16>
    "tpu.trace_start"() <{level = 10 : i32, message = "nd,md->nm"}> : () -> ()
    %cst_140 = arith.constant dense<0.000000e+00> : vector<18x18xf32>
    %423 = tpu.matmul %418, %420, %cst_140 {dimension_numbers = #tpu.dot_dimension_numbers<[1], [1], [0], [0], [0, 0, 1, 0], [], []>} : vector<18x8xbf16>, vector<18x8xbf16>, vector<18x18xf32> -> vector<18x18xf32>
    "tpu.trace_stop"() : () -> ()
    %424 = arith.addf %423, %1 : vector<18x18xf32>
    %cst_141 = arith.constant dense<0xFF800000> : vector<18xf32>
    %425 = vector.multi_reduction <maximumf>, %424, %cst_141 [1] : vector<18x18xf32> to vector<18xf32>
    %426 = vector.shape_cast %425 : vector<18xf32> to vector<18x1xf32>
    %427 = vector.broadcast %426 : vector<18x1xf32> to vector<18x18xf32>
    %428 = arith.subf %424, %427 : vector<18x18xf32>
    %429 = math.exp %428 : vector<18x18xf32>
    %cst_142 = arith.constant dense<0.000000e+00> : vector<18xf32>
    %430 = vector.multi_reduction <add>, %429, %cst_142 [1] : vector<18x18xf32> to vector<18xf32>
    %431 = vector.shape_cast %430 : vector<18xf32> to vector<18x1xf32>
    %432 = tpu.reciprocal %431 {approx = true} : vector<18x1xf32> -> vector<18x1xf32>
    %433 = vector.broadcast %432 : vector<18x1xf32> to vector<18x18xf32>
    %434 = arith.mulf %429, %433 : vector<18x18xf32>
    %435 = arith.truncf %434 : vector<18x18xf32> to vector<18x18xbf16>
    %cst_143 = arith.constant dense<0.000000e+00> : vector<18x8xf32>
    %436 = tpu.matmul %435, %422, %cst_143 {dimension_numbers = #tpu.dot_dimension_numbers<[1], [0], [0], [1], [0, 0, 1, 1], [], []>} : vector<18x18xbf16>, vector<18x8xbf16>, vector<18x8xf32> -> vector<18x8xf32>
    %c0_144 = arith.constant 0 : index
    %c8_145 = arith.constant 8 : index
    %437 = vector.load %arg9[%c0_144, %c8_145] : memref<18x32xf32, #tpu.memory_space<vmem>>, vector<18x8xf32>
    tpu.vector_store %arg9[%c0_144, %c8_145], %436 {strides = array<i32>} : memref<18x32xf32, #tpu.memory_space<vmem>>, vector<18x8xf32>,
    %438 = vector.extract_strided_slice %395 {offsets = [0, 16], sizes = [18, 8], strides = [1, 1]} : vector<18x96xf32> to vector<18x8xf32>
    %439 = arith.truncf %438 : vector<18x8xf32> to vector<18x8xbf16>
    %440 = vector.extract_strided_slice %395 {offsets = [0, 48], sizes = [18, 8], strides = [1, 1]} : vector<18x96xf32> to vector<18x8xf32>
    %441 = arith.truncf %440 : vector<18x8xf32> to vector<18x8xbf16>
    %442 = vector.extract_strided_slice %395 {offsets = [0, 80], sizes = [18, 8], strides = [1, 1]} : vector<18x96xf32> to vector<18x8xf32>
    %443 = arith.truncf %442 : vector<18x8xf32> to vector<18x8xbf16>
    "tpu.trace_start"() <{level = 10 : i32, message = "nd,md->nm"}> : () -> ()
    %cst_146 = arith.constant dense<0.000000e+00> : vector<18x18xf32>
    %444 = tpu.matmul %439, %441, %cst_146 {dimension_numbers = #tpu.dot_dimension_numbers<[1], [1], [0], [0], [0, 0, 1, 0], [], []>} : vector<18x8xbf16>, vector<18x8xbf16>, vector<18x18xf32> -> vector<18x18xf32>
    "tpu.trace_stop"() : () -> ()
    %445 = arith.addf %444, %1 : vector<18x18xf32>
    %cst_147 = arith.constant dense<0xFF800000> : vector<18xf32>
    %446 = vector.multi_reduction <maximumf>, %445, %cst_147 [1] : vector<18x18xf32> to vector<18xf32>
    %447 = vector.shape_cast %446 : vector<18xf32> to vector<18x1xf32>
    %448 = vector.broadcast %447 : vector<18x1xf32> to vector<18x18xf32>
    %449 = arith.subf %445, %448 : vector<18x18xf32>
    %450 = math.exp %449 : vector<18x18xf32>
    %cst_148 = arith.constant dense<0.000000e+00> : vector<18xf32>
    %451 = vector.multi_reduction <add>, %450, %cst_148 [1] : vector<18x18xf32> to vector<18xf32>
    %452 = vector.shape_cast %451 : vector<18xf32> to vector<18x1xf32>
    %453 = tpu.reciprocal %452 {approx = true} : vector<18x1xf32> -> vector<18x1xf32>
    %454 = vector.broadcast %453 : vector<18x1xf32> to vector<18x18xf32>
    %455 = arith.mulf %450, %454 : vector<18x18xf32>
    %456 = arith.truncf %455 : vector<18x18xf32> to vector<18x18xbf16>
    %cst_149 = arith.constant dense<0.000000e+00> : vector<18x8xf32>
    %457 = tpu.matmul %456, %443, %cst_149 {dimension_numbers = #tpu.dot_dimension_numbers<[1], [0], [0], [1], [0, 0, 1, 1], [], []>} : vector<18x18xbf16>, vector<18x8xbf16>, vector<18x8xf32> -> vector<18x8xf32>
    %c0_150 = arith.constant 0 : index
    %c16_151 = arith.constant 16 : index
    %458 = vector.load %arg9[%c0_150, %c16_151] : memref<18x32xf32, #tpu.memory_space<vmem>>, vector<18x8xf32>
    tpu.vector_store %arg9[%c0_150, %c16_151], %457 {strides = array<i32>} : memref<18x32xf32, #tpu.memory_space<vmem>>, vector<18x8xf32>,
    %459 = vector.extract_strided_slice %395 {offsets = [0, 24], sizes = [18, 8], strides = [1, 1]} : vector<18x96xf32> to vector<18x8xf32>
    %460 = arith.truncf %459 : vector<18x8xf32> to vector<18x8xbf16>
    %461 = vector.extract_strided_slice %395 {offsets = [0, 56], sizes = [18, 8], strides = [1, 1]} : vector<18x96xf32> to vector<18x8xf32>
    %462 = arith.truncf %461 : vector<18x8xf32> to vector<18x8xbf16>
    %463 = vector.extract_strided_slice %395 {offsets = [0, 88], sizes = [18, 8], strides = [1, 1]} : vector<18x96xf32> to vector<18x8xf32>
    %464 = arith.truncf %463 : vector<18x8xf32> to vector<18x8xbf16>
    "tpu.trace_start"() <{level = 10 : i32, message = "nd,md->nm"}> : () -> ()
    %cst_152 = arith.constant dense<0.000000e+00> : vector<18x18xf32>
    %465 = tpu.matmul %460, %462, %cst_152 {dimension_numbers = #tpu.dot_dimension_numbers<[1], [1], [0], [0], [0, 0, 1, 0], [], []>} : vector<18x8xbf16>, vector<18x8xbf16>, vector<18x18xf32> -> vector<18x18xf32>
    "tpu.trace_stop"() : () -> ()
    %466 = arith.addf %465, %1 : vector<18x18xf32>
    %cst_153 = arith.constant dense<0xFF800000> : vector<18xf32>
    %467 = vector.multi_reduction <maximumf>, %466, %cst_153 [1] : vector<18x18xf32> to vector<18xf32>
    %468 = vector.shape_cast %467 : vector<18xf32> to vector<18x1xf32>
    %469 = vector.broadcast %468 : vector<18x1xf32> to vector<18x18xf32>
    %470 = arith.subf %466, %469 : vector<18x18xf32>
    %471 = math.exp %470 : vector<18x18xf32>
    %cst_154 = arith.constant dense<0.000000e+00> : vector<18xf32>
    %472 = vector.multi_reduction <add>, %471, %cst_154 [1] : vector<18x18xf32> to vector<18xf32>
    %473 = vector.shape_cast %472 : vector<18xf32> to vector<18x1xf32>
    %474 = tpu.reciprocal %473 {approx = true} : vector<18x1xf32> -> vector<18x1xf32>
    %475 = vector.broadcast %474 : vector<18x1xf32> to vector<18x18xf32>
    %476 = arith.mulf %471, %475 : vector<18x18xf32>
    %477 = arith.truncf %476 : vector<18x18xf32> to vector<18x18xbf16>
    %cst_155 = arith.constant dense<0.000000e+00> : vector<18x8xf32>
    %478 = tpu.matmul %477, %464, %cst_155 {dimension_numbers = #tpu.dot_dimension_numbers<[1], [0], [0], [1], [0, 0, 1, 1], [], []>} : vector<18x18xbf16>, vector<18x8xbf16>, vector<18x8xf32> -> vector<18x8xf32>
    %c0_156 = arith.constant 0 : index
    %c24_157 = arith.constant 24 : index
    %479 = vector.load %arg9[%c0_156, %c24_157] : memref<18x32xf32, #tpu.memory_space<vmem>>, vector<18x8xf32>
    tpu.vector_store %arg9[%c0_156, %c24_157], %478 {strides = array<i32>} : memref<18x32xf32, #tpu.memory_space<vmem>>, vector<18x8xf32>,
    %c0_158 = arith.constant 0 : index
    %c0_159 = arith.constant 0 : index
    %480 = vector.load %arg9[%c0_158, %c0_159] : memref<18x32xf32, #tpu.memory_space<vmem>>, vector<18x32xf32>
    %481 = arith.truncf %480 : vector<18x32xf32> to vector<18x32xbf16>
    %482 = vector.extract_strided_slice %366 {offsets = [0, 96], sizes = [32, 32], strides = [1, 1]} : vector<32x192xbf16> to vector<32x32xbf16>
    %cst_160 = arith.constant dense<0.000000e+00> : vector<18x32xf32>
    %483 = tpu.matmul %481, %482, %cst_160 {dimension_numbers = #tpu.dot_dimension_numbers<[1], [0], [0], [1], [0, 0, 1, 1], [], []>} : vector<18x32xbf16>, vector<32x32xbf16>, vector<18x32xf32> -> vector<18x32xf32>
    %484 = vector.extract_strided_slice %368 {offsets = [4, 0], sizes = [1, 32], strides = [1, 1]} : vector<6x32xf32> to vector<1x32xf32>
    %485 = vector.broadcast %484 : vector<1x32xf32> to vector<18x32xf32>
    %486 = arith.addf %483, %485 : vector<18x32xf32>
    %487 = arith.addf %486, %364 : vector<18x32xf32>
    %488 = vector.extract_strided_slice %368 {offsets = [2, 0], sizes = [1, 32], strides = [1, 1]} : vector<6x32xf32> to vector<1x32xf32>
    %489 = vector.extract_strided_slice %368 {offsets = [3, 0], sizes = [1, 32], strides = [1, 1]} : vector<6x32xf32> to vector<1x32xf32>
    %cst_161 = arith.constant dense<0.000000e+00> : vector<18xf32>
    %490 = vector.multi_reduction <add>, %487, %cst_161 [1] : vector<18x32xf32> to vector<18xf32>
    %491 = vector.shape_cast %490 : vector<18xf32> to vector<18x1xf32>
    %cst_162 = arith.constant 3.200000e+01 : f32
    %492 = vector.broadcast %cst_162 : f32 to vector<18x1xf32>
    %493 = arith.divf %491, %492 : vector<18x1xf32>
    %494 = vector.broadcast %493 : vector<18x1xf32> to vector<18x32xf32>
    %495 = arith.subf %487, %494 : vector<18x32xf32>
    %496 = arith.mulf %495, %495 : vector<18x32xf32>
    %cst_163 = arith.constant dense<0.000000e+00> : vector<18xf32>
    %497 = vector.multi_reduction <add>, %496, %cst_163 [1] : vector<18x32xf32> to vector<18xf32>
    %498 = vector.shape_cast %497 : vector<18xf32> to vector<18x1xf32>
    %cst_164 = arith.constant 3.200000e+01 : f32
    %499 = vector.broadcast %cst_164 : f32 to vector<18x1xf32>
    %500 = arith.divf %498, %499 : vector<18x1xf32>
    %501 = vector.broadcast %493 : vector<18x1xf32> to vector<18x32xf32>
    %502 = arith.subf %487, %501 : vector<18x32xf32>
    %cst_165 = arith.constant 9.99999974E-6 : f32
    %503 = vector.broadcast %cst_165 : f32 to vector<18x1xf32>
    %504 = arith.addf %500, %503 : vector<18x1xf32>
    %505 = math.rsqrt %504 : vector<18x1xf32>
    %506 = vector.broadcast %505 : vector<18x1xf32> to vector<18x32xf32>
    %507 = arith.mulf %502, %506 : vector<18x32xf32>
    %508 = vector.broadcast %488 : vector<1x32xf32> to vector<18x32xf32>
    %509 = arith.mulf %507, %508 : vector<18x32xf32>
    %510 = vector.broadcast %489 : vector<1x32xf32> to vector<18x32xf32>
    %511 = arith.addf %509, %510 : vector<18x32xf32>
    %512 = arith.truncf %511 : vector<18x32xf32> to vector<18x32xbf16>
    %513 = vector.extract_strided_slice %366 {offsets = [0, 128], sizes = [32, 64], strides = [1, 1]} : vector<32x192xbf16> to vector<32x64xbf16>
    %cst_166 = arith.constant dense<0.000000e+00> : vector<18x64xf32>
    %514 = tpu.matmul %512, %513, %cst_166 {dimension_numbers = #tpu.dot_dimension_numbers<[1], [0], [0], [1], [0, 0, 1, 1], [], []>} : vector<18x32xbf16>, vector<32x64xbf16>, vector<18x64xf32> -> vector<18x64xf32>
    %c2_167 = arith.constant 2 : index
    %c0_168 = arith.constant 0 : index
    %c0_169 = arith.constant 0 : index
    %515 = vector.load %arg5[%c2_167, %c0_168, %c0_169] : memref<4x1x64xf32, #tpu.memory_space<vmem>>, vector<1x1x64xf32>
    %516 = vector.shape_cast %515 : vector<1x1x64xf32> to vector<1x64xf32>
    %517 = vector.broadcast %516 : vector<1x64xf32> to vector<18x64xf32>
    %518 = arith.addf %514, %517 : vector<18x64xf32>
    %cst_170 = arith.constant 5.000000e-01 : f32
    %519 = vector.broadcast %cst_170 : f32 to vector<18x64xf32>
    %520 = arith.mulf %519, %518 : vector<18x64xf32>
    %cst_171 = arith.constant 4.471500e-02 : f32
    %521 = vector.broadcast %cst_171 : f32 to vector<18x64xf32>
    %522 = arith.mulf %521, %518 : vector<18x64xf32>
    %523 = arith.mulf %522, %518 : vector<18x64xf32>
    %524 = arith.mulf %523, %518 : vector<18x64xf32>
    %525 = arith.addf %518, %524 : vector<18x64xf32>
    %cst_172 = arith.constant 0.797884583 : f32
    %526 = vector.broadcast %cst_172 : f32 to vector<18x64xf32>
    %527 = arith.mulf %526, %525 : vector<18x64xf32>
    %528 = math.tanh %527 : vector<18x64xf32>
    %cst_173 = arith.constant 1.000000e+00 : f32
    %529 = vector.broadcast %cst_173 : f32 to vector<18x64xf32>
    %530 = arith.addf %529, %528 : vector<18x64xf32>
    %531 = arith.mulf %520, %530 : vector<18x64xf32>
    %532 = arith.truncf %531 : vector<18x64xf32> to vector<18x64xbf16>
    %c2_174 = arith.constant 2 : index
    %c0_175 = arith.constant 0 : index
    %c0_176 = arith.constant 0 : index
    %533 = vector.load %arg3[%c2_174, %c0_175, %c0_176] : memref<4x64x32xbf16, #tpu.memory_space<vmem>>, vector<1x64x32xbf16>
    %534 = vector.shape_cast %533 : vector<1x64x32xbf16> to vector<64x32xbf16>
    %cst_177 = arith.constant dense<0.000000e+00> : vector<18x32xf32>
    %535 = tpu.matmul %532, %534, %cst_177 {dimension_numbers = #tpu.dot_dimension_numbers<[1], [0], [0], [1], [0, 0, 1, 1], [], []>} : vector<18x64xbf16>, vector<64x32xbf16>, vector<18x32xf32> -> vector<18x32xf32>
    %536 = vector.extract_strided_slice %368 {offsets = [5, 0], sizes = [1, 32], strides = [1, 1]} : vector<6x32xf32> to vector<1x32xf32>
    %537 = vector.broadcast %536 : vector<1x32xf32> to vector<18x32xf32>
    %538 = arith.addf %535, %537 : vector<18x32xf32>
    %539 = arith.addf %538, %487 : vector<18x32xf32>
    %c1_178 = arith.constant 1 : index
    %c0_179 = arith.constant 0 : index
    %c0_180 = arith.constant 0 : index
    %c0_181 = arith.constant 0 : index
    %540 = vector.load %arg6[%c1_178, %c0_179, %c0_180, %c0_181] : memref<2x2x18x18xbf16, #tpu.memory_space<vmem>>, vector<1x1x18x18xbf16>
    %541 = vector.shape_cast %540 : vector<1x1x18x18xbf16> to vector<18x18xbf16>
    %542 = arith.truncf %539 : vector<18x32xf32> to vector<18x32xbf16>
    %cst_182 = arith.constant dense<0.000000e+00> : vector<18x32xf32>
    %543 = tpu.matmul %541, %542, %cst_182 {dimension_numbers = #tpu.dot_dimension_numbers<[1], [0], [0], [1], [0, 0, 1, 1], [], []>} : vector<18x18xbf16>, vector<18x32xbf16>, vector<18x32xf32> -> vector<18x32xf32>
    %c1_183 = arith.constant 1 : index
    %c1_184 = arith.constant 1 : index
    %c0_185 = arith.constant 0 : index
    %c0_186 = arith.constant 0 : index
    %544 = vector.load %arg6[%c1_183, %c1_184, %c0_185, %c0_186] : memref<2x2x18x18xbf16, #tpu.memory_space<vmem>>, vector<1x1x18x18xbf16>
    %545 = vector.shape_cast %544 : vector<1x1x18x18xbf16> to vector<18x18xbf16>
    %546 = arith.truncf %176 : vector<18x32xf32> to vector<18x32xbf16>
    %cst_187 = arith.constant dense<0.000000e+00> : vector<18x32xf32>
    %547 = tpu.matmul %545, %546, %cst_187 {dimension_numbers = #tpu.dot_dimension_numbers<[1], [0], [0], [1], [0, 0, 1, 1], [], []>} : vector<18x18xbf16>, vector<18x32xbf16>, vector<18x32xf32> -> vector<18x32xf32>
    %548 = arith.addf %543, %547 : vector<18x32xf32>
    %c1_188 = arith.constant 1 : index
    %c0_189 = arith.constant 0 : index
    %c0_190 = arith.constant 0 : index
    %549 = vector.load %arg7[%c1_188, %c0_189, %c0_190] : memref<2x18x1xf32, #tpu.memory_space<vmem>>, vector<1x18x1xf32>
    %550 = vector.shape_cast %549 : vector<1x18x1xf32> to vector<18x1xf32>
    %551 = vector.broadcast %550 : vector<18x1xf32> to vector<18x32xf32>
    %552 = arith.addf %548, %551 : vector<18x32xf32>
    %c3 = arith.constant 3 : index
    %c0_191 = arith.constant 0 : index
    %c0_192 = arith.constant 0 : index
    %553 = vector.load %arg2[%c3, %c0_191, %c0_192] : memref<4x32x192xbf16, #tpu.memory_space<vmem>>, vector<1x32x192xbf16>
    %554 = vector.shape_cast %553 : vector<1x32x192xbf16> to vector<32x192xbf16>
    %c3_193 = arith.constant 3 : index
    %c0_194 = arith.constant 0 : index
    %c0_195 = arith.constant 0 : index
    %555 = vector.load %arg4[%c3_193, %c0_194, %c0_195] : memref<4x6x32xf32, #tpu.memory_space<vmem>>, vector<1x6x32xf32>
    %556 = vector.shape_cast %555 : vector<1x6x32xf32> to vector<6x32xf32>
    %557 = vector.extract_strided_slice %556 {offsets = [0, 0], sizes = [1, 32], strides = [1, 1]} : vector<6x32xf32> to vector<1x32xf32>
    %558 = vector.extract_strided_slice %556 {offsets = [1, 0], sizes = [1, 32], strides = [1, 1]} : vector<6x32xf32> to vector<1x32xf32>
    %cst_196 = arith.constant dense<0.000000e+00> : vector<18xf32>
    %559 = vector.multi_reduction <add>, %552, %cst_196 [1] : vector<18x32xf32> to vector<18xf32>
    %560 = vector.shape_cast %559 : vector<18xf32> to vector<18x1xf32>
    %cst_197 = arith.constant 3.200000e+01 : f32
    %561 = vector.broadcast %cst_197 : f32 to vector<18x1xf32>
    %562 = arith.divf %560, %561 : vector<18x1xf32>
    %563 = vector.broadcast %562 : vector<18x1xf32> to vector<18x32xf32>
    %564 = arith.subf %552, %563 : vector<18x32xf32>
    %565 = arith.mulf %564, %564 : vector<18x32xf32>
    %cst_198 = arith.constant dense<0.000000e+00> : vector<18xf32>
    %566 = vector.multi_reduction <add>, %565, %cst_198 [1] : vector<18x32xf32> to vector<18xf32>
    %567 = vector.shape_cast %566 : vector<18xf32> to vector<18x1xf32>
    %cst_199 = arith.constant 3.200000e+01 : f32
    %568 = vector.broadcast %cst_199 : f32 to vector<18x1xf32>
    %569 = arith.divf %567, %568 : vector<18x1xf32>
    %570 = vector.broadcast %562 : vector<18x1xf32> to vector<18x32xf32>
    %571 = arith.subf %552, %570 : vector<18x32xf32>
    %cst_200 = arith.constant 9.99999974E-6 : f32
    %572 = vector.broadcast %cst_200 : f32 to vector<18x1xf32>
    %573 = arith.addf %569, %572 : vector<18x1xf32>
    %574 = math.rsqrt %573 : vector<18x1xf32>
    %575 = vector.broadcast %574 : vector<18x1xf32> to vector<18x32xf32>
    %576 = arith.mulf %571, %575 : vector<18x32xf32>
    %577 = vector.broadcast %557 : vector<1x32xf32> to vector<18x32xf32>
    %578 = arith.mulf %576, %577 : vector<18x32xf32>
    %579 = vector.broadcast %558 : vector<1x32xf32> to vector<18x32xf32>
    %580 = arith.addf %578, %579 : vector<18x32xf32>
    %581 = arith.truncf %580 : vector<18x32xf32> to vector<18x32xbf16>
    %582 = vector.extract_strided_slice %554 {offsets = [0, 0], sizes = [32, 96], strides = [1, 1]} : vector<32x192xbf16> to vector<32x96xbf16>
    %cst_201 = arith.constant dense<0.000000e+00> : vector<18x96xf32>
    %583 = tpu.matmul %581, %582, %cst_201 {dimension_numbers = #tpu.dot_dimension_numbers<[1], [0], [0], [1], [0, 0, 1, 1], [], []>} : vector<18x32xbf16>, vector<32x96xbf16>, vector<18x96xf32> -> vector<18x96xf32>
    %584 = vector.extract_strided_slice %583 {offsets = [0, 0], sizes = [18, 8], strides = [1, 1]} : vector<18x96xf32> to vector<18x8xf32>
    %585 = arith.truncf %584 : vector<18x8xf32> to vector<18x8xbf16>
    %586 = vector.extract_strided_slice %583 {offsets = [0, 32], sizes = [18, 8], strides = [1, 1]} : vector<18x96xf32> to vector<18x8xf32>
    %587 = arith.truncf %586 : vector<18x8xf32> to vector<18x8xbf16>
    %588 = vector.extract_strided_slice %583 {offsets = [0, 64], sizes = [18, 8], strides = [1, 1]} : vector<18x96xf32> to vector<18x8xf32>
    %589 = arith.truncf %588 : vector<18x8xf32> to vector<18x8xbf16>
    "tpu.trace_start"() <{level = 10 : i32, message = "nd,md->nm"}> : () -> ()
    %cst_202 = arith.constant dense<0.000000e+00> : vector<18x18xf32>
    %590 = tpu.matmul %585, %587, %cst_202 {dimension_numbers = #tpu.dot_dimension_numbers<[1], [1], [0], [0], [0, 0, 1, 0], [], []>} : vector<18x8xbf16>, vector<18x8xbf16>, vector<18x18xf32> -> vector<18x18xf32>
    "tpu.trace_stop"() : () -> ()
    %591 = arith.addf %590, %1 : vector<18x18xf32>
    %cst_203 = arith.constant dense<0xFF800000> : vector<18xf32>
    %592 = vector.multi_reduction <maximumf>, %591, %cst_203 [1] : vector<18x18xf32> to vector<18xf32>
    %593 = vector.shape_cast %592 : vector<18xf32> to vector<18x1xf32>
    %594 = vector.broadcast %593 : vector<18x1xf32> to vector<18x18xf32>
    %595 = arith.subf %591, %594 : vector<18x18xf32>
    %596 = math.exp %595 : vector<18x18xf32>
    %cst_204 = arith.constant dense<0.000000e+00> : vector<18xf32>
    %597 = vector.multi_reduction <add>, %596, %cst_204 [1] : vector<18x18xf32> to vector<18xf32>
    %598 = vector.shape_cast %597 : vector<18xf32> to vector<18x1xf32>
    %599 = tpu.reciprocal %598 {approx = true} : vector<18x1xf32> -> vector<18x1xf32>
    %600 = vector.broadcast %599 : vector<18x1xf32> to vector<18x18xf32>
    %601 = arith.mulf %596, %600 : vector<18x18xf32>
    %602 = arith.truncf %601 : vector<18x18xf32> to vector<18x18xbf16>
    %cst_205 = arith.constant dense<0.000000e+00> : vector<18x8xf32>
    %603 = tpu.matmul %602, %589, %cst_205 {dimension_numbers = #tpu.dot_dimension_numbers<[1], [0], [0], [1], [0, 0, 1, 1], [], []>} : vector<18x18xbf16>, vector<18x8xbf16>, vector<18x8xf32> -> vector<18x8xf32>
    %c0_206 = arith.constant 0 : index
    %c0_207 = arith.constant 0 : index
    %604 = vector.load %arg9[%c0_206, %c0_207] : memref<18x32xf32, #tpu.memory_space<vmem>>, vector<18x8xf32>
    tpu.vector_store %arg9[%c0_206, %c0_207], %603 {strides = array<i32>} : memref<18x32xf32, #tpu.memory_space<vmem>>, vector<18x8xf32>,
    %605 = vector.extract_strided_slice %583 {offsets = [0, 8], sizes = [18, 8], strides = [1, 1]} : vector<18x96xf32> to vector<18x8xf32>
    %606 = arith.truncf %605 : vector<18x8xf32> to vector<18x8xbf16>
    %607 = vector.extract_strided_slice %583 {offsets = [0, 40], sizes = [18, 8], strides = [1, 1]} : vector<18x96xf32> to vector<18x8xf32>
    %608 = arith.truncf %607 : vector<18x8xf32> to vector<18x8xbf16>
    %609 = vector.extract_strided_slice %583 {offsets = [0, 72], sizes = [18, 8], strides = [1, 1]} : vector<18x96xf32> to vector<18x8xf32>
    %610 = arith.truncf %609 : vector<18x8xf32> to vector<18x8xbf16>
    "tpu.trace_start"() <{level = 10 : i32, message = "nd,md->nm"}> : () -> ()
    %cst_208 = arith.constant dense<0.000000e+00> : vector<18x18xf32>
    %611 = tpu.matmul %606, %608, %cst_208 {dimension_numbers = #tpu.dot_dimension_numbers<[1], [1], [0], [0], [0, 0, 1, 0], [], []>} : vector<18x8xbf16>, vector<18x8xbf16>, vector<18x18xf32> -> vector<18x18xf32>
    "tpu.trace_stop"() : () -> ()
    %612 = arith.addf %611, %1 : vector<18x18xf32>
    %cst_209 = arith.constant dense<0xFF800000> : vector<18xf32>
    %613 = vector.multi_reduction <maximumf>, %612, %cst_209 [1] : vector<18x18xf32> to vector<18xf32>
    %614 = vector.shape_cast %613 : vector<18xf32> to vector<18x1xf32>
    %615 = vector.broadcast %614 : vector<18x1xf32> to vector<18x18xf32>
    %616 = arith.subf %612, %615 : vector<18x18xf32>
    %617 = math.exp %616 : vector<18x18xf32>
    %cst_210 = arith.constant dense<0.000000e+00> : vector<18xf32>
    %618 = vector.multi_reduction <add>, %617, %cst_210 [1] : vector<18x18xf32> to vector<18xf32>
    %619 = vector.shape_cast %618 : vector<18xf32> to vector<18x1xf32>
    %620 = tpu.reciprocal %619 {approx = true} : vector<18x1xf32> -> vector<18x1xf32>
    %621 = vector.broadcast %620 : vector<18x1xf32> to vector<18x18xf32>
    %622 = arith.mulf %617, %621 : vector<18x18xf32>
    %623 = arith.truncf %622 : vector<18x18xf32> to vector<18x18xbf16>
    %cst_211 = arith.constant dense<0.000000e+00> : vector<18x8xf32>
    %624 = tpu.matmul %623, %610, %cst_211 {dimension_numbers = #tpu.dot_dimension_numbers<[1], [0], [0], [1], [0, 0, 1, 1], [], []>} : vector<18x18xbf16>, vector<18x8xbf16>, vector<18x8xf32> -> vector<18x8xf32>
    %c0_212 = arith.constant 0 : index
    %c8_213 = arith.constant 8 : index
    %625 = vector.load %arg9[%c0_212, %c8_213] : memref<18x32xf32, #tpu.memory_space<vmem>>, vector<18x8xf32>
    tpu.vector_store %arg9[%c0_212, %c8_213], %624 {strides = array<i32>} : memref<18x32xf32, #tpu.memory_space<vmem>>, vector<18x8xf32>,
    %626 = vector.extract_strided_slice %583 {offsets = [0, 16], sizes = [18, 8], strides = [1, 1]} : vector<18x96xf32> to vector<18x8xf32>
    %627 = arith.truncf %626 : vector<18x8xf32> to vector<18x8xbf16>
    %628 = vector.extract_strided_slice %583 {offsets = [0, 48], sizes = [18, 8], strides = [1, 1]} : vector<18x96xf32> to vector<18x8xf32>
    %629 = arith.truncf %628 : vector<18x8xf32> to vector<18x8xbf16>
    %630 = vector.extract_strided_slice %583 {offsets = [0, 80], sizes = [18, 8], strides = [1, 1]} : vector<18x96xf32> to vector<18x8xf32>
    %631 = arith.truncf %630 : vector<18x8xf32> to vector<18x8xbf16>
    "tpu.trace_start"() <{level = 10 : i32, message = "nd,md->nm"}> : () -> ()
    %cst_214 = arith.constant dense<0.000000e+00> : vector<18x18xf32>
    %632 = tpu.matmul %627, %629, %cst_214 {dimension_numbers = #tpu.dot_dimension_numbers<[1], [1], [0], [0], [0, 0, 1, 0], [], []>} : vector<18x8xbf16>, vector<18x8xbf16>, vector<18x18xf32> -> vector<18x18xf32>
    "tpu.trace_stop"() : () -> ()
    %633 = arith.addf %632, %1 : vector<18x18xf32>
    %cst_215 = arith.constant dense<0xFF800000> : vector<18xf32>
    %634 = vector.multi_reduction <maximumf>, %633, %cst_215 [1] : vector<18x18xf32> to vector<18xf32>
    %635 = vector.shape_cast %634 : vector<18xf32> to vector<18x1xf32>
    %636 = vector.broadcast %635 : vector<18x1xf32> to vector<18x18xf32>
    %637 = arith.subf %633, %636 : vector<18x18xf32>
    %638 = math.exp %637 : vector<18x18xf32>
    %cst_216 = arith.constant dense<0.000000e+00> : vector<18xf32>
    %639 = vector.multi_reduction <add>, %638, %cst_216 [1] : vector<18x18xf32> to vector<18xf32>
    %640 = vector.shape_cast %639 : vector<18xf32> to vector<18x1xf32>
    %641 = tpu.reciprocal %640 {approx = true} : vector<18x1xf32> -> vector<18x1xf32>
    %642 = vector.broadcast %641 : vector<18x1xf32> to vector<18x18xf32>
    %643 = arith.mulf %638, %642 : vector<18x18xf32>
    %644 = arith.truncf %643 : vector<18x18xf32> to vector<18x18xbf16>
    %cst_217 = arith.constant dense<0.000000e+00> : vector<18x8xf32>
    %645 = tpu.matmul %644, %631, %cst_217 {dimension_numbers = #tpu.dot_dimension_numbers<[1], [0], [0], [1], [0, 0, 1, 1], [], []>} : vector<18x18xbf16>, vector<18x8xbf16>, vector<18x8xf32> -> vector<18x8xf32>
    %c0_218 = arith.constant 0 : index
    %c16_219 = arith.constant 16 : index
    %646 = vector.load %arg9[%c0_218, %c16_219] : memref<18x32xf32, #tpu.memory_space<vmem>>, vector<18x8xf32>
    tpu.vector_store %arg9[%c0_218, %c16_219], %645 {strides = array<i32>} : memref<18x32xf32, #tpu.memory_space<vmem>>, vector<18x8xf32>,
    %647 = vector.extract_strided_slice %583 {offsets = [0, 24], sizes = [18, 8], strides = [1, 1]} : vector<18x96xf32> to vector<18x8xf32>
    %648 = arith.truncf %647 : vector<18x8xf32> to vector<18x8xbf16>
    %649 = vector.extract_strided_slice %583 {offsets = [0, 56], sizes = [18, 8], strides = [1, 1]} : vector<18x96xf32> to vector<18x8xf32>
    %650 = arith.truncf %649 : vector<18x8xf32> to vector<18x8xbf16>
    %651 = vector.extract_strided_slice %583 {offsets = [0, 88], sizes = [18, 8], strides = [1, 1]} : vector<18x96xf32> to vector<18x8xf32>
    %652 = arith.truncf %651 : vector<18x8xf32> to vector<18x8xbf16>
    "tpu.trace_start"() <{level = 10 : i32, message = "nd,md->nm"}> : () -> ()
    %cst_220 = arith.constant dense<0.000000e+00> : vector<18x18xf32>
    %653 = tpu.matmul %648, %650, %cst_220 {dimension_numbers = #tpu.dot_dimension_numbers<[1], [1], [0], [0], [0, 0, 1, 0], [], []>} : vector<18x8xbf16>, vector<18x8xbf16>, vector<18x18xf32> -> vector<18x18xf32>
    "tpu.trace_stop"() : () -> ()
    %654 = arith.addf %653, %1 : vector<18x18xf32>
    %cst_221 = arith.constant dense<0xFF800000> : vector<18xf32>
    %655 = vector.multi_reduction <maximumf>, %654, %cst_221 [1] : vector<18x18xf32> to vector<18xf32>
    %656 = vector.shape_cast %655 : vector<18xf32> to vector<18x1xf32>
    %657 = vector.broadcast %656 : vector<18x1xf32> to vector<18x18xf32>
    %658 = arith.subf %654, %657 : vector<18x18xf32>
    %659 = math.exp %658 : vector<18x18xf32>
    %cst_222 = arith.constant dense<0.000000e+00> : vector<18xf32>
    %660 = vector.multi_reduction <add>, %659, %cst_222 [1] : vector<18x18xf32> to vector<18xf32>
    %661 = vector.shape_cast %660 : vector<18xf32> to vector<18x1xf32>
    %662 = tpu.reciprocal %661 {approx = true} : vector<18x1xf32> -> vector<18x1xf32>
    %663 = vector.broadcast %662 : vector<18x1xf32> to vector<18x18xf32>
    %664 = arith.mulf %659, %663 : vector<18x18xf32>
    %665 = arith.truncf %664 : vector<18x18xf32> to vector<18x18xbf16>
    %cst_223 = arith.constant dense<0.000000e+00> : vector<18x8xf32>
    %666 = tpu.matmul %665, %652, %cst_223 {dimension_numbers = #tpu.dot_dimension_numbers<[1], [0], [0], [1], [0, 0, 1, 1], [], []>} : vector<18x18xbf16>, vector<18x8xbf16>, vector<18x8xf32> -> vector<18x8xf32>
    %c0_224 = arith.constant 0 : index
    %c24_225 = arith.constant 24 : index
    %667 = vector.load %arg9[%c0_224, %c24_225] : memref<18x32xf32, #tpu.memory_space<vmem>>, vector<18x8xf32>
    tpu.vector_store %arg9[%c0_224, %c24_225], %666 {strides = array<i32>} : memref<18x32xf32, #tpu.memory_space<vmem>>, vector<18x8xf32>,
    %c0_226 = arith.constant 0 : index
    %c0_227 = arith.constant 0 : index
    %668 = vector.load %arg9[%c0_226, %c0_227] : memref<18x32xf32, #tpu.memory_space<vmem>>, vector<18x32xf32>
    %669 = arith.truncf %668 : vector<18x32xf32> to vector<18x32xbf16>
    %670 = vector.extract_strided_slice %554 {offsets = [0, 96], sizes = [32, 32], strides = [1, 1]} : vector<32x192xbf16> to vector<32x32xbf16>
    %cst_228 = arith.constant dense<0.000000e+00> : vector<18x32xf32>
    %671 = tpu.matmul %669, %670, %cst_228 {dimension_numbers = #tpu.dot_dimension_numbers<[1], [0], [0], [1], [0, 0, 1, 1], [], []>} : vector<18x32xbf16>, vector<32x32xbf16>, vector<18x32xf32> -> vector<18x32xf32>
    %672 = vector.extract_strided_slice %556 {offsets = [4, 0], sizes = [1, 32], strides = [1, 1]} : vector<6x32xf32> to vector<1x32xf32>
    %673 = vector.broadcast %672 : vector<1x32xf32> to vector<18x32xf32>
    %674 = arith.addf %671, %673 : vector<18x32xf32>
    %675 = arith.addf %674, %552 : vector<18x32xf32>
    %676 = vector.extract_strided_slice %556 {offsets = [2, 0], sizes = [1, 32], strides = [1, 1]} : vector<6x32xf32> to vector<1x32xf32>
    %677 = vector.extract_strided_slice %556 {offsets = [3, 0], sizes = [1, 32], strides = [1, 1]} : vector<6x32xf32> to vector<1x32xf32>
    %cst_229 = arith.constant dense<0.000000e+00> : vector<18xf32>
    %678 = vector.multi_reduction <add>, %675, %cst_229 [1] : vector<18x32xf32> to vector<18xf32>
    %679 = vector.shape_cast %678 : vector<18xf32> to vector<18x1xf32>
    %cst_230 = arith.constant 3.200000e+01 : f32
    %680 = vector.broadcast %cst_230 : f32 to vector<18x1xf32>
    %681 = arith.divf %679, %680 : vector<18x1xf32>
    %682 = vector.broadcast %681 : vector<18x1xf32> to vector<18x32xf32>
    %683 = arith.subf %675, %682 : vector<18x32xf32>
    %684 = arith.mulf %683, %683 : vector<18x32xf32>
    %cst_231 = arith.constant dense<0.000000e+00> : vector<18xf32>
    %685 = vector.multi_reduction <add>, %684, %cst_231 [1] : vector<18x32xf32> to vector<18xf32>
    %686 = vector.shape_cast %685 : vector<18xf32> to vector<18x1xf32>
    %cst_232 = arith.constant 3.200000e+01 : f32
    %687 = vector.broadcast %cst_232 : f32 to vector<18x1xf32>
    %688 = arith.divf %686, %687 : vector<18x1xf32>
    %689 = vector.broadcast %681 : vector<18x1xf32> to vector<18x32xf32>
    %690 = arith.subf %675, %689 : vector<18x32xf32>
    %cst_233 = arith.constant 9.99999974E-6 : f32
    %691 = vector.broadcast %cst_233 : f32 to vector<18x1xf32>
    %692 = arith.addf %688, %691 : vector<18x1xf32>
    %693 = math.rsqrt %692 : vector<18x1xf32>
    %694 = vector.broadcast %693 : vector<18x1xf32> to vector<18x32xf32>
    %695 = arith.mulf %690, %694 : vector<18x32xf32>
    %696 = vector.broadcast %676 : vector<1x32xf32> to vector<18x32xf32>
    %697 = arith.mulf %695, %696 : vector<18x32xf32>
    %698 = vector.broadcast %677 : vector<1x32xf32> to vector<18x32xf32>
    %699 = arith.addf %697, %698 : vector<18x32xf32>
    %700 = arith.truncf %699 : vector<18x32xf32> to vector<18x32xbf16>
    %701 = vector.extract_strided_slice %554 {offsets = [0, 128], sizes = [32, 64], strides = [1, 1]} : vector<32x192xbf16> to vector<32x64xbf16>
    %cst_234 = arith.constant dense<0.000000e+00> : vector<18x64xf32>
    %702 = tpu.matmul %700, %701, %cst_234 {dimension_numbers = #tpu.dot_dimension_numbers<[1], [0], [0], [1], [0, 0, 1, 1], [], []>} : vector<18x32xbf16>, vector<32x64xbf16>, vector<18x64xf32> -> vector<18x64xf32>
    %c3_235 = arith.constant 3 : index
    %c0_236 = arith.constant 0 : index
    %c0_237 = arith.constant 0 : index
    %703 = vector.load %arg5[%c3_235, %c0_236, %c0_237] : memref<4x1x64xf32, #tpu.memory_space<vmem>>, vector<1x1x64xf32>
    %704 = vector.shape_cast %703 : vector<1x1x64xf32> to vector<1x64xf32>
    %705 = vector.broadcast %704 : vector<1x64xf32> to vector<18x64xf32>
    %706 = arith.addf %702, %705 : vector<18x64xf32>
    %cst_238 = arith.constant 5.000000e-01 : f32
    %707 = vector.broadcast %cst_238 : f32 to vector<18x64xf32>
    %708 = arith.mulf %707, %706 : vector<18x64xf32>
    %cst_239 = arith.constant 4.471500e-02 : f32
    %709 = vector.broadcast %cst_239 : f32 to vector<18x64xf32>
    %710 = arith.mulf %709, %706 : vector<18x64xf32>
    %711 = arith.mulf %710, %706 : vector<18x64xf32>
    %712 = arith.mulf %711, %706 : vector<18x64xf32>
    %713 = arith.addf %706, %712 : vector<18x64xf32>
    %cst_240 = arith.constant 0.797884583 : f32
    %714 = vector.broadcast %cst_240 : f32 to vector<18x64xf32>
    %715 = arith.mulf %714, %713 : vector<18x64xf32>
    %716 = math.tanh %715 : vector<18x64xf32>
    %cst_241 = arith.constant 1.000000e+00 : f32
    %717 = vector.broadcast %cst_241 : f32 to vector<18x64xf32>
    %718 = arith.addf %717, %716 : vector<18x64xf32>
    %719 = arith.mulf %708, %718 : vector<18x64xf32>
    %720 = arith.truncf %719 : vector<18x64xf32> to vector<18x64xbf16>
    %c3_242 = arith.constant 3 : index
    %c0_243 = arith.constant 0 : index
    %c0_244 = arith.constant 0 : index
    %721 = vector.load %arg3[%c3_242, %c0_243, %c0_244] : memref<4x64x32xbf16, #tpu.memory_space<vmem>>, vector<1x64x32xbf16>
    %722 = vector.shape_cast %721 : vector<1x64x32xbf16> to vector<64x32xbf16>
    %cst_245 = arith.constant dense<0.000000e+00> : vector<18x32xf32>
    %723 = tpu.matmul %720, %722, %cst_245 {dimension_numbers = #tpu.dot_dimension_numbers<[1], [0], [0], [1], [0, 0, 1, 1], [], []>} : vector<18x64xbf16>, vector<64x32xbf16>, vector<18x32xf32> -> vector<18x32xf32>
    %724 = vector.extract_strided_slice %556 {offsets = [5, 0], sizes = [1, 32], strides = [1, 1]} : vector<6x32xf32> to vector<1x32xf32>
    %725 = vector.broadcast %724 : vector<1x32xf32> to vector<18x32xf32>
    %726 = arith.addf %723, %725 : vector<18x32xf32>
    %727 = arith.addf %726, %675 : vector<18x32xf32>
    %c0_246 = arith.constant 0 : index
    %c0_247 = arith.constant 0 : index
    %728 = vector.load %arg8[%c0_246, %c0_247] : memref<18x32xf32, #tpu.memory_space<vmem>>, vector<18x32xf32>
    tpu.vector_store %arg8[%c0_246, %c0_247], %727 {strides = array<i32>} : memref<18x32xf32, #tpu.memory_space<vmem>>, vector<18x32xf32>,
    return
  }
}

</mosaic_0001>

<bundles_post_ra>
// kernel: tpu_custom_call.1
= control target key start
LH: loop header
LB: loop body
LE: loop exit
PB: predicated region body
PF: predicated region fallthrough
CT: control target
= control target key end

     0   :  { %vm42_vm0 = vcmask 261120   ;;  %vm49_vm1 = vcmask 254976   ;;  %s5737_s0 = inlined_call_operand.vmem [shape: f32[18,32], index: 0, kind: input, shape index: {}]   ;;  %s5738_s1 = inlined_call_operand.vmem [shape: f32[18,18], index: 1, kind: input, shape index: {}]   ;;  %s5739_s2 = inlined_call_operand.vmem [shape: bf16[4,32,192], index: 2, kind: input, shape index: {}]   ;;  %s5740_s3 = inlined_call_operand.vmem [shape: bf16[4,64,32], index: 3, kind: input, shape index: {}]   ;;  %s5741_s4 = inlined_call_operand.vmem [shape: f32[4,6,32], index: 4, kind: input, shape index: {}]   ;;  %s5742_s5 = inlined_call_operand.vmem [shape: f32[4,1,64], index: 5, kind: input, shape index: {}]   ;;  %s5743_s6 = inlined_call_operand.vmem [shape: bf16[2,2,18,18], index: 6, kind: input, shape index: {}]   ;;  %s5744_s7 = inlined_call_operand.vmem [shape: f32[2,18,1], index: 7, kind: input, shape index: {}]   ;;  %s5745_s8 = inlined_call_operand.hbm [shape: f32[18,32], index: 8, kind: output, shape index: {}]  }
   0x1   :  { %v4336_v0 = vld [vmem:[%s5737_s0] sm:$0xff]  ;;  %v4341_v1 = vld [vmem:[%s5737_s0 + $0x10] sm:$0x3] }
   0x2   :  { %v43_v2 = vsel %vm42_vm0, %v4336_v0, 0.0  ;;  %v50_v3 = vsel %vm49_vm1, %v4341_v1, 0.0 }
   0x3   :  { %44 = vadd.xlane.f32.xlu0 %v43_v2  ;;  %51 = vadd.xlane.f32.xlu1 %v50_v3 }
   0x4   :  { %13 = vsyncpa [#allocation4], 0  ;;  %v4350_v4 = vld [vmem:[%s5737_s0 + $0x8] sm:$0xff]  ;;  %v4269_v6 = vmov 32.0   ;;  %v3603_v28 = vld [vmem:[%s5739_s2 + $0x10] sm:$0xf] }
   0x5   :  { %v46_v5 = vsel %vm42_vm0, %v4350_v4, 0.0  ;;  %3961 = vrcp.f32 %v4269_v6  ;;  %v3902_v29 = vld [vmem:[%s5739_s2 + $0x14] sm:$0xf0]  ;;  %v3599_v33 = vld [vmem:[%s5739_s2] sm:$0xf]  ;;  %s4270_s21 = smov 96  }
   0x6   :  { %v4375_v30 = vor.u32 %v3902_v29, %v3603_v28  ;;  %v3900_v34 = vld [vmem:[%s5739_s2 + $0x4] sm:$0xf0]  ;;  %v4393_v54 = vld [vmem:[%s5741_s4] sm:$0x3f]  ;;  %s4271_s22 = smov 88   ;;  %s5764_s23 = smov 64  }
   0x7   :  { %v4385_v35 = vor.u32 %v3900_v34, %v3599_v33  ;;  %v117_v58 = vperm.slane %v4393_v54, 0  ;;  %v121_v3 = vperm.slane %v4393_v54, 1  ;;  %s4273_s24 = smov 120   ;;  %vm171_vm12 = vcmask 64512   ;;  %v4427_v34 = vld [vmem:[%s5738_s1] sm:$0xff]  ;;  %s4274_s9 = smov 80  }
   0x8   :  { %151 = vmatpush.bf16.msra.mxu0 %v4375_v30  ;;  %vm250_vm13 = vcmask 1040384   ;;  %vm202_vm14 = vcmask 146432   ;;  %vm209_vm15 = vcmask 140288   ;;  %s4275_s10 = smov 72   ;;  %s4276_s11 = smov 104  }
   0x9   :  { %s4277_s12 = smov 112   ;;  %s5762_s13 = smov 56  }
   0xa   :  { %s5760_s14 = smov 48   ;;  %s5758_s15 = smov 40  }
   0xb   :  { %47 = vadd.xlane.f32.xlu0 %v46_v5  ;;  %v3962_v7 = vpop.eup %3961  ;;  %s5753_s16 = smov 8   ;;  %s5756_s17 = smov 32  }
   0xc   :  { %v54_v8 = vmul.f32 32.0, %v3962_v7  ;;  %vm58_vm2 = vweird.f32 %v3962_v7  ;;  %152 = vmatpush.bf16.msra.mxu0 %v4385_v35  ;;  %s5746_s18 = smov 24   ;;  %s5751_s19 = smov 16  }
   0xd   :  { %s5766_s29 = smov 8   ;;  %s5767_s30 = smov 16  }
   0xe   :  { %v55_v9 = vsub.f32 1.0, %v54_v8  ;;  %s5774_s20 = smov 48   ;;  %s5775_s25 = smov 40  }
   0xf   :  { %s5776_s26 = smov 32  }
  0x10   :  { %v56_v10 = vmul.f32 %v3962_v7, %v55_v9 }
  0x12   :  { %v57_v11 = vadd.f32 %v3962_v7, %v56_v10 }
  0x14   :  { %v4354_v12 = vsel %vm58_vm2, %v3962_v7, %v57_v11  ;;  %vm274_vm2 = vcmask 58368  }
  0x76   :  { %v45_v13 = vpop.xlane.xlu0 %44  ;;  %v52_v17 = vpop.xlane.xlu1 %51 }
  0x77   :  { %v60_v14 = vmul.f32 %v4354_v12, %v45_v13  ;;  %v62_v21 = vmul.f32 %v4354_v12, %v52_v17 }
  0x79   :  { %v63_v15 = vsub.f32 %v4336_v0, %v60_v14  ;;  %v4363_v23 = vsub.f32 %v4341_v1, %v62_v21 }
  0x7b   :  { %v66_v16 = vmul.f32 %v63_v15, %v63_v15  ;;  %v68_v26 = vmul.f32 %v4363_v23, %v4363_v23 }
  0x7d   :  { %v69_v18 = vsel %vm42_vm0, %v66_v16, 0.0  ;;  %v75_v27 = vsel %vm49_vm1, %v68_v26, 0.0 }
  0x7e   :  { %70 = vadd.xlane.f32.xlu1 %v69_v18  ;;  %v48_v19 = vpop.xlane.xlu0 %47 }
  0x7f   :  { %v61_v20 = vmul.f32 %v4354_v12, %v48_v19 }
  0x81   :  { %v64_v22 = vsub.f32 %v4350_v4, %v61_v20 }
  0x83   :  { %v67_v24 = vmul.f32 %v64_v22, %v64_v22 }
  0x85   :  { %v72_v25 = vsel %vm42_vm0, %v67_v24, 0.0 }
  0x86   :  { %73 = vadd.xlane.f32.xlu2 %v72_v25 }
  0x8e   :  { %76 = vadd.xlane.f32.xlu2 %v75_v27 }
  0xf1   :  { %v71_v31 = vpop.xlane.xlu1 %70 }
  0xf2   :  { %v78_v32 = vmul.f32 %v71_v31, %v4354_v12 }
  0xf4   :  { %v81_v36 = vadd.f32 1e-05, %v78_v32 }
  0xf6   :  { %3963 = vrsqrt.f32 %v81_v36  ;;  %vm90_vm4 = vweird.f32 %v81_v36 }
  0xf9   :  { %v74_v37 = vpop.xlane.xlu2 %73 }
  0xfa   :  { %v79_v38 = vmul.f32 %v74_v37, %v4354_v12 }
  0xfc   :  { %v3964_v39 = vpop.eup %3963  ;;  %v82_v40 = vadd.f32 1e-05, %v79_v38 }
  0xfd   :  { %v85_v41 = vmul.f32 %v3964_v39, %v81_v36  ;;  %vm91_vm3 = vweird.f32 %v3964_v39 }
  0xfe   :  { %3965 = vrsqrt.f32 %v82_v40  ;;  %vm92_vm5 = vmor %vm90_vm4, %vm91_vm3  ;;  %vm100_vm7 = vweird.f32 %v82_v40  ;;  %vm393_vm3 = vcmask 130112   ;;  %vm515_vm4 = vcmask 195712  }
  0xff   :  { %v86_v42 = vmul.f32 %v3964_v39, %v85_v41 }
 0x101   :  { %v87_v43 = vmul.f32 0.5, %v86_v42  ;;  %v77_v44 = vpop.xlane.xlu2 %76 }
 0x102   :  { %v80_v45 = vmul.f32 %v77_v44, %v4354_v12 }
 0x103   :  { %v88_v46 = vsub.f32 1.5, %v87_v43 }
 0x104   :  { %v3966_v47 = vpop.eup %3965  ;;  %v83_v48 = vadd.f32 1e-05, %v80_v45  ;;  %v4443_v45 = vld [vmem:[%s5738_s1 + $0x10] sm:$0x3] }
 0x105   :  { %v89_v49 = vmul.f32 %v3964_v39, %v88_v46  ;;  %v95_v50 = vmul.f32 %v3966_v47, %v82_v40  ;;  %vm101_vm6 = vweird.f32 %v3966_v47 }
 0x106   :  { %3967 = vrsqrt.f32 %v83_v48  ;;  %vm102_vm8 = vmor %vm100_vm7, %vm101_vm6  ;;  %vm110_vm9 = vweird.f32 %v83_v48  ;;  %vm5750_vm6 = vcmask 123968   ;;  %vm5749_vm7 = vcmask 189568  }
 0x107   :  { %v96_v51 = vmul.f32 %v3966_v47, %v95_v50  ;;  %v93_v52 = vsel %vm92_vm5, %v3964_v39, %v89_v49  ;;  %v4434_v39 = vld [vmem:[%s5738_s1 + $0x8] sm:$0xff]  ;;  %vm637_vm5 = vcmask 261312  }
 0x108   :  { %v114_v57 = vmul.f32 %v93_v52, %v63_v15 }
 0x109   :  { %v97_v53 = vmul.f32 0.5, %v96_v51 }
 0x10a   :  { %v118_v2 = vmul.f32 %v117_v58, %v114_v57 }
 0x10b   :  { %v98_v55 = vsub.f32 1.5, %v97_v53 }
 0x10c   :  { %v3968_v56 = vpop.eup %3967  ;;  %v122_v8 = vadd.f32 %v121_v3, %v118_v2 }
 0x10d   :  { %v99_v59 = vmul.f32 %v3966_v47, %v98_v55  ;;  %v105_v60 = vmul.f32 %v3968_v56, %v83_v48  ;;  %vm111_vm10 = vweird.f32 %v3968_v56 }
 0x10e   :  { %vm112_vm11 = vmor %vm110_vm9, %vm111_vm10 }
 0x10f   :  { %v103_v61 = vsel %vm102_vm8, %v3966_v47, %v99_v59  ;;  %v106_v62 = vmul.f32 %v3968_v56, %v105_v60  ;;  %vm5748_vm8 = vcmask 255168  }
 0x110   :  { %v115_v63 = vmul.f32 %v103_v61, %v64_v22 }
 0x111   :  { %v107_v5 = vmul.f32 0.5, %v106_v62 }
 0x112   :  { %v119_v6 = vmul.f32 %v117_v58, %v115_v63 }
 0x113   :  { %v108_v7 = vsub.f32 1.5, %v107_v5 }
 0x114   :  { %v123_v9 = vadd.f32 %v121_v3, %v119_v6 }
 0x115   :  { %v109_v10 = vmul.f32 %v3968_v56, %v108_v7 }
 0x116   :  { %v125_v11 = vpack.c.bf16 %v123_v9, %v122_v8 }
 0x117   :  { %v113_v13 = vsel %vm112_vm11, %v3968_v56, %v109_v10 }
 0x118   :  { %3605 = vmatmul.msk.bf16.vlgmr.msra.gmra.mxu0 %vm42_vm0, %v125_v11  ;;  %v116_v14 = vmul.f32 %v113_v13, %v4363_v23 }
 0x11a   :  { %v120_v15 = vmul.f32 %v117_v58, %v116_v14 }
 0x11c   :  { %v124_v16 = vadd.f32 %v121_v3, %v120_v15 }
 0x11e   :  { %v126_v17 = vpack.c.bf16 %v124_v16, %v124_v16 }
 0x128   :  { %3606 = vmatmul.msk.bf16.gmra.mxu0 %vm42_vm0, %v126_v17 }
 0x195   :  { %v154_v18 = vpop.f32.mrf.mxu0 }
 0x19d   :  { %v156_v19 = vpop.f32.mrf.mxu0 }
 0x19e   :  { %v4400_v20 = vpack.c.bf16 %v156_v19, %v154_v18 }
 0x1a0   :  { %167 = vrot.lane.b32.xlu1 %v4400_v20, %s4270_s21 }
 0x1a5   :  { %v159_v21 = vpop.f32.mrf.mxu0 }
 0x1a6   :  { %v4404_v22 = vpack.c.bf16 %v159_v21, %v159_v21 }
 0x1a8   :  { %169 = vrot.lane.b32.xlu0 %v4404_v22, %s4270_s21 }
 0x1ad   :  { %v161_v23 = vpop.f32.mrf.mxu0 }
 0x1b0   :  { %282 = vrot.lane.b32.xlu0 %v4404_v22, %s4271_s22 }
 0x1b8   :  { %241 = vrot.lane.b32.xlu0 %v4404_v22, %s5764_s23 }
 0x1c0   :  { %239 = vrot.lane.b32.xlu0 %v4400_v20, %s5764_s23 }
 0x1c8   :  { %276 = vrot.lane.b32.xlu0 %v4400_v20, %s4273_s24 }
 0x212   :  { %v168_v26 = vpop.permute.xlu1 %167 }
 0x213   :  { %v179_v28 = vsel %vm171_vm12, %v168_v26, 0 }
 0x21a   :  { %v170_v24 = vpop.permute.xlu0 %169 }
 0x21b   :  { %v182_v25 = vsel %vm171_vm12, %v170_v24, 0 }
 0x21c   :  { %190 = vmatpush.bf16.xpose.msra.mxu1 %v182_v25 }
 0x222   :  { %v283_v27 = vpop.permute.xlu0 %282 }
 0x223   :  { %v294_v29 = vsel %vm171_vm12, %v283_v27, 0 }
 0x224   :  { %191 = vmatpush.bf16.xpose.msra.mxu1 %v179_v28  ;;  %302 = vmatpush.bf16.xpose.msra.mxu3 %v294_v29 }
 0x22a   :  { %v242_v31 = vpop.permute.xlu0 %241 }
 0x22b   :  { %3607 = vmatmul.msk.bf16.vlgmr.msra.gmra.mxu1 %vm171_vm12, %v4400_v20  ;;  %v252_v32 = vsel %vm250_vm13, %v242_v31, 0 }
 0x22c   :  { %260 = vmatpush.bf16.msra.mxu2 %v252_v32 }
 0x232   :  { %v240_v33 = vpop.permute.xlu0 %239 }
 0x233   :  { %261 = vmatpush.bf16.msra.mxu2 %v240_v33 }
 0x23a   :  { %v277_v61 = vpop.permute.xlu0 %276 }
 0x23b   :  { %3608 = vmatmul.msk.bf16.gmra.mxu1 %vm171_vm12, %v4404_v22 }
 0x2a8   :  { %v193_v36 = vpop.f32.mrf.mxu1 }
 0x2a9   :  { %v194_v37 = vadd.f32 %v193_v36, %v4427_v34 }
 0x2ab   :  { %v203_v38 = vsel %vm202_vm14, %v194_v37, -inf }
 0x2ac   :  { %204 = vmax.xlane.f32.xlu2 %v203_v38 }
 0x2b0   :  { %v195_v40 = vpop.f32.mrf.mxu1 }
 0x2b1   :  { %v196_v41 = vadd.f32 %v195_v40, %v4434_v39 }
 0x2b3   :  { %v206_v42 = vsel %vm202_vm14, %v196_v41, -inf }
 0x2b4   :  { %207 = vmax.xlane.f32.xlu2 %v206_v42 }
 0x2b8   :  { %v198_v43 = vpop.f32.mrf.mxu1 }
 0x2b9   :  { %v199_v46 = vadd.f32 %v198_v43, %v4443_v45 }
 0x2bb   :  { %v210_v47 = vsel %vm209_vm15, %v199_v46, -inf }
 0x2c0   :  { %v200_v44 = vpop.f32.mrf.mxu1 }
 0x2cc   :  { %280 = vrot.lane.b32.xlu2 %v4400_v20, %s4271_s22 }
 0x2f5   :  { %211 = vmax.xlane.f32.xlu2 %v210_v47 }
 0x31f   :  { %v205_v48 = vpop.xlane.xlu2 %204 }
 0x320   :  { %v213_v49 = vsub.f32 %v194_v37, %v205_v48 }
 0x322   :  { %v216_v50 = vmul.f32 1.442695, %v213_v49 }
 0x324   :  { %3969 = vpow2.f32 %v216_v50 }
 0x327   :  { %v208_v51 = vpop.xlane.xlu2 %207 }
 0x328   :  { %v214_v52 = vsub.f32 %v196_v41, %v208_v51 }
 0x32a   :  { %v3970_v53 = vpop.eup %3969  ;;  %v218_v55 = vmul.f32 1.442695, %v214_v52 }
 0x32b   :  { %v222_v56 = vsel %vm202_vm14, %v3970_v53, 0.0 }
 0x32c   :  { %3971 = vpow2.f32 %v218_v55  ;;  %223 = vadd.xlane.f32.xlu2 %v222_v56 }
 0x32f   :  { %v281_v57 = vpop.permute.xlu2 %280 }
 0x330   :  { %v291_v58 = vsel %vm171_vm12, %v281_v57, 0 }
 0x331   :  { %303 = vmatpush.bf16.xpose.msra.mxu3 %v291_v58 }
 0x332   :  { %v3972_v59 = vpop.eup %3971 }
 0x333   :  { %v225_v60 = vsel %vm202_vm14, %v3972_v59, 0.0 }
 0x334   :  { %226 = vadd.xlane.f32.xlu1 %v225_v60 }
 0x338   :  { %3611 = vmatmul.msk.bf16.vlgmr.msra.gmra.mxu3 %vm171_vm12, %v277_v61 }
 0x344   :  { %404 = vrot.lane.b32.xlu2 %v4404_v22, %s4274_s9 }
 0x34c   :  { %278 = vrot.lane.b32.xlu2 %v4404_v22, %s4273_s24 }
 0x34d   :  { %526 = vrot.lane.b32.xlu1 %v4404_v22, %s4275_s10 }
 0x354   :  { %402 = vrot.lane.b32.xlu2 %v4400_v20, %s4274_s9 }
 0x355   :  { %520 = vrot.lane.b32.xlu1 %v4400_v20, %s4276_s11 }
 0x35c   :  { %524 = vrot.lane.b32.xlu2 %v4400_v20, %s4275_s10 }
 0x364   :  { %398 = vrot.lane.b32.xlu2 %v4400_v20, %s4277_s12 }
 0x368   :  { %v212_v62 = vpop.xlane.xlu2 %211 }
 0x369   :  { %v215_v63 = vsub.f32 %v199_v46, %v212_v62 }
 0x36b   :  { %v220_v2 = vmul.f32 1.442695, %v215_v63 }
 0x36c   :  { %522 = vrot.lane.b32.xlu2 %v4404_v22, %s4276_s11 }
 0x36d   :  { %3973 = vpow2.f32 %v220_v2 }
 0x373   :  { %v3974_v3 = vpop.eup %3973 }
 0x374   :  { %v228_v5 = vsel %vm209_vm15, %v3974_v3, 0.0 }
 0x375   :  { %229 = vadd.xlane.f32.xlu0 %v228_v5 }
 0x389   :  { %400 = vrot.lane.b32.xlu0 %v4404_v22, %s4277_s12 }
 0x39f   :  { %v224_v6 = vpop.xlane.xlu2 %223 }
 0x3a0   :  { %3975 = vrcp.f32 %v224_v6 }
 0x3a6   :  { %v3976_v10 = vpop.eup %3975 }
 0x3a7   :  { %v227_v7 = vpop.xlane.xlu1 %226  ;;  %v405_v8 = vpop.permute.xlu2 %404  ;;  %v234_v14 = vmul.f32 %v3976_v10, %v3970_v53 }
 0x3a8   :  { %3977 = vrcp.f32 %v227_v7  ;;  %v416_v9 = vsel %vm171_vm12, %v405_v8, 0 }
 0x3a9   :  { %424 = vmatpush.bf16.xpose.msrb.mxu2 %v416_v9 }
 0x3ae   :  { %v3978_v11 = vpop.eup %3977 }
 0x3af   :  { %v279_v13 = vpop.permute.xlu2 %278  ;;  %v235_v15 = vmul.f32 %v3978_v11, %v3972_v59 }
 0x3b0   :  { %3612 = vmatmul.msk.bf16.gmra.mxu3 %vm171_vm12, %v279_v13 }
 0x3b1   :  { %v237_v16 = vpack.c.bf16 %v235_v15, %v234_v14 }
 0x3b3   :  { %3609 = vmatmul.msk.bf16.vlgmr.msra.gmra.mxu2 %vm202_vm14, %v237_v16 }
 0x3b7   :  { %v403_v17 = vpop.permute.xlu2 %402 }
 0x3b8   :  { %v413_v18 = vsel %vm171_vm12, %v403_v17, 0 }
 0x3b9   :  { %425 = vmatpush.bf16.xpose.msrb.mxu2 %v413_v18 }
 0x3bb   :  { %v305_v19 = vpop.f32.mrf.mxu3 }
 0x3bc   :  { %v306_v21 = vadd.f32 %v305_v19, %v4427_v34 }
 0x3be   :  { %v314_v23 = vsel %vm202_vm14, %v306_v21, -inf }
 0x3bf   :  { %v527_v24 = vpop.permute.xlu1 %526  ;;  %315 = vmax.xlane.f32.xlu1 %v314_v23  ;;  %v525_v28 = vpop.permute.xlu2 %524 }
 0x3c0   :  { %v538_v25 = vsel %vm171_vm12, %v527_v24, 0  ;;  %v535_v31 = vsel %vm171_vm12, %v525_v28, 0 }
 0x3c1   :  { %546 = vmatpush.bf16.xpose.msrb.mxu3 %v538_v25 }
 0x3c3   :  { %v307_v26 = vpop.f32.mrf.mxu3 }
 0x3c4   :  { %v308_v27 = vadd.f32 %v307_v26, %v4434_v39 }
 0x3c6   :  { %v317_v29 = vsel %vm202_vm14, %v308_v27, -inf }
 0x3c7   :  { %318 = vmax.xlane.f32.xlu2 %v317_v29  ;;  %v521_v32 = vpop.permute.xlu1 %520  ;;  %v399_v33 = vpop.permute.xlu2 %398 }
 0x3c9   :  { %547 = vmatpush.bf16.xpose.msrb.mxu3 %v535_v31 }
 0x3cf   :  { %v523_v36 = vpop.permute.xlu2 %522 }
 0x3d0   :  { %3619 = vmatmul.msk.bf16.vlgmr.msrb.gmra.mxu3 %vm171_vm12, %v521_v32 }
 0x3e0   :  { %3620 = vmatmul.msk.bf16.gmra.mxu3 %vm171_vm12, %v523_v36 }
 0x3e8   :  { %v230_v37 = vpop.xlane.xlu0 %229 }
 0x3e9   :  { %3979 = vrcp.f32 %v230_v37 }
 0x3ef   :  { %v3980_v38 = vpop.eup %3979 }
 0x3f0   :  { %v236_v40 = vmul.f32 %v3980_v38, %v3974_v3 }
 0x3f2   :  { %v238_v41 = vpack.c.bf16 %v236_v40, %v236_v40 }
 0x3f4   :  { %3610 = vmatmul.msk.bf16.gmra.mxu2 %vm202_vm14, %v238_v41 }
 0x3fb   :  { %v401_v42 = vpop.permute.xlu0 %400 }
 0x404   :  { %3615 = vmatmul.msk.bf16.vlgmr.msrb.gmra.mxu2 %vm171_vm12, %v399_v33 }
 0x414   :  { %3616 = vmatmul.msk.bf16.gmra.mxu2 %vm171_vm12, %v401_v42 }
 0x432   :  { %v316_v43 = vpop.xlane.xlu1 %315 }
 0x433   :  { %v323_v44 = vsub.f32 %v306_v21, %v316_v43  ;;  %v310_v46 = vpop.f32.mrf.mxu3 }
 0x434   :  { %v311_v47 = vadd.f32 %v310_v46, %v4443_v45 }
 0x435   :  { %v326_v48 = vmul.f32 1.442695, %v323_v44 }
 0x436   :  { %v263_v49 = vpop.f32.mrf.mxu2  ;;  %v320_v50 = vsel %vm209_vm15, %v311_v47, -inf }
 0x437   :  { %3981 = vpow2.f32 %v326_v48  ;;  %272 = vst.msk [vmem:[#allocation2] sm:$0xff] %vm171_vm12, %v263_v49  ;;  %321 = vmax.xlane.f32.xlu0 %v320_v50 }
 0x43a   :  { %v319_v56 = vpop.xlane.xlu2 %318 }
 0x43b   :  { %v312_v51 = vpop.f32.mrf.mxu3  ;;  %v324_v57 = vsub.f32 %v308_v27, %v319_v56 }
 0x43d   :  { %v4488_v52 = vpop.eup %3981  ;;  %v328_v58 = vmul.f32 1.442695, %v324_v57 }
 0x43e   :  { %v265_v53 = vpop.f32.mrf.mxu2  ;;  %v332_v55 = vsel %vm202_vm14, %v4488_v52, 0.0 }
 0x43f   :  { %273 = vst.msk [vmem:[#allocation2 + $0x8] sm:$0xff] %vm171_vm12, %v265_v53  ;;  %333 = vadd.xlane.f32.xlu0 %v332_v55  ;;  %3983 = vpow2.f32 %v328_v58 }
 0x445   :  { %v4497_v62 = vpop.eup %3983 }
 0x446   :  { %v335_v5 = vsel %vm202_vm14, %v4497_v62, 0.0 }
 0x453   :  { %v549_v59 = vpop.f32.mrf.mxu3  ;;  %349 = vrot.lane.b32.xlu0 %v4400_v20, %s5762_s13 }
 0x454   :  { %v550_v60 = vadd.f32 %v549_v59, %v4427_v34 }
 0x456   :  { %v558_v61 = vsel %vm202_vm14, %v550_v60, -inf }
 0x457   :  { %559 = vmax.xlane.f32.xlu1 %v558_v61 }
 0x45b   :  { %v551_v63 = vpop.f32.mrf.mxu3 }
 0x45c   :  { %v552_v2 = vadd.f32 %v551_v63, %v4434_v39 }
 0x45e   :  { %v561_v3 = vsel %vm202_vm14, %v552_v2, -inf }
 0x45f   :  { %562 = vmax.xlane.f32.xlu2 %v561_v3  ;;  %336 = vadd.xlane.f32.xlu1 %v335_v5 }
 0x463   :  { %v554_v6 = vpop.f32.mrf.mxu3 }
 0x464   :  { %v555_v25 = vadd.f32 %v554_v6, %v4443_v45 }
 0x46b   :  { %v556_v7 = vpop.f32.mrf.mxu3 }
 0x477   :  { %v268_v8 = vpop.f32.mrf.mxu2 }
 0x478   :  { %275 = vst.msk [vmem:[#allocation2 + $0x10] sm:$0x3] %vm274_vm2, %v268_v8 }
 0x47f   :  { %v270_v9 = vpop.f32.mrf.mxu2 }
 0x487   :  { %v427_v10 = vpop.f32.mrf.mxu2 }
 0x488   :  { %v428_v11 = vadd.f32 %v427_v10, %v4427_v34 }
 0x48a   :  { %v436_v13 = vsel %vm202_vm14, %v428_v11, -inf }
 0x48b   :  { %437 = vmax.xlane.f32.xlu1 %v436_v13 }
 0x48f   :  { %v429_v14 = vpop.f32.mrf.mxu2 }
 0x490   :  { %v430_v15 = vadd.f32 %v429_v14, %v4434_v39  ;;  %v564_v39 = vsel %vm209_vm15, %v555_v25, -inf }
 0x492   :  { %v439_v16 = vsel %vm202_vm14, %v430_v15, -inf }
 0x493   :  { %440 = vmax.xlane.f32.xlu2 %v439_v16 }
 0x497   :  { %v432_v17 = vpop.f32.mrf.mxu2 }
 0x49f   :  { %v434_v18 = vpop.f32.mrf.mxu2 }
 0x4aa   :  { %v322_v19 = vpop.xlane.xlu0 %321 }
 0x4ab   :  { %v325_v21 = vsub.f32 %v311_v47, %v322_v19  ;;  %351 = vrot.lane.b32.xlu2 %v4404_v22, %s5762_s13 }
 0x4ad   :  { %v330_v23 = vmul.f32 1.442695, %v325_v21 }
 0x4af   :  { %3985 = vpow2.f32 %v330_v23 }
 0x4b2   :  { %v334_v46 = vpop.xlane.xlu0 %333 }
 0x4b5   :  { %v3986_v24 = vpop.eup %3985 }
 0x4b6   :  { %v338_v34 = vsel %vm209_vm15, %v3986_v24, 0.0 }
 0x4b7   :  { %339 = vadd.xlane.f32.xlu1 %v338_v34 }
 0x4bf   :  { %565 = vmax.xlane.f32.xlu1 %v564_v39 }
 0x4c5   :  { %v350_v61 = vpop.permute.xlu0 %349 }
 0x4ca   :  { %v560_v26 = vpop.xlane.xlu1 %559 }
 0x4cb   :  { %v567_v27 = vsub.f32 %v550_v60, %v560_v26 }
 0x4cd   :  { %v570_v28 = vmul.f32 1.442695, %v567_v27 }
 0x4cf   :  { %3987 = vpow2.f32 %v570_v28 }
 0x4d2   :  { %v563_v29 = vpop.xlane.xlu2 %562  ;;  %v337_v40 = vpop.xlane.xlu1 %336 }
 0x4d3   :  { %v568_v31 = vsub.f32 %v552_v2, %v563_v29  ;;  %v433_v2 = vadd.f32 %v432_v17, %v4443_v45 }
 0x4d5   :  { %v4513_v32 = vpop.eup %3987  ;;  %v572_v33 = vmul.f32 1.442695, %v568_v31  ;;  %v442_v3 = vsel %vm209_vm15, %v433_v2, -inf }
 0x4d6   :  { %v576_v36 = vsel %vm202_vm14, %v4513_v32, 0.0 }
 0x4d7   :  { %3989 = vpow2.f32 %v572_v33  ;;  %577 = vadd.xlane.f32.xlu1 %v576_v36 }
 0x4dd   :  { %v4517_v37 = vpop.eup %3989 }
 0x4de   :  { %v579_v38 = vsel %vm202_vm14, %v4517_v37, 0.0 }
 0x4df   :  { %580 = vadd.xlane.f32.xlu1 %v579_v38 }
 0x4f8   :  { %473 = vrot.lane.b32.xlu1 %v4404_v22, %s5760_s14 }
 0x4fe   :  { %v438_v41 = vpop.xlane.xlu1 %437 }
 0x4ff   :  { %v445_v42 = vsub.f32 %v428_v11, %v438_v41 }
 0x501   :  { %v448_v43 = vmul.f32 1.442695, %v445_v42 }
 0x503   :  { %3991 = vpow2.f32 %v448_v43 }
 0x504   :  { %3993 = vrcp.f32 %v337_v40 }
 0x505   :  { %3995 = vrcp.f32 %v334_v46 }
 0x506   :  { %v441_v44 = vpop.xlane.xlu2 %440 }
 0x507   :  { %v446_v47 = vsub.f32 %v430_v15, %v441_v44 }
 0x509   :  { %v3992_v48 = vpop.eup %3991  ;;  %v450_v49 = vmul.f32 1.442695, %v446_v47 }
 0x50a   :  { %v454_v50 = vsel %vm202_vm14, %v3992_v48, 0.0  ;;  %v3994_v51 = vpop.eup %3993 }
 0x50b   :  { %3997 = vpow2.f32 %v450_v49  ;;  %455 = vadd.xlane.f32.xlu0 %v454_v50  ;;  %v3996_v56 = vpop.eup %3995  ;;  %v345_v58 = vmul.f32 %v3994_v51, %v4497_v62 }
 0x50c   :  { %v344_v60 = vmul.f32 %v3996_v56, %v4488_v52 }
 0x50e   :  { %v352_v53 = vpop.permute.xlu2 %351  ;;  %v347_v63 = vpack.c.bf16 %v345_v58, %v344_v60 }
 0x50f   :  { %v361_v55 = vsel %vm250_vm13, %v352_v53, 0 }
 0x510   :  { %369 = vmatpush.bf16.msrb.mxu0 %v361_v55 }
 0x511   :  { %v3998_v57 = vpop.eup %3997 }
 0x512   :  { %v457_v59 = vsel %vm202_vm14, %v3998_v57, 0.0 }
 0x513   :  { %458 = vadd.xlane.f32.xlu2 %v457_v59 }
 0x514   :  { %370 = vmatpush.bf16.msrb.mxu0 %v350_v61 }
 0x517   :  { %3613 = vmatmul.msk.bf16.vlgmr.msrb.gmra.mxu0 %vm202_vm14, %v347_v63 }
 0x51f   :  { %595 = vrot.lane.b32.xlu0 %v4404_v22, %s5758_s15 }
 0x522   :  { %443 = vmax.xlane.f32.xlu1 %v442_v3 }
 0x52a   :  { %v340_v62 = vpop.xlane.xlu1 %339 }
 0x52b   :  { %3999 = vrcp.f32 %v340_v62  ;;  %471 = vrot.lane.b32.xlu2 %v4400_v20, %s5760_s14 }
 0x531   :  { %v4000_v52 = vpop.eup %3999 }
 0x532   :  { %v346_v5 = vmul.f32 %v4000_v52, %v3986_v24  ;;  %v566_v6 = vpop.xlane.xlu1 %565 }
 0x533   :  { %v569_v8 = vsub.f32 %v555_v25, %v566_v6 }
 0x534   :  { %v348_v7 = vpack.c.bf16 %v346_v5, %v346_v5 }
 0x535   :  { %v574_v45 = vmul.f32 1.442695, %v569_v8 }
 0x536   :  { %3614 = vmatmul.msk.bf16.gmra.mxu0 %vm202_vm14, %v348_v7 }
 0x537   :  { %4001 = vpow2.f32 %v574_v45 }
 0x53b   :  { %593 = vrot.lane.b32.xlu1 %v4400_v20, %s5758_s15 }
 0x53d   :  { %v4002_v22 = vpop.eup %4001 }
 0x53e   :  { %v582_v9 = vsel %vm209_vm15, %v4002_v22, 0.0 }
 0x549   :  { %583 = vadd.xlane.f32.xlu0 %v582_v9 }
 0x54a   :  { %v578_v10 = vpop.xlane.xlu1 %577 }
 0x552   :  { %v581_v11 = vpop.xlane.xlu1 %580 }
 0x55d   :  { %650 = vrot.lane.b32.xlu0 %v4375_v30, %s5756_s17 }
 0x56a   :  { %v474_v13 = vpop.permute.xlu1 %473 }
 0x56b   :  { %v483_v14 = vsel %vm250_vm13, %v474_v13, 0  ;;  %v647_v13 = vperm.slane %v4393_v54, 4 }
 0x56c   :  { %491 = vmatpush.bf16.msrb.mxu1 %v483_v14 }
 0x57e   :  { %v456_v15 = vpop.xlane.xlu0 %455 }
 0x57f   :  { %4003 = vrcp.f32 %v456_v15 }
 0x585   :  { %v4004_v17 = vpop.eup %4003 }
 0x586   :  { %v459_v16 = vpop.xlane.xlu2 %458  ;;  %v466_v19 = vmul.f32 %v4004_v17, %v3992_v48 }
 0x587   :  { %4005 = vrcp.f32 %v459_v16 }
 0x58d   :  { %v4006_v18 = vpop.eup %4005 }
 0x58e   :  { %v467_v21 = vmul.f32 %v4006_v18, %v3998_v57  ;;  %v472_v20 = vpop.permute.xlu2 %471 }
 0x58f   :  { %492 = vmatpush.bf16.msrb.mxu1 %v472_v20 }
 0x590   :  { %v469_v23 = vpack.c.bf16 %v467_v21, %v466_v19 }
 0x591   :  { %v596_v24 = vpop.permute.xlu0 %595 }
 0x592   :  { %v605_v34 = vsel %vm250_vm13, %v596_v24, 0  ;;  %3617 = vmatmul.msk.bf16.vlgmr.msrb.gmra.mxu1 %vm202_vm14, %v469_v23 }
 0x593   :  { %613 = vmatpush.bf16.msra.mxu0 %v605_v34 }
 0x594   :  { %v372_v25 = vpop.f32.mrf.mxu0 }
 0x595   :  { %v444_v39 = vpop.xlane.xlu1 %443  ;;  %384 = vrot.lane.b32.xlu2 %v372_v25, %s5753_s16 }
 0x596   :  { %v447_v26 = vsub.f32 %v433_v2, %v444_v39 }
 0x598   :  { %v452_v27 = vmul.f32 1.442695, %v447_v26 }
 0x59a   :  { %4007 = vpow2.f32 %v452_v27 }
 0x59b   :  { %4009 = vrcp.f32 %v581_v11 }
 0x59c   :  { %v374_v28 = vpop.f32.mrf.mxu0  ;;  %4011 = vrcp.f32 %v578_v10 }
 0x59d   :  { %386 = vrot.lane.b32.xlu2 %v374_v28, %s5753_s16 }
 0x5a0   :  { %v4008_v29 = vpop.eup %4007 }
 0x5a1   :  { %v460_v31 = vsel %vm209_vm15, %v4008_v29, 0.0  ;;  %v4010_v33 = vpop.eup %4009 }
 0x5a2   :  { %461 = vadd.xlane.f32.xlu1 %v460_v31  ;;  %v4012_v36 = vpop.eup %4011  ;;  %v589_v38 = vmul.f32 %v4010_v33, %v4517_v37 }
 0x5a3   :  { %v588_v40 = vmul.f32 %v4012_v36, %v4513_v32 }
 0x5a5   :  { %v591_v42 = vpack.c.bf16 %v589_v38, %v588_v40 }
 0x5ad   :  { %v594_v41 = vpop.permute.xlu1 %593 }
 0x5ae   :  { %614 = vmatpush.bf16.msra.mxu0 %v594_v41 }
 0x5b1   :  { %3621 = vmatmul.msk.bf16.vlgmr.msra.gmra.mxu0 %vm202_vm14, %v591_v42 }
 0x5b3   :  { %v377_v43 = vpop.f32.mrf.mxu0 }
 0x5bb   :  { %v379_v44 = vpop.f32.mrf.mxu0 }
 0x5bc   :  { %v584_v46 = vpop.xlane.xlu0 %583  ;;  %v3901_v44 = vld [vmem:[%s5739_s2 + $0x14] sm:$0xf] }
 0x5bd   :  { %4013 = vrcp.f32 %v584_v46  ;;  %v3629_v46 = vld [vmem:[%s5739_s2 + $0x18] sm:$0xf0] }
 0x5c3   :  { %v4014_v47 = vpop.eup %4013 }
 0x5c4   :  { %v590_v48 = vmul.f32 %v4014_v47, %v4002_v22  ;;  %v3632_v47 = vor.u32 %v3901_v44, %v3629_v46 }
 0x5c6   :  { %v592_v49 = vpack.c.bf16 %v590_v48, %v590_v48  ;;  %781 = vmatpush.bf16.msra.mxu1 %v3632_v47 }
 0x5c8   :  { %3622 = vmatmul.msk.bf16.gmra.mxu0 %vm202_vm14, %v592_v49 }
 0x5cf   :  { %v651_v61 = vpop.permute.xlu0 %650 }
 0x5d0   :  { %666 = vmatpush.bf16.msra.mxu2 %v651_v61 }
 0x5ef   :  { %v385_v32 = vpop.permute.xlu2 %384 }
 0x5f0   :  { %394 = vst.msk [vmem:[#allocation2] sm:$0xff] %vm393_vm3, %v385_v32  ;;  %v3899_v32 = vld [vmem:[%s5739_s2 + $0x4] sm:$0xf] }
 0x5f7   :  { %v387_v37 = vpop.permute.xlu2 %386 }
 0x5f8   :  { %395 = vst.msk [vmem:[#allocation2 + $0x8] sm:$0xff] %vm393_vm3, %v387_v37  ;;  %v3625_v37 = vld [vmem:[%s5739_s2 + $0x8] sm:$0xf0] }
 0x60f   :  { %v494_v57 = vpop.f32.mrf.mxu1 }
 0x615   :  { %v462_v50 = vpop.xlane.xlu1 %461 }
 0x616   :  { %4015 = vrcp.f32 %v462_v50  ;;  %v3628_v50 = vor.u32 %v3899_v32, %v3625_v37 }
 0x617   :  { %v496_v59 = vpop.f32.mrf.mxu1 }
 0x618   :  { %782 = vmatpush.bf16.msra.mxu1 %v3628_v50 }
 0x61c   :  { %v4016_v30 = vpop.eup %4015 }
 0x61d   :  { %v468_v51 = vmul.f32 %v4016_v30, %v4008_v29 }
 0x61f   :  { %v470_v53 = vpack.c.bf16 %v468_v51, %v468_v51 }
 0x621   :  { %3618 = vmatmul.msk.bf16.gmra.mxu1 %vm202_vm14, %v470_v53 }
 0x62e   :  { %v616_v55 = vpop.f32.mrf.mxu0 }
 0x62f   :  { %628 = vrot.lane.b32.xlu1 %v616_v55, %s5746_s18 }
 0x636   :  { %v618_v56 = vpop.f32.mrf.mxu0 }
 0x637   :  { %630 = vrot.lane.b32.xlu2 %v618_v56, %s5746_s18 }
 0x63f   :  { %506 = vrot.lane.b32.xlu2 %v494_v57, %s5751_s19 }
 0x645   :  { %v621_v58 = vpop.f32.mrf.mxu0 }
 0x647   :  { %508 = vrot.lane.b32.xlu2 %v496_v59, %s5751_s19 }
 0x64d   :  { %v623_v60 = vpop.f32.mrf.mxu0 }
 0x64f   :  { %648 = vrot.lane.b32.xlu2 %v4385_v35, %s5756_s17 }
 0x657   :  { %388 = vrot.lane.b32.xlu2 %v377_v43, %s5753_s16  ;;  %s5768_s16 = smov 24  }
 0x65f   :  { %632 = vrot.lane.b32.xlu2 %v621_v58, %s5746_s18 }
 0x691   :  { %v631_v63 = vpop.permute.xlu2 %630 }
 0x699   :  { %v507_v2 = vpop.permute.xlu2 %506 }
 0x69a   :  { %516 = vst.msk [vmem:[#allocation2] sm:$0xff] %vm515_vm4, %v507_v2 }
 0x69e   :  { %v499_v3 = vpop.f32.mrf.mxu1 }
 0x69f   :  { %510 = vrot.lane.b32.xlu1 %v499_v3, %s5751_s19 }
 0x6a1   :  { %v629_v62 = vpop.permute.xlu1 %628  ;;  %v509_v52 = vpop.permute.xlu2 %508 }
 0x6a2   :  { %638 = vst.msk [vmem:[#allocation2] sm:$0xff] %vm637_vm5, %v629_v62 }
 0x6a3   :  { %517 = vst.msk [vmem:[#allocation2 + $0x8] sm:$0xff] %vm515_vm4, %v509_v52 }
 0x6a4   :  { %639 = vst.msk [vmem:[#allocation2 + $0x8] sm:$0xff] %vm637_vm5, %v631_v63 }
 0x6a6   :  { %v501_v35 = vpop.f32.mrf.mxu1 }
 0x6a9   :  { %v649_v5 = vpop.permute.xlu2 %648  ;;  %v642_v6 = vld [vmem:[#allocation2] sm:$0xff] }
 0x6aa   :  { %667 = vmatpush.bf16.msra.mxu2 %v649_v5  ;;  %v747_v5 = vperm.slane %v4393_v54, 2 }
 0x6ab   :  { %v643_v7 = vld [vmem:[#allocation2 + $0x8] sm:$0xff] }
 0x6ac   :  { %v645_v8 = vpack.c.bf16 %v643_v7, %v642_v6 }
 0x6ae   :  { %3623 = vmatmul.msk.bf16.vlgmr.msra.gmra.mxu2 %vm42_vm0, %v645_v8 }
 0x6b1   :  { %v389_v45 = vpop.permute.xlu2 %388 }
 0x6b2   :  { %397 = vst.msk [vmem:[#allocation2 + $0x10] sm:$0x3] %vm5750_vm6, %v389_v45 }
 0x6b9   :  { %v633_v9 = vpop.permute.xlu2 %632 }
 0x711   :  { %v511_v22 = vpop.permute.xlu1 %510 }
 0x712   :  { %519 = vst.msk [vmem:[#allocation2 + $0x10] sm:$0x3] %vm5749_vm7, %v511_v22 }
 0x713   :  { %641 = vst.msk [vmem:[#allocation2 + $0x10] sm:$0x3] %vm5748_vm8, %v633_v9  ;;  %v751_v9 = vperm.slane %v4393_v54, 3 }
 0x71a   :  { %v644_v10 = vld [vmem:[#allocation2 + $0x10] sm:$0x3] }
 0x71b   :  { %v646_v11 = vpack.c.bf16 %v644_v10, %v644_v10 }
 0x71d   :  { %3624 = vmatmul.msk.bf16.gmra.mxu2 %vm42_vm0, %v646_v11 }
 0x731   :  { %v669_v14 = vpop.f32.mrf.mxu2 }
 0x732   :  { %v670_v15 = vadd.f32 %v669_v14, %v647_v13 }
 0x734   :  { %v4574_v16 = vadd.f32 %v670_v15, %v4336_v0 }
 0x736   :  { %v681_v17 = vsel %vm42_vm0, %v4574_v16, 0.0 }
 0x737   :  { %682 = vadd.xlane.f32.xlu0 %v681_v17 }
 0x739   :  { %v671_v18 = vpop.f32.mrf.mxu2 }
 0x73a   :  { %v672_v19 = vadd.f32 %v671_v18, %v647_v13 }
 0x73c   :  { %v4579_v21 = vadd.f32 %v672_v19, %v4350_v4 }
 0x73e   :  { %v684_v20 = vsel %vm42_vm0, %v4579_v21, 0.0 }
 0x73f   :  { %685 = vadd.xlane.f32.xlu1 %v684_v20 }
 0x7a0   :  { %v674_v23 = vpop.f32.mrf.mxu2 }
 0x7a1   :  { %v675_v24 = vadd.f32 %v674_v23, %v647_v13 }
 0x7a3   :  { %v4584_v34 = vadd.f32 %v675_v24, %v4341_v1 }
 0x7a5   :  { %v687_v0 = vsel %vm49_vm1, %v4584_v34, 0.0 }
 0x7a6   :  { %688 = vadd.xlane.f32.xlu2 %v687_v0 }
 0x7a8   :  { %v676_v25 = vpop.f32.mrf.mxu2 }
 0x7aa   :  { %v683_v39 = vpop.xlane.xlu0 %682 }
 0x7ab   :  { %v690_v26 = vmul.f32 %v683_v39, %v4354_v12 }
 0x7ad   :  { %v693_v4 = vsub.f32 %v4574_v16, %v690_v26 }
 0x7af   :  { %v696_v27 = vmul.f32 %v693_v4, %v693_v4 }
 0x7b1   :  { %v699_v28 = vsel %vm42_vm0, %v696_v27, 0.0 }
 0x7b2   :  { %v686_v29 = vpop.xlane.xlu1 %685  ;;  %700 = vadd.xlane.f32.xlu0 %v699_v28  ;;  %v3906_v28 = vld [vmem:[%s5740_s3 + $0x18] sm:$0xff] }
 0x7b3   :  { %v691_v31 = vmul.f32 %v686_v29, %v4354_v12  ;;  %866 = vmatpush.bf16.msra.mxu3 %v3906_v28  ;;  %v3905_v29 = vld [vmem:[%s5740_s3 + $0x10] sm:$0xff] }
 0x7b5   :  { %v694_v1 = vsub.f32 %v4579_v21, %v691_v31  ;;  %v3904_v31 = vld [vmem:[%s5740_s3 + $0x8] sm:$0xff] }
 0x7b7   :  { %v697_v33 = vmul.f32 %v694_v1, %v694_v1  ;;  %867 = vmatpush.bf16.msra.mxu3 %v3905_v29 }
 0x7b9   :  { %v702_v36 = vsel %vm42_vm0, %v697_v33, 0.0  ;;  %v3957_v33 = vld [vmem:[%s5742_s5] ss:$0 sm:$0xff] }
 0x7ba   :  { %703 = vadd.xlane.f32.xlu2 %v702_v36 }
 0x7bb   :  { %868 = vmatpush.bf16.msra.mxu3 %v3904_v31 }
 0x819   :  { %v689_v38 = vpop.xlane.xlu2 %688 }
 0x81a   :  { %v692_v40 = vmul.f32 %v689_v38, %v4354_v12 }
 0x81c   :  { %v4596_v41 = vsub.f32 %v4584_v34, %v692_v40 }
 0x81e   :  { %v698_v42 = vmul.f32 %v4596_v41, %v4596_v41 }
 0x820   :  { %v705_v43 = vsel %vm49_vm1, %v698_v42, 0.0 }
 0x821   :  { %706 = vadd.xlane.f32.xlu1 %v705_v43 }
 0x825   :  { %v701_v48 = vpop.xlane.xlu0 %700 }
 0x826   :  { %v708_v49 = vmul.f32 %v701_v48, %v4354_v12 }
 0x828   :  { %v711_v30 = vadd.f32 1e-05, %v708_v49 }
 0x82a   :  { %4017 = vrsqrt.f32 %v711_v30  ;;  %vm720_vm10 = vweird.f32 %v711_v30 }
 0x82d   :  { %v704_v51 = vpop.xlane.xlu2 %703 }
 0x82e   :  { %v709_v53 = vmul.f32 %v704_v51, %v4354_v12 }
 0x830   :  { %v4018_v55 = vpop.eup %4017  ;;  %v712_v56 = vadd.f32 1e-05, %v709_v53 }
 0x831   :  { %v715_v57 = vmul.f32 %v4018_v55, %v711_v30  ;;  %vm721_vm9 = vweird.f32 %v4018_v55 }
 0x832   :  { %4019 = vrsqrt.f32 %v712_v56  ;;  %vm722_vm11 = vmor %vm720_vm10, %vm721_vm9  ;;  %vm730_vm7 = vweird.f32 %v712_v56  ;;  %vm5755_vm9 = vcmask 523264  }
 0x833   :  { %v716_v58 = vmul.f32 %v4018_v55, %v715_v57 }
 0x835   :  { %v717_v59 = vmul.f32 0.5, %v716_v58 }
 0x837   :  { %v718_v60 = vsub.f32 1.5, %v717_v59 }
 0x838   :  { %v4020_v61 = vpop.eup %4019 }
 0x839   :  { %v719_v63 = vmul.f32 %v4018_v55, %v718_v60  ;;  %v725_v2 = vmul.f32 %v4020_v61, %v712_v56  ;;  %vm731_vm8 = vweird.f32 %v4020_v61 }
 0x83a   :  { %vm732_vm6 = vmor %vm730_vm7, %vm731_vm8 }
 0x83b   :  { %v726_v3 = vmul.f32 %v4020_v61, %v725_v2  ;;  %v723_v62 = vsel %vm722_vm11, %v4018_v55, %v719_v63 }
 0x83c   :  { %v744_v6 = vmul.f32 %v723_v62, %v693_v4 }
 0x83d   :  { %v727_v52 = vmul.f32 0.5, %v726_v3 }
 0x83e   :  { %v748_v45 = vmul.f32 %v747_v5, %v744_v6 }
 0x83f   :  { %v728_v35 = vsub.f32 1.5, %v727_v52 }
 0x840   :  { %v752_v11 = vadd.f32 %v751_v9, %v748_v45 }
 0x841   :  { %v729_v7 = vmul.f32 %v4020_v61, %v728_v35 }
 0x843   :  { %v733_v8 = vsel %vm732_vm6, %v4020_v61, %v729_v7 }
 0x844   :  { %v745_v22 = vmul.f32 %v733_v8, %v694_v1  ;;  %v3903_v1 = vld [vmem:[%s5740_s3] sm:$0xff] }
 0x845   :  { %869 = vmatpush.bf16.msra.mxu3 %v3903_v1 }
 0x846   :  { %v749_v10 = vmul.f32 %v747_v5, %v745_v22 }
 0x848   :  { %v753_v13 = vadd.f32 %v751_v9, %v749_v10 }
 0x84a   :  { %v755_v14 = vpack.c.bf16 %v753_v13, %v752_v11 }
 0x84c   :  { %3633 = vmatmul.msk.bf16.vlgmr.msra.gmra.mxu1 %vm42_vm0, %v755_v14 }
 0x894   :  { %v707_v15 = vpop.xlane.xlu1 %706 }
 0x895   :  { %v710_v17 = vmul.f32 %v707_v15, %v4354_v12 }
 0x897   :  { %v713_v18 = vadd.f32 1e-05, %v710_v17 }
 0x899   :  { %4021 = vrsqrt.f32 %v713_v18  ;;  %vm740_vm7 = vweird.f32 %v713_v18 }
 0x89f   :  { %v4022_v19 = vpop.eup %4021 }
 0x8a0   :  { %v735_v20 = vmul.f32 %v4022_v19, %v713_v18  ;;  %vm741_vm6 = vweird.f32 %v4022_v19 }
 0x8a1   :  { %vm742_vm8 = vmor %vm740_vm7, %vm741_vm6 }
 0x8a2   :  { %v736_v23 = vmul.f32 %v4022_v19, %v735_v20 }
 0x8a4   :  { %v737_v24 = vmul.f32 0.5, %v736_v23 }
 0x8a6   :  { %v738_v0 = vsub.f32 1.5, %v737_v24 }
 0x8a8   :  { %v739_v25 = vmul.f32 %v4022_v19, %v738_v0 }
 0x8aa   :  { %v743_v54 = vsel %vm742_vm8, %v4022_v19, %v739_v25 }
 0x8ab   :  { %v746_v39 = vmul.f32 %v743_v54, %v4596_v41 }
 0x8ad   :  { %v750_v26 = vmul.f32 %v747_v5, %v746_v39 }
 0x8af   :  { %v754_v4 = vadd.f32 %v751_v9, %v750_v26  ;;  %v4227_v9 = vld [vmem:[%s5741_s4] sm:$0x3f] }
 0x8b0   :  { %v830_v10 = vperm.slane %v4227_v9, 5 }
 0x8b1   :  { %v756_v27 = vpack.c.bf16 %v754_v4, %v754_v4 }
 0x8b3   :  { %3634 = vmatmul.msk.bf16.gmra.mxu1 %vm42_vm0, %v756_v27 }
 0x8c9   :  { %v784_v36 = vpop.f32.mrf.mxu1 }
 0x8ca   :  { %v785_v38 = vadd.f32 %v3957_v33, %v784_v36 }
 0x8cc   :  { %v796_v40 = vmul.f32 0.044715, %v785_v38  ;;  %v793_v55 = vmul.f32 0.5, %v785_v38 }
 0x8ce   :  { %v799_v41 = vmul.f32 %v796_v40, %v785_v38 }
 0x8d0   :  { %v802_v42 = vmul.f32 %v799_v41, %v785_v38  ;;  %v3664_v41 = vld [vmem:[%s5739_s2 + $0x30] sm:$0xf] }
 0x8d1   :  { %v786_v43 = vpop.f32.mrf.mxu1 }
 0x8d2   :  { %v805_v44 = vadd.f32 %v802_v42, %v785_v38  ;;  %v787_v46 = vadd.f32 %v3957_v33, %v786_v43  ;;  %v3910_v42 = vld [vmem:[%s5739_s2 + $0x34] sm:$0xf0] }
 0x8d3   :  { %v4675_v43 = vor.u32 %v3910_v42, %v3664_v41 }
 0x8d4   :  { %v797_v47 = vmul.f32 0.044715, %v787_v46  ;;  %v808_v48 = vmul.f32 0.7978846, %v805_v44  ;;  %v794_v56 = vmul.f32 0.5, %v787_v46 }
 0x8d5   :  { %990 = vmatpush.bf16.msrb.mxu0 %v4675_v43 }
 0x8d6   :  { %v800_v49 = vmul.f32 %v797_v47, %v787_v46  ;;  %4023 = vtanh.f32 %v808_v48  ;;  %v3660_v47 = vld [vmem:[%s5739_s2 + $0x20] sm:$0xf]  ;;  %v3908_v48 = vld [vmem:[%s5739_s2 + $0x24] sm:$0xf0] }
 0x8d8   :  { %v803_v32 = vmul.f32 %v800_v49, %v787_v46  ;;  %v4685_v49 = vor.u32 %v3908_v48, %v3660_v47 }
 0x8da   :  { %v806_v37 = vadd.f32 %v803_v32, %v787_v46  ;;  %991 = vmatpush.bf16.msrb.mxu0 %v4685_v49 }
 0x8dc   :  { %v809_v50 = vmul.f32 0.7978846, %v806_v37  ;;  %v4024_v30 = vpop.eup %4023 }
 0x8dd   :  { %v814_v51 = vadd.f32 1.0, %v4024_v30 }
 0x8de   :  { %4025 = vtanh.f32 %v809_v50 }
 0x8df   :  { %v817_v58 = vmul.f32 %v814_v51, %v793_v55 }
 0x8e4   :  { %v4026_v53 = vpop.eup %4025 }
 0x8e5   :  { %v815_v57 = vadd.f32 1.0, %v4026_v53 }
 0x8e7   :  { %v818_v59 = vmul.f32 %v815_v57, %v794_v56 }
 0x8e9   :  { %v820_v60 = vpack.c.bf16 %v818_v59, %v817_v58 }
 0x8eb   :  { %3651 = vmatmul.msk.bf16.vlgmr.msra.gmra.mxu3 %vm5755_vm9, %v820_v60 }
 0x930   :  { %v789_v61 = vpop.f32.mrf.mxu1 }
 0x931   :  { %v790_v63 = vadd.f32 %v3957_v33, %v789_v61 }
 0x933   :  { %v798_v2 = vmul.f32 0.044715, %v790_v63  ;;  %v795_v7 = vmul.f32 0.5, %v790_v63 }
 0x935   :  { %v801_v3 = vmul.f32 %v798_v2, %v790_v63 }
 0x937   :  { %v804_v62 = vmul.f32 %v801_v3, %v790_v63 }
 0x938   :  { %v791_v52 = vpop.f32.mrf.mxu1 }
 0x939   :  { %v807_v35 = vadd.f32 %v804_v62, %v790_v63  ;;  %v4692_v63 = vld [vmem:[%s5741_s4 + $0x8] sm:$0x3f] }
 0x93a   :  { %v956_v52 = vperm.slane %v4692_v63, 0 }
 0x93b   :  { %v810_v5 = vmul.f32 0.7978846, %v807_v35 }
 0x93d   :  { %4027 = vtanh.f32 %v810_v5 }
 0x943   :  { %v4028_v6 = vpop.eup %4027 }
 0x944   :  { %v816_v8 = vadd.f32 1.0, %v4028_v6 }
 0x946   :  { %v819_v45 = vmul.f32 %v816_v8, %v795_v7 }
 0x948   :  { %v821_v22 = vpack.c.bf16 %v819_v45, %v819_v45  ;;  %v960_v45 = vperm.slane %v4692_v63, 1 }
 0x94a   :  { %3652 = vmatmul.msk.bf16.gmra.mxu3 %vm5755_vm9, %v821_v22 }
 0x96e   :  { %v871_v11 = vpop.f32.mrf.mxu3 }
 0x96f   :  { %v872_v13 = vadd.f32 %v871_v11, %v830_v10 }
 0x971   :  { %v4642_v14 = vadd.f32 %v872_v13, %v4574_v16 }
 0x973   :  { %v890_v15 = vsel %vm42_vm0, %v4642_v14, 0.0 }
 0x974   :  { %891 = vadd.xlane.f32.xlu0 %v890_v15 }
 0x976   :  { %v873_v17 = vpop.f32.mrf.mxu3 }
 0x977   :  { %v874_v18 = vadd.f32 %v873_v17, %v830_v10 }
 0x979   :  { %v4647_v19 = vadd.f32 %v874_v18, %v4579_v21 }
 0x97b   :  { %v893_v20 = vsel %vm42_vm0, %v4647_v19, 0.0 }
 0x97c   :  { %894 = vadd.xlane.f32.xlu2 %v893_v20 }
 0x9cd   :  { %v876_v23 = vpop.f32.mrf.mxu3 }
 0x9ce   :  { %v877_v24 = vadd.f32 %v876_v23, %v830_v10 }
 0x9d0   :  { %v4652_v0 = vadd.f32 %v877_v24, %v4584_v34 }
 0x9d2   :  { %v896_v16 = vsel %vm49_vm1, %v4652_v0, 0.0 }
 0x9d3   :  { %897 = vadd.xlane.f32.xlu1 %v896_v16 }
 0x9d5   :  { %v878_v25 = vpop.f32.mrf.mxu3 }
 0x9e7   :  { %v892_v54 = vpop.xlane.xlu0 %891 }
 0x9e8   :  { %v899_v39 = vmul.f32 %v892_v54, %v4354_v12 }
 0x9ea   :  { %v902_v21 = vsub.f32 %v4642_v14, %v899_v39 }
 0x9ec   :  { %v905_v26 = vmul.f32 %v902_v21, %v902_v21 }
 0x9ee   :  { %v908_v4 = vsel %vm42_vm0, %v905_v26, 0.0 }
 0x9ef   :  { %v895_v27 = vpop.xlane.xlu2 %894  ;;  %909 = vadd.xlane.f32.xlu0 %v908_v4 }
 0x9f0   :  { %v900_v28 = vmul.f32 %v895_v27, %v4354_v12 }
 0x9f2   :  { %v903_v34 = vsub.f32 %v4647_v19, %v900_v28 }
 0x9f4   :  { %v906_v29 = vmul.f32 %v903_v34, %v903_v34 }
 0x9f6   :  { %v911_v31 = vsel %vm42_vm0, %v906_v29, 0.0 }
 0x9f7   :  { %912 = vadd.xlane.f32.xlu2 %v911_v31 }
 0xa46   :  { %v898_v1 = vpop.xlane.xlu1 %897 }
 0xa47   :  { %v901_v33 = vmul.f32 %v898_v1, %v4354_v12 }
 0xa49   :  { %v4664_v36 = vsub.f32 %v4652_v0, %v901_v33 }
 0xa4b   :  { %v907_v38 = vmul.f32 %v4664_v36, %v4664_v36 }
 0xa4d   :  { %v914_v40 = vsel %vm49_vm1, %v907_v38, 0.0 }
 0xa4e   :  { %915 = vadd.xlane.f32.xlu1 %v914_v40 }
 0xa62   :  { %v910_v44 = vpop.xlane.xlu0 %909 }
 0xa63   :  { %v917_v46 = vmul.f32 %v910_v44, %v4354_v12 }
 0xa65   :  { %v920_v32 = vadd.f32 1e-05, %v917_v46 }
 0xa67   :  { %4029 = vrsqrt.f32 %v920_v32  ;;  %vm929_vm11 = vweird.f32 %v920_v32 }
 0xa6a   :  { %v913_v37 = vpop.xlane.xlu2 %912 }
 0xa6b   :  { %v918_v50 = vmul.f32 %v913_v37, %v4354_v12 }
 0xa6d   :  { %v4030_v30 = vpop.eup %4029  ;;  %v921_v51 = vadd.f32 1e-05, %v918_v50 }
 0xa6e   :  { %v924_v53 = vmul.f32 %v4030_v30, %v920_v32  ;;  %vm930_vm10 = vweird.f32 %v4030_v30 }
 0xa6f   :  { %4031 = vrsqrt.f32 %v921_v51  ;;  %vm931_vm6 = vmor %vm929_vm11, %vm930_vm10  ;;  %vm939_vm8 = vweird.f32 %v921_v51 }
 0xa70   :  { %v925_v55 = vmul.f32 %v4030_v30, %v924_v53 }
 0xa72   :  { %v926_v56 = vmul.f32 0.5, %v925_v55 }
 0xa74   :  { %v927_v57 = vsub.f32 1.5, %v926_v56 }
 0xa75   :  { %v4032_v58 = vpop.eup %4031 }
 0xa76   :  { %v928_v59 = vmul.f32 %v4030_v30, %v927_v57  ;;  %v934_v60 = vmul.f32 %v4032_v58, %v921_v51  ;;  %vm940_vm7 = vweird.f32 %v4032_v58 }
 0xa77   :  { %vm941_vm9 = vmor %vm939_vm8, %vm940_vm7  ;;  %vm5770_vm7 = vcmask 189568   ;;  %vm5771_vm8 = vcmask 255168  }
 0xa78   :  { %v935_v61 = vmul.f32 %v4032_v58, %v934_v60  ;;  %v932_v2 = vsel %vm931_vm6, %v4030_v30, %v928_v59  ;;  %vm5769_vm6 = vcmask 123968  }
 0xa79   :  { %v953_v35 = vmul.f32 %v932_v2, %v902_v21 }
 0xa7a   :  { %v936_v3 = vmul.f32 0.5, %v935_v61 }
 0xa7b   :  { %v957_v7 = vmul.f32 %v956_v52, %v953_v35 }
 0xa7c   :  { %v937_v62 = vsub.f32 1.5, %v936_v3 }
 0xa7d   :  { %v961_v9 = vadd.f32 %v960_v45, %v957_v7 }
 0xa7e   :  { %v938_v5 = vmul.f32 %v4032_v58, %v937_v62 }
 0xa80   :  { %v942_v6 = vsel %vm941_vm9, %v4032_v58, %v938_v5 }
 0xa81   :  { %v954_v8 = vmul.f32 %v942_v6, %v903_v34  ;;  %v4228_v6 = vld [vmem:[%s5738_s1] sm:$0xff] }
 0xa83   :  { %v958_v22 = vmul.f32 %v956_v52, %v954_v8 }
 0xa85   :  { %v962_v10 = vadd.f32 %v960_v45, %v958_v22 }
 0xa87   :  { %v964_v11 = vpack.c.bf16 %v962_v10, %v961_v9 }
 0xa89   :  { %3666 = vmatmul.msk.bf16.vlgmr.msrb.gmra.mxu0 %vm42_vm0, %v964_v11  ;;  %v4229_v11 = vld [vmem:[%s5738_s1 + $0x8] sm:$0xff] }
 0xac1   :  { %v916_v13 = vpop.xlane.xlu1 %915 }
 0xac2   :  { %v919_v15 = vmul.f32 %v916_v13, %v4354_v12 }
 0xac4   :  { %v922_v17 = vadd.f32 1e-05, %v919_v15 }
 0xac6   :  { %4033 = vrsqrt.f32 %v922_v17  ;;  %vm949_vm10 = vweird.f32 %v922_v17 }
 0xacc   :  { %v4034_v18 = vpop.eup %4033 }
 0xacd   :  { %v944_v20 = vmul.f32 %v4034_v18, %v922_v17  ;;  %vm950_vm9 = vweird.f32 %v4034_v18 }
 0xace   :  { %vm951_vm11 = vmor %vm949_vm10, %vm950_vm9 }
 0xacf   :  { %v945_v23 = vmul.f32 %v4034_v18, %v944_v20 }
 0xad1   :  { %v946_v24 = vmul.f32 0.5, %v945_v23 }
 0xad3   :  { %v947_v16 = vsub.f32 1.5, %v946_v24 }
 0xad5   :  { %v948_v25 = vmul.f32 %v4034_v18, %v947_v16 }
 0xad7   :  { %v952_v54 = vsel %vm951_vm11, %v4034_v18, %v948_v25 }
 0xad8   :  { %v955_v39 = vmul.f32 %v952_v54, %v4664_v36 }
 0xada   :  { %v959_v21 = vmul.f32 %v956_v52, %v955_v39 }
 0xadc   :  { %v963_v26 = vadd.f32 %v960_v45, %v959_v21 }
 0xade   :  { %v965_v4 = vpack.c.bf16 %v963_v26, %v963_v26 }
 0xae0   :  { %3667 = vmatmul.msk.bf16.gmra.mxu0 %vm42_vm0, %v965_v4 }
 0xb06   :  { %v993_v27 = vpop.f32.mrf.mxu0 }
 0xb0e   :  { %v995_v28 = vpop.f32.mrf.mxu0 }
 0xb0f   :  { %v4700_v34 = vpack.c.bf16 %v995_v28, %v993_v27 }
 0xb11   :  { %1006 = vrot.lane.b32.xlu1 %v4700_v34, %s4270_s21 }
 0xb5d   :  { %v998_v29 = vpop.f32.mrf.mxu0 }
 0xb5e   :  { %v4704_v31 = vpack.c.bf16 %v998_v29, %v998_v29 }
 0xb60   :  { %1112 = vrot.lane.b32.xlu1 %v4704_v31, %s4273_s24  ;;  %1116 = vrot.lane.b32.xlu2 %v4704_v31, %s4271_s22 }
 0xb61   :  { %1008 = vrot.lane.b32.xlu0 %v4704_v31, %s4270_s21 }
 0xb65   :  { %v1000_v1 = vpop.f32.mrf.mxu0 }
 0xb68   :  { %1354 = vrot.lane.b32.xlu1 %v4700_v34, %s4275_s10  ;;  %1236 = vrot.lane.b32.xlu2 %v4704_v31, %s4274_s9 }
 0xb69   :  { %1114 = vrot.lane.b32.xlu0 %v4700_v34, %s4271_s22 }
 0xb70   :  { %1232 = vrot.lane.b32.xlu1 %v4704_v31, %s4277_s12  ;;  %1234 = vrot.lane.b32.xlu2 %v4700_v34, %s4274_s9 }
 0xb71   :  { %1110 = vrot.lane.b32.xlu0 %v4700_v34, %s4273_s24 }
 0xb78   :  { %1075 = vrot.lane.b32.xlu1 %v4700_v34, %s5764_s23  ;;  %1350 = vrot.lane.b32.xlu2 %v4700_v34, %s4276_s11 }
 0xb79   :  { %1356 = vrot.lane.b32.xlu0 %v4704_v31, %s4275_s10 }
 0xb80   :  { %1185 = vrot.lane.b32.xlu2 %v4704_v31, %s5762_s13 }
 0xb81   :  { %1230 = vrot.lane.b32.xlu0 %v4700_v34, %s4277_s12 }
 0xb83   :  { %v1007_v46 = vpop.permute.xlu1 %1006 }
 0xb84   :  { %v1017_v37 = vsel %vm171_vm12, %v1007_v46, 0 }
 0xb89   :  { %1352 = vrot.lane.b32.xlu0 %v4704_v31, %s4276_s11 }
 0xb91   :  { %1077 = vrot.lane.b32.xlu0 %v4704_v31, %s5764_s23 }
 0xbba   :  { %v1117_v33 = vpop.permute.xlu2 %1116 }
 0xbbb   :  { %v1128_v36 = vsel %vm171_vm12, %v1117_v33, 0  ;;  %v4230_v33 = vld [vmem:[%s5738_s1 + $0x10] sm:$0x3] }
 0xbbc   :  { %1136 = vmatpush.bf16.xpose.msrb.mxu3 %v1128_v36 }
 0xbc2   :  { %v1237_v38 = vpop.permute.xlu2 %1236 }
 0xbc3   :  { %v1248_v30 = vsel %vm171_vm12, %v1237_v38, 0 }
 0xbca   :  { %v1235_v40 = vpop.permute.xlu2 %1234 }
 0xbcb   :  { %v1245_v53 = vsel %vm171_vm12, %v1235_v40, 0 }
 0xbd2   :  { %v1351_v41 = vpop.permute.xlu2 %1350  ;;  %v1113_v55 = vpop.permute.xlu1 %1112 }
 0xbd3   :  { %v1009_v42 = vpop.permute.xlu0 %1008 }
 0xbd4   :  { %v1020_v44 = vsel %vm171_vm12, %v1009_v42, 0 }
 0xbd5   :  { %1028 = vmatpush.bf16.xpose.msrb.mxu2 %v1020_v44 }
 0xbda   :  { %v1186_v47 = vpop.permute.xlu2 %1185  ;;  %v1355_v58 = vpop.permute.xlu1 %1354 }
 0xbdb   :  { %v1195_v48 = vsel %vm250_vm13, %v1186_v47, 0  ;;  %v1115_v32 = vpop.permute.xlu0 %1114  ;;  %v1365_v60 = vsel %vm171_vm12, %v1355_v58, 0 }
 0xbdc   :  { %v1125_v50 = vsel %vm171_vm12, %v1115_v32, 0  ;;  %1203 = vmatpush.bf16.msra.mxu0 %v1195_v48 }
 0xbdd   :  { %1029 = vmatpush.bf16.xpose.msrb.mxu2 %v1017_v37  ;;  %1137 = vmatpush.bf16.xpose.msrb.mxu3 %v1125_v50 }
 0xbe2   :  { %v1233_v2 = vpop.permute.xlu1 %1232 }
 0xbe3   :  { %v1111_v51 = vpop.permute.xlu0 %1110 }
 0xbe4   :  { %3668 = vmatmul.msk.bf16.vlgmr.msrb.gmra.mxu2 %vm171_vm12, %v4700_v34  ;;  %3672 = vmatmul.msk.bf16.vlgmr.msrb.gmra.mxu3 %vm171_vm12, %v1111_v51 }
 0xbe5   :  { %1256 = vmatpush.bf16.xpose.msra.mxu2 %v1248_v30 }
 0xbea   :  { %v1076_v52 = vpop.permute.xlu1 %1075 }
 0xbeb   :  { %v1357_v56 = vpop.permute.xlu0 %1356 }
 0xbec   :  { %v1368_v57 = vsel %vm171_vm12, %v1357_v56, 0 }
 0xbed   :  { %1257 = vmatpush.bf16.xpose.msra.mxu2 %v1245_v53  ;;  %1376 = vmatpush.bf16.xpose.msra.mxu3 %v1368_v57 }
 0xbf3   :  { %v1231_v59 = vpop.permute.xlu0 %1230 }
 0xbf4   :  { %3669 = vmatmul.msk.bf16.gmra.mxu2 %vm171_vm12, %v4704_v31  ;;  %3673 = vmatmul.msk.bf16.gmra.mxu3 %vm171_vm12, %v1113_v55 }
 0xbf5   :  { %1377 = vmatpush.bf16.xpose.msra.mxu3 %v1365_v60 }
 0xbfb   :  { %v1353_v61 = vpop.permute.xlu0 %1352 }
 0xc03   :  { %v1078_v3 = vpop.permute.xlu0 %1077 }
 0xc04   :  { %v1087_v62 = vsel %vm250_vm13, %v1078_v3, 0  ;;  %3676 = vmatmul.msk.bf16.vlgmr.msra.gmra.mxu2 %vm171_vm12, %v1231_v59  ;;  %3680 = vmatmul.msk.bf16.vlgmr.msra.gmra.mxu3 %vm171_vm12, %v1351_v41 }
 0xc05   :  { %1095 = vmatpush.bf16.msrb.mxu1 %v1087_v62 }
 0xc09   :  { %1096 = vmatpush.bf16.msrb.mxu1 %v1076_v52 }
 0xc14   :  { %3677 = vmatmul.msk.bf16.gmra.mxu2 %vm171_vm12, %v1233_v2  ;;  %3681 = vmatmul.msk.bf16.gmra.mxu3 %vm171_vm12, %v1353_v61 }
 0xc67   :  { %v1031_v35 = vpop.f32.mrf.mxu2  ;;  %v1139_v5 = vpop.f32.mrf.mxu3 }
 0xc68   :  { %v1032_v7 = vadd.f32 %v4228_v6, %v1031_v35  ;;  %v1140_v8 = vadd.f32 %v4228_v6, %v1139_v5 }
 0xc6a   :  { %v1040_v45 = vsel %vm202_vm14, %v1032_v7, -inf  ;;  %v1148_v22 = vsel %vm202_vm14, %v1140_v8, -inf }
 0xc6b   :  { %1041 = vmax.xlane.f32.xlu2 %v1040_v45  ;;  %1149 = vmax.xlane.f32.xlu0 %v1148_v22 }
 0xc6f   :  { %v1033_v9 = vpop.f32.mrf.mxu2  ;;  %v1141_v10 = vpop.f32.mrf.mxu3 }
 0xc70   :  { %v1034_v13 = vadd.f32 %v4229_v11, %v1033_v9  ;;  %v1142_v15 = vadd.f32 %v4229_v11, %v1141_v10 }
 0xc72   :  { %v1043_v17 = vsel %vm202_vm14, %v1034_v13, -inf  ;;  %v1151_v18 = vsel %vm202_vm14, %v1142_v15, -inf }
 0xc73   :  { %1044 = vmax.xlane.f32.xlu1 %v1043_v17  ;;  %1152 = vmax.xlane.f32.xlu2 %v1151_v18 }
 0xc77   :  { %v1036_v20 = vpop.f32.mrf.mxu2  ;;  %v1144_v23 = vpop.f32.mrf.mxu3 }
 0xc78   :  { %v1145_v42 = vadd.f32 %v4230_v33, %v1144_v23  ;;  %v1037_v48 = vadd.f32 %v4230_v33, %v1036_v20 }
 0xc7a   :  { %v1154_v44 = vsel %vm209_vm15, %v1145_v42, -inf  ;;  %v1046_v32 = vsel %vm209_vm15, %v1037_v48, -inf }
 0xc7f   :  { %v1038_v24 = vpop.f32.mrf.mxu2  ;;  %v1146_v16 = vpop.f32.mrf.mxu3  ;;  %1183 = vrot.lane.b32.xlu0 %v4700_v34, %s5762_s13 }
 0xc87   :  { %v1259_v25 = vpop.f32.mrf.mxu2  ;;  %v1379_v54 = vpop.f32.mrf.mxu3 }
 0xc88   :  { %v4770_v39 = vadd.f32 %v4228_v6, %v1259_v25  ;;  %v4788_v46 = vadd.f32 %v4228_v6, %v1379_v54 }
 0xc8a   :  { %v1268_v21 = vsel %vm202_vm14, %v4770_v39, -inf  ;;  %v1388_v47 = vsel %vm202_vm14, %v4788_v46, -inf }
 0xc8b   :  { %1269 = vmax.xlane.f32.xlu2 %v1268_v21 }
 0xc8c   :  { %1305 = vrot.lane.b32.xlu1 %v4704_v31, %s5760_s14 }
 0xc8f   :  { %v1261_v26 = vpop.f32.mrf.mxu2  ;;  %v1381_v4 = vpop.f32.mrf.mxu3 }
 0xc90   :  { %v4776_v27 = vadd.f32 %v4229_v11, %v1381_v4  ;;  %v4793_v37 = vadd.f32 %v4229_v11, %v1261_v26 }
 0xc92   :  { %v1391_v28 = vsel %vm202_vm14, %v4776_v27, -inf  ;;  %v1271_v50 = vsel %vm202_vm14, %v4793_v37, -inf }
 0xc93   :  { %1392 = vmax.xlane.f32.xlu2 %v1391_v28 }
 0xc97   :  { %v1264_v29 = vpop.f32.mrf.mxu2  ;;  %v1384_v1 = vpop.f32.mrf.mxu3 }
 0xc98   :  { %v4783_v36 = vadd.f32 %v4230_v33, %v1384_v1  ;;  %v4797_v30 = vadd.f32 %v4230_v33, %v1264_v29 }
 0xc9a   :  { %v1394_v38 = vsel %vm209_vm15, %v4783_v36, -inf  ;;  %v1274_v51 = vsel %vm209_vm15, %v4797_v30, -inf }
 0xc9b   :  { %1395 = vmax.xlane.f32.xlu2 %v1394_v38 }
 0xc9f   :  { %v1266_v40 = vpop.f32.mrf.mxu2  ;;  %v1386_v41 = vpop.f32.mrf.mxu3 }
 0xca9   :  { %1155 = vmax.xlane.f32.xlu0 %v1154_v44 }
 0xcb1   :  { %1389 = vmax.xlane.f32.xlu0 %v1388_v47 }
 0xcb6   :  { %1047 = vmax.xlane.f32.xlu1 %v1046_v32 }
 0xcbe   :  { %1272 = vmax.xlane.f32.xlu1 %v1271_v50 }
 0xcc6   :  { %1275 = vmax.xlane.f32.xlu1 %v1274_v51 }
 0xcde   :  { %v1042_v53 = vpop.xlane.xlu2 %1041  ;;  %v1150_v55 = vpop.xlane.xlu0 %1149 }
 0xcdf   :  { %v1049_v56 = vsub.f32 %v1032_v7, %v1042_v53  ;;  %v1157_v57 = vsub.f32 %v1140_v8, %v1150_v55 }
 0xce1   :  { %v1052_v58 = vmul.f32 1.442695, %v1049_v56  ;;  %v1160_v59 = vmul.f32 1.442695, %v1157_v57 }
 0xce3   :  { %4035 = vpow2.f32 %v1052_v58 }
 0xce4   :  { %4037 = vpow2.f32 %v1160_v59 }
 0xce6   :  { %v1045_v60 = vpop.xlane.xlu1 %1044  ;;  %v1153_v61 = vpop.xlane.xlu2 %1152 }
 0xce7   :  { %v1050_v2 = vsub.f32 %v1034_v13, %v1045_v60  ;;  %v1158_v3 = vsub.f32 %v1142_v15, %v1153_v61 }
 0xce9   :  { %v4801_v62 = vpop.eup %4035  ;;  %v1054_v52 = vmul.f32 1.442695, %v1050_v2  ;;  %v1162_v35 = vmul.f32 1.442695, %v1158_v3 }
 0xcea   :  { %v4803_v5 = vpop.eup %4037  ;;  %v1058_v6 = vsel %vm202_vm14, %v4801_v62, 0.0 }
 0xceb   :  { %4039 = vpow2.f32 %v1054_v52  ;;  %1059 = vadd.xlane.f32.xlu1 %v1058_v6  ;;  %v1166_v7 = vsel %vm202_vm14, %v4803_v5, 0.0 }
 0xcec   :  { %4041 = vpow2.f32 %v1162_v35  ;;  %1167 = vadd.xlane.f32.xlu2 %v1166_v7 }
 0xcf1   :  { %v4809_v8 = vpop.eup %4039  ;;  %v1184_v45 = vpop.permute.xlu0 %1183 }
 0xcf2   :  { %v4811_v22 = vpop.eup %4041  ;;  %1204 = vmatpush.bf16.msra.mxu0 %v1184_v45  ;;  %v1061_v9 = vsel %vm202_vm14, %v4809_v8, 0.0 }
 0xcf3   :  { %1062 = vadd.xlane.f32.xlu0 %v1061_v9  ;;  %v1169_v10 = vsel %vm202_vm14, %v4811_v22, 0.0 }
 0xcf4   :  { %1170 = vadd.xlane.f32.xlu1 %v1169_v10 }
 0xcfe   :  { %v1306_v11 = vpop.permute.xlu1 %1305  ;;  %v1270_v15 = vpop.xlane.xlu2 %1269 }
 0xcff   :  { %v1315_v13 = vsel %vm250_vm13, %v1306_v11, 0  ;;  %v1277_v20 = vsub.f32 %v4770_v39, %v1270_v15 }
 0xd00   :  { %1323 = vmatpush.bf16.msra.mxu1 %v1315_v13 }
 0xd01   :  { %v1280_v24 = vmul.f32 1.442695, %v1277_v20 }
 0xd06   :  { %v1393_v16 = vpop.xlane.xlu2 %1392 }
 0xd07   :  { %v1398_v54 = vsub.f32 %v4776_v27, %v1393_v16 }
 0xd09   :  { %v1402_v29 = vmul.f32 1.442695, %v1398_v54 }
 0xd0e   :  { %v1396_v55 = vpop.xlane.xlu2 %1395 }
 0xd0f   :  { %v1399_v58 = vsub.f32 %v4783_v36, %v1396_v55 }
 0xd11   :  { %v1404_v61 = vmul.f32 1.442695, %v1399_v58 }
 0xd1c   :  { %v1156_v17 = vpop.xlane.xlu0 %1155 }
 0xd1d   :  { %v1159_v18 = vsub.f32 %v1145_v42, %v1156_v17 }
 0xd1f   :  { %v1164_v23 = vmul.f32 1.442695, %v1159_v18 }
 0xd21   :  { %4043 = vpow2.f32 %v1164_v23 }
 0xd22   :  { %4045 = vpow2.f32 %v1280_v24 }
 0xd24   :  { %v1390_v26 = vpop.xlane.xlu0 %1389 }
 0xd25   :  { %v1397_v1 = vsub.f32 %v4788_v46, %v1390_v26 }
 0xd27   :  { %v4819_v25 = vpop.eup %4043  ;;  %v1400_v38 = vmul.f32 1.442695, %v1397_v1 }
 0xd28   :  { %v1172_v21 = vsel %vm209_vm15, %v4819_v25, 0.0  ;;  %v4825_v33 = vpop.eup %4045 }
 0xd29   :  { %v1048_v4 = vpop.xlane.xlu1 %1047  ;;  %1173 = vadd.xlane.f32.xlu0 %v1172_v21  ;;  %v1286_v40 = vsel %vm202_vm14, %v4825_v33, 0.0 }
 0xd2a   :  { %v1051_v28 = vsub.f32 %v1037_v48, %v1048_v4 }
 0xd2c   :  { %v1056_v39 = vmul.f32 1.442695, %v1051_v28 }
 0xd2e   :  { %4047 = vpow2.f32 %v1056_v39 }
 0xd2f   :  { %4049 = vpow2.f32 %v1402_v29 }
 0xd30   :  { %4051 = vpow2.f32 %v1400_v38 }
 0xd31   :  { %v1273_v27 = vpop.xlane.xlu1 %1272  ;;  %1287 = vadd.xlane.f32.xlu0 %v1286_v40 }
 0xd32   :  { %v1278_v41 = vsub.f32 %v4793_v37, %v1273_v27 }
 0xd34   :  { %v4830_v42 = vpop.eup %4047  ;;  %v1282_v44 = vmul.f32 1.442695, %v1278_v41 }
 0xd35   :  { %v4832_v47 = vpop.eup %4049  ;;  %v1064_v46 = vsel %vm209_vm15, %v4830_v42, 0.0 }
 0xd36   :  { %4053 = vpow2.f32 %v1282_v44  ;;  %1065 = vadd.xlane.f32.xlu2 %v1064_v46  ;;  %v1409_v48 = vsel %vm202_vm14, %v4832_v47, 0.0  ;;  %v4838_v32 = vpop.eup %4051 }
 0xd37   :  { %v1406_v51 = vsel %vm202_vm14, %v4838_v32, 0.0 }
 0xd39   :  { %1410 = vadd.xlane.f32.xlu0 %v1409_v48  ;;  %v1276_v53 = vpop.xlane.xlu1 %1275 }
 0xd3c   :  { %v4840_v50 = vpop.eup %4053 }
 0xd3d   :  { %v1289_v37 = vsel %vm202_vm14, %v4840_v50, 0.0 }
 0xd3e   :  { %1290 = vadd.xlane.f32.xlu1 %v1289_v37  ;;  %1407 = vadd.xlane.f32.xlu2 %v1406_v51 }
 0xd4d   :  { %1303 = vrot.lane.b32.xlu0 %v4700_v34, %s5760_s14 }
 0xd56   :  { %1425 = vrot.lane.b32.xlu2 %v4704_v31, %s5758_s15  ;;  %v1279_v31 = vsub.f32 %v4797_v30, %v1276_v53 }
 0xd57   :  { %1423 = vrot.lane.b32.xlu1 %v4700_v34, %s5758_s15 }
 0xd58   :  { %v1284_v9 = vmul.f32 1.442695, %v1279_v31 }
 0xd5e   :  { %v1060_v56 = vpop.xlane.xlu1 %1059 }
 0xd5f   :  { %v1168_v57 = vpop.xlane.xlu2 %1167  ;;  %4055 = vrcp.f32 %v1060_v56 }
 0xd60   :  { %4057 = vrcp.f32 %v1168_v57 }
 0xd65   :  { %v4056_v2 = vpop.eup %4055 }
 0xd66   :  { %v1063_v59 = vpop.xlane.xlu0 %1062  ;;  %v4058_v3 = vpop.eup %4057  ;;  %v1070_v34 = vmul.f32 %v4056_v2, %v4801_v62 }
 0xd67   :  { %v1171_v60 = vpop.xlane.xlu1 %1170  ;;  %4059 = vrcp.f32 %v1063_v59  ;;  %v1178_v36 = vmul.f32 %v4058_v3, %v4803_v5 }
 0xd68   :  { %4061 = vrcp.f32 %v1171_v60 }
 0xd69   :  { %4063 = vpow2.f32 %v1404_v61 }
 0xd6a   :  { %4065 = vpow2.f32 %v1284_v9 }
 0xd6d   :  { %v4060_v52 = vpop.eup %4059 }
 0xd6e   :  { %v4062_v35 = vpop.eup %4061  ;;  %v1071_v6 = vmul.f32 %v4060_v52, %v4809_v8 }
 0xd6f   :  { %v1179_v7 = vmul.f32 %v4062_v35, %v4811_v22  ;;  %v4064_v11 = vpop.eup %4063 }
 0xd70   :  { %v1073_v45 = vpack.c.bf16 %v1071_v6, %v1070_v34  ;;  %v1412_v30 = vsel %vm209_vm15, %v4064_v11, 0.0  ;;  %v4066_v13 = vpop.eup %4065 }
 0xd71   :  { %v1181_v10 = vpack.c.bf16 %v1179_v7, %v1178_v36  ;;  %v1292_v62 = vsel %vm209_vm15, %v4066_v13, 0.0 }
 0xd72   :  { %3670 = vmatmul.msk.bf16.vlgmr.msrb.gmra.mxu1 %vm202_vm14, %v1073_v45 }
 0xd73   :  { %3674 = vmatmul.msk.bf16.vlgmr.msra.gmra.mxu0 %vm202_vm14, %v1181_v10 }
 0xd77   :  { %1413 = vadd.xlane.f32.xlu0 %v1412_v30 }
 0xd7f   :  { %1293 = vadd.xlane.f32.xlu2 %v1292_v62 }
 0xd8b   :  { %1478 = vrot.lane.b32.xlu0 %v4675_v43, %s5756_s17 }
 0xd9c   :  { %v1174_v5 = vpop.xlane.xlu0 %1173 }
 0xd9d   :  { %4067 = vrcp.f32 %v1174_v5 }
 0xda3   :  { %v4068_v8 = vpop.eup %4067 }
 0xda4   :  { %v1180_v22 = vmul.f32 %v4068_v8, %v4819_v25  ;;  %v1288_v18 = vpop.xlane.xlu0 %1287 }
 0xda6   :  { %v1182_v15 = vpack.c.bf16 %v1180_v22, %v1180_v22 }
 0xda8   :  { %3675 = vmatmul.msk.bf16.gmra.mxu0 %vm202_vm14, %v1182_v15 }
 0xda9   :  { %v1066_v17 = vpop.xlane.xlu2 %1065 }
 0xdaa   :  { %4069 = vrcp.f32 %v1066_v17 }
 0xdac   :  { %v1411_v43 = vpop.xlane.xlu0 %1410 }
 0xdb0   :  { %v4070_v20 = vpop.eup %4069 }
 0xdb1   :  { %v1408_v23 = vpop.xlane.xlu2 %1407  ;;  %v1072_v24 = vmul.f32 %v4070_v20, %v4830_v42  ;;  %v1291_v16 = vpop.xlane.xlu1 %1290 }
 0xdb2   :  { %4071 = vrcp.f32 %v1291_v16 }
 0xdb3   :  { %v1074_v54 = vpack.c.bf16 %v1072_v24, %v1072_v24  ;;  %4073 = vrcp.f32 %v1288_v18 }
 0xdb4   :  { %4075 = vrcp.f32 %v1408_v23  ;;  %v1475_v23 = vperm.slane %v4692_v63, 4 }
 0xdb5   :  { %3671 = vmatmul.msk.bf16.gmra.mxu1 %vm202_vm14, %v1074_v54  ;;  %4077 = vrcp.f32 %v1411_v43 }
 0xdb8   :  { %v4072_v26 = vpop.eup %4071 }
 0xdb9   :  { %v1426_v21 = vpop.permute.xlu2 %1425  ;;  %v4074_v4 = vpop.eup %4073  ;;  %v1299_v28 = vmul.f32 %v4072_v26, %v4840_v50 }
 0xdba   :  { %v1435_v25 = vsel %vm250_vm13, %v1426_v21, 0  ;;  %v1298_v1 = vmul.f32 %v4074_v4, %v4825_v33  ;;  %v4076_v38 = vpop.eup %4075 }
 0xdbb   :  { %1443 = vmatpush.bf16.msrb.mxu0 %v1435_v25  ;;  %v4078_v40 = vpop.eup %4077  ;;  %v1418_v27 = vmul.f32 %v4076_v38, %v4838_v32 }
 0xdbc   :  { %v1301_v39 = vpack.c.bf16 %v1299_v28, %v1298_v1  ;;  %v1419_v41 = vmul.f32 %v4078_v40, %v4832_v47 }
 0xdbe   :  { %v1421_v44 = vpack.c.bf16 %v1419_v41, %v1418_v27 }
 0xdbf   :  { %v1304_v29 = vpop.permute.xlu0 %1303 }
 0xdc0   :  { %1324 = vmatpush.bf16.msra.mxu1 %v1304_v29 }
 0xdc5   :  { %3678 = vmatmul.msk.bf16.vlgmr.msra.gmra.mxu1 %vm202_vm14, %v1301_v39 }
 0xdc9   :  { %v1424_v42 = vpop.permute.xlu1 %1423 }
 0xdca   :  { %1444 = vmatpush.bf16.msrb.mxu0 %v1424_v42 }
 0xdcd   :  { %3682 = vmatmul.msk.bf16.vlgmr.msrb.gmra.mxu0 %vm202_vm14, %v1421_v44 }
 0xdea   :  { %v1414_v46 = vpop.xlane.xlu0 %1413 }
 0xdeb   :  { %4079 = vrcp.f32 %v1414_v46 }
 0xdef   :  { %v1098_v48 = vpop.f32.mrf.mxu1 }
 0xdf0   :  { %1107 = vst.msk [vmem:[#allocation2] sm:$0xff] %vm171_vm12, %v1098_v48  ;;  %v1206_v33 = vpop.f32.mrf.mxu0 }
 0xdf1   :  { %v4080_v50 = vpop.eup %4079  ;;  %1218 = vrot.lane.b32.xlu1 %v1206_v33, %s5766_s29 }
 0xdf2   :  { %v1294_v37 = vpop.xlane.xlu2 %1293  ;;  %v1420_v51 = vmul.f32 %v4080_v50, %v4064_v11 }
 0xdf3   :  { %4081 = vrcp.f32 %v1294_v37 }
 0xdf4   :  { %v1422_v32 = vpack.c.bf16 %v1420_v51, %v1420_v51 }
 0xdf6   :  { %3683 = vmatmul.msk.bf16.gmra.mxu0 %vm202_vm14, %v1422_v32 }
 0xdf7   :  { %v1100_v47 = vpop.f32.mrf.mxu1 }
 0xdf8   :  { %1108 = vst.msk [vmem:[#allocation2 + $0x8] sm:$0xff] %vm171_vm12, %v1100_v47  ;;  %v1208_v53 = vpop.f32.mrf.mxu0 }
 0xdf9   :  { %v4082_v55 = vpop.eup %4081  ;;  %1220 = vrot.lane.b32.xlu1 %v1208_v53, %s5766_s29 }
 0xdfa   :  { %v1300_v56 = vmul.f32 %v4082_v55, %v4066_v13 }
 0xdfc   :  { %v1302_v57 = vpack.c.bf16 %v1300_v56, %v1300_v56  ;;  %v3909_v56 = vld [vmem:[%s5739_s2 + $0x34] sm:$0xf] }
 0xdfd   :  { %v1479_v9 = vpop.permute.xlu0 %1478 }
 0xdfe   :  { %3679 = vmatmul.msk.bf16.gmra.mxu1 %vm202_vm14, %v1302_v57  ;;  %1494 = vmatpush.bf16.msrb.mxu2 %v1479_v9  ;;  %v3691_v57 = vld [vmem:[%s5739_s2 + $0x38] sm:$0xf0] }
 0xe25   :  { %v1211_v58 = vpop.f32.mrf.mxu0 }
 0xe2d   :  { %v1213_v59 = vpop.f32.mrf.mxu0 }
 0xe32   :  { %v1103_v60 = vpop.f32.mrf.mxu1 }
 0xe33   :  { %1109 = vst.msk [vmem:[#allocation2 + $0x10] sm:$0x3] %vm274_vm2, %v1103_v60 }
 0xe3a   :  { %v1105_v61 = vpop.f32.mrf.mxu1 }
 0xe3b   :  { %v3907_v61 = vld [vmem:[%s5739_s2 + $0x24] sm:$0xf] }
 0xe42   :  { %v1326_v2 = vpop.f32.mrf.mxu1 }
 0xe43   :  { %1338 = vrot.lane.b32.xlu1 %v1326_v2, %s5767_s30  ;;  %v3687_v2 = vld [vmem:[%s5739_s2 + $0x28] sm:$0xf0] }
 0xe4a   :  { %v1446_v3 = vpop.f32.mrf.mxu0  ;;  %v1328_v52 = vpop.f32.mrf.mxu1 }
 0xe4b   :  { %1458 = vrot.lane.b32.xlu1 %v1446_v3, %s5768_s16 }
 0xe52   :  { %v1448_v31 = vpop.f32.mrf.mxu0 }
 0xe53   :  { %1340 = vrot.lane.b32.xlu1 %v1328_v52, %s5767_s30  ;;  %1460 = vrot.lane.b32.xlu2 %v1448_v31, %s5768_s16  ;;  %v3690_v52 = vor.u32 %v3907_v61, %v3687_v2 }
 0xe5b   :  { %1476 = vrot.lane.b32.xlu1 %v4685_v49, %s5756_s17 }
 0xe63   :  { %v1219_v35 = vpop.permute.xlu1 %1218  ;;  %1222 = vrot.lane.b32.xlu1 %v1211_v58, %s5766_s29  ;;  %v3694_v58 = vor.u32 %v3909_v56, %v3691_v57 }
 0xe64   :  { %1227 = vst.msk [vmem:[#allocation2] sm:$0xff] %vm393_vm3, %v1219_v35 }
 0xe65   :  { %1610 = vmatpush.bf16.msrb.mxu1 %v3694_v58 }
 0xe69   :  { %1611 = vmatpush.bf16.msrb.mxu1 %v3690_v52 }
 0xe6b   :  { %v1221_v34 = vpop.permute.xlu1 %1220 }
 0xe6c   :  { %1228 = vst.msk [vmem:[#allocation2 + $0x8] sm:$0xff] %vm393_vm3, %v1221_v34 }
 0xe73   :  { %v1451_v6 = vpop.f32.mrf.mxu0 }
 0xe74   :  { %1462 = vrot.lane.b32.xlu0 %v1451_v6, %s5768_s16 }
 0xe7b   :  { %v1331_v36 = vpop.f32.mrf.mxu1  ;;  %v1453_v7 = vpop.f32.mrf.mxu0 }
 0xe7c   :  { %1342 = vrot.lane.b32.xlu1 %v1331_v36, %s5767_s30 }
 0xe83   :  { %v1333_v45 = vpop.f32.mrf.mxu1 }
 0xead   :  { %v1461_v30 = vpop.permute.xlu2 %1460 }
 0xeb5   :  { %v1339_v10 = vpop.permute.xlu1 %1338 }
 0xeb6   :  { %1347 = vst.msk [vmem:[#allocation2] sm:$0xff] %vm515_vm4, %v1339_v10 }
 0xebd   :  { %v1459_v49 = vpop.permute.xlu1 %1458 }
 0xebe   :  { %1467 = vst.msk [vmem:[#allocation2] sm:$0xff] %vm637_vm5, %v1459_v49 }
 0xec5   :  { %v1341_v11 = vpop.permute.xlu1 %1340  ;;  %v1470_v62 = vld [vmem:[#allocation2] sm:$0xff] }
 0xec6   :  { %1348 = vst.msk [vmem:[#allocation2 + $0x8] sm:$0xff] %vm515_vm4, %v1341_v11 }
 0xec7   :  { %1468 = vst.msk [vmem:[#allocation2 + $0x8] sm:$0xff] %vm637_vm5, %v1461_v30 }
 0xecd   :  { %v1477_v13 = vpop.permute.xlu1 %1476 }
 0xece   :  { %1495 = vmatpush.bf16.msrb.mxu2 %v1477_v13  ;;  %v1471_v5 = vld [vmem:[#allocation2 + $0x8] sm:$0xff] }
 0xecf   :  { %v1473_v8 = vpack.c.bf16 %v1471_v5, %v1470_v62 }
 0xed1   :  { %3684 = vmatmul.msk.bf16.vlgmr.msrb.gmra.mxu2 %vm42_vm0, %v1473_v8  ;;  %v1575_v8 = vperm.slane %v4692_v63, 2 }
 0xed5   :  { %v1223_v22 = vpop.permute.xlu1 %1222 }
 0xed6   :  { %1229 = vst.msk [vmem:[#allocation2 + $0x10] sm:$0x3] %vm5769_vm6, %v1223_v22 }
 0xee6   :  { %v1463_v17 = vpop.permute.xlu0 %1462 }
 0xeee   :  { %v1343_v15 = vpop.permute.xlu1 %1342 }
 0xeef   :  { %1349 = vst.msk [vmem:[#allocation2 + $0x10] sm:$0x3] %vm5770_vm7, %v1343_v15 }
 0xef0   :  { %1469 = vst.msk [vmem:[#allocation2 + $0x10] sm:$0x3] %vm5771_vm8, %v1463_v17 }
 0xef7   :  { %v1472_v18 = vld [vmem:[#allocation2 + $0x10] sm:$0x3] }
 0xef8   :  { %v1474_v20 = vpack.c.bf16 %v1472_v18, %v1472_v18 }
 0xefa   :  { %3685 = vmatmul.msk.bf16.gmra.mxu2 %vm42_vm0, %v1474_v20  ;;  %v1579_v20 = vperm.slane %v4692_v63, 3 }
 0xf54   :  { %v1497_v24 = vpop.f32.mrf.mxu2 }
 0xf55   :  { %v1498_v16 = vadd.f32 %v1497_v24, %v1475_v23 }
 0xf57   :  { %v4904_v54 = vadd.f32 %v1498_v16, %v4642_v14 }
 0xf59   :  { %v1509_v43 = vsel %vm42_vm0, %v4904_v54, 0.0 }
 0xf5a   :  { %1510 = vadd.xlane.f32.xlu2 %v1509_v43 }
 0xf5c   :  { %v1499_v21 = vpop.f32.mrf.mxu2 }
 0xf5d   :  { %v1500_v25 = vadd.f32 %v1499_v21, %v1475_v23 }
 0xf5f   :  { %v4909_v26 = vadd.f32 %v1500_v25, %v4647_v19 }
 0xf61   :  { %v1512_v4 = vsel %vm42_vm0, %v4909_v26, 0.0 }
 0xf62   :  { %1513 = vadd.xlane.f32.xlu1 %v1512_v4 }
 0xf7d   :  { %v1502_v28 = vpop.f32.mrf.mxu2 }
 0xf7e   :  { %v1503_v29 = vadd.f32 %v1502_v28, %v1475_v23 }
 0xf80   :  { %v4914_v1 = vadd.f32 %v1503_v29, %v4652_v0 }
 0xf82   :  { %v1515_v39 = vsel %vm49_vm1, %v4914_v1, 0.0 }
 0xf83   :  { %1516 = vadd.xlane.f32.xlu0 %v1515_v39 }
 0xf85   :  { %v1504_v38 = vpop.f32.mrf.mxu2 }
 0xfcd   :  { %v1511_v40 = vpop.xlane.xlu2 %1510 }
 0xfce   :  { %v1518_v27 = vmul.f32 %v1511_v40, %v4354_v12 }
 0xfd0   :  { %v1521_v41 = vsub.f32 %v4904_v54, %v1518_v27 }
 0xfd2   :  { %v1524_v42 = vmul.f32 %v1521_v41, %v1521_v41 }
 0xfd4   :  { %v1527_v44 = vsel %vm42_vm0, %v1524_v42, 0.0 }
 0xfd5   :  { %v1514_v46 = vpop.xlane.xlu1 %1513  ;;  %1528 = vadd.xlane.f32.xlu2 %v1527_v44 }
 0xfd6   :  { %v1519_v48 = vmul.f32 %v1514_v46, %v4354_v12 }
 0xfd8   :  { %v1522_v33 = vsub.f32 %v4909_v26, %v1519_v48 }
 0xfda   :  { %v1525_v50 = vmul.f32 %v1522_v33, %v1522_v33 }
 0xfdc   :  { %v1530_v37 = vsel %vm42_vm0, %v1525_v50, 0.0  ;;  %v3913_v50 = vld [vmem:[%s5740_s3 + $0x30] sm:$0xff] }
 0xfdd   :  { %1531 = vadd.xlane.f32.xlu1 %v1530_v37  ;;  %v3912_v37 = vld [vmem:[%s5740_s3 + $0x28] sm:$0xff] }
 0xff6   :  { %v1517_v51 = vpop.xlane.xlu0 %1516 }
 0xff7   :  { %v1520_v32 = vmul.f32 %v1517_v51, %v4354_v12  ;;  %v3911_v51 = vld [vmem:[%s5740_s3 + $0x20] sm:$0xff] }
 0xff9   :  { %v4926_v47 = vsub.f32 %v4914_v1, %v1520_v32  ;;  %v3958_v32 = vld [vmem:[%s5742_s5 + $0x1] ss:$0 sm:$0xff] }
 0xffb   :  { %v1526_v53 = vmul.f32 %v4926_v47, %v4926_v47 }
 0xffd   :  { %v1533_v55 = vsel %vm49_vm1, %v1526_v53, 0.0 }
 0xffe   :  { %1534 = vadd.xlane.f32.xlu0 %v1533_v55 }
0x1048   :  { %v1529_v59 = vpop.xlane.xlu2 %1528 }
0x1049   :  { %v1536_v60 = vmul.f32 %v1529_v59, %v4354_v12 }
0x104b   :  { %v1539_v3 = vadd.f32 1e-05, %v1536_v60 }
0x104d   :  { %4083 = vrsqrt.f32 %v1539_v3  ;;  %vm1548_vm10 = vweird.f32 %v1539_v3 }
0x1050   :  { %v1532_v31 = vpop.xlane.xlu1 %1531 }
0x1051   :  { %v1537_v35 = vmul.f32 %v1532_v31, %v4354_v12 }
0x1053   :  { %v4084_v34 = vpop.eup %4083  ;;  %v1540_v6 = vadd.f32 1e-05, %v1537_v35 }
0x1054   :  { %v1543_v36 = vmul.f32 %v4084_v34, %v1539_v3  ;;  %vm1549_vm9 = vweird.f32 %v4084_v34 }
0x1055   :  { %4085 = vrsqrt.f32 %v1540_v6  ;;  %vm1550_vm11 = vmor %vm1548_vm10, %vm1549_vm9  ;;  %vm1558_vm7 = vweird.f32 %v1540_v6 }
0x1056   :  { %v1544_v7 = vmul.f32 %v4084_v34, %v1543_v36 }
0x1058   :  { %v1545_v45 = vmul.f32 0.5, %v1544_v7 }
0x105a   :  { %v1546_v9 = vsub.f32 1.5, %v1545_v45 }
0x105b   :  { %v4086_v10 = vpop.eup %4085 }
0x105c   :  { %v1547_v49 = vmul.f32 %v4084_v34, %v1546_v9  ;;  %v1553_v11 = vmul.f32 %v4086_v10, %v1540_v6  ;;  %vm1559_vm6 = vweird.f32 %v4086_v10 }
0x105d   :  { %vm1560_vm8 = vmor %vm1558_vm7, %vm1559_vm6  ;;  %vm5772_vm6 = vcmask 523264  }
0x105e   :  { %v1554_v30 = vmul.f32 %v4086_v10, %v1553_v11  ;;  %v1551_v13 = vsel %vm1550_vm11, %v4084_v34, %v1547_v49  ;;  %vm5773_vm7 = vmmov %vm5772_vm6 }
0x105f   :  { %v1572_v22 = vmul.f32 %v1551_v13, %v1521_v41 }
0x1060   :  { %v1555_v62 = vmul.f32 0.5, %v1554_v30 }
0x1061   :  { %v1576_v18 = vmul.f32 %v1575_v8, %v1572_v22 }
0x1062   :  { %v1556_v5 = vsub.f32 1.5, %v1555_v62 }
0x1063   :  { %v1580_v43 = vadd.f32 %v1579_v20, %v1576_v18 }
0x1064   :  { %v1557_v15 = vmul.f32 %v4086_v10, %v1556_v5 }
0x1066   :  { %v1561_v17 = vsel %vm1560_vm8, %v4086_v10, %v1557_v15 }
0x1067   :  { %v1573_v23 = vmul.f32 %v1561_v17, %v1522_v33  ;;  %v3914_v33 = vld [vmem:[%s5740_s3 + $0x38] sm:$0xff] }
0x1068   :  { %1695 = vmatpush.bf16.msrb.mxu3 %v3914_v33  ;;  %v4285_v33 = vmov 0  }
0x1069   :  { %v1577_v24 = vmul.f32 %v1575_v8, %v1573_v23  ;;  %3955 = vset.pattern.permute.xlu1 %v4285_v33  ;;  %3956 = vset.pattern.permute.xlu0 %v4285_v33 }
0x106a   :  { %3954 = vset.pattern.permute.xlu2 %v4285_v33 }
0x106b   :  { %v1581_v16 = vadd.f32 %v1579_v20, %v1577_v24 }
0x106c   :  { %1696 = vmatpush.bf16.msrb.mxu3 %v3913_v50  ;;  %v1793_v50 = vld [vmem:[%s5744_s7] sm:$0xff] }
0x106d   :  { %v1583_v21 = vpack.c.bf16 %v1581_v16, %v1580_v43  ;;  %v4231_v43 = vld [vmem:[%s5737_s0 + $0x10] sm:$0x3]  ;;  %1798 = vperm.xlu2 %3954, %v1793_v50  }
0x106f   :  { %3695 = vmatmul.msk.bf16.vlgmr.msrb.gmra.mxu1 %vm42_vm0, %v1583_v21  ;;  %v1722_v21 = vpack.c.bf16 %v4231_v43, %v4231_v43 }
0x1070   :  { %1697 = vmatpush.bf16.msrb.mxu3 %v3912_v37 }
0x1071   :  { %v1535_v25 = vpop.xlane.xlu0 %1534 }
0x1072   :  { %v1538_v4 = vmul.f32 %v1535_v25, %v4354_v12  ;;  %v1738_v25 = vsel %vm250_vm13, %v1722_v21, 0 }
0x1073   :  { %1746 = vmatpush.bf16.msra.mxu0 %v1738_v25 }
0x1074   :  { %v1541_v28 = vadd.f32 1e-05, %v1538_v4  ;;  %1698 = vmatpush.bf16.msrb.mxu3 %v3911_v51  ;;  %v4232_v4 = vld [vmem:[%s5737_s0] sm:$0xff] }
0x1076   :  { %4087 = vrsqrt.f32 %v1541_v28  ;;  %vm1568_vm10 = vweird.f32 %v1541_v28 }
0x107c   :  { %v4088_v29 = vpop.eup %4087 }
0x107d   :  { %v1563_v39 = vmul.f32 %v4088_v29, %v1541_v28  ;;  %vm1569_vm9 = vweird.f32 %v4088_v29  ;;  %v4233_v28 = vld [vmem:[%s5737_s0 + $0x8] sm:$0xff] }
0x107e   :  { %vm1570_vm11 = vmor %vm1568_vm10, %vm1569_vm9 }
0x107f   :  { %v1564_v38 = vmul.f32 %v4088_v29, %v1563_v39  ;;  %v3916_v39 = vld [vmem:[%s5743_s6 + $0xc] sm:$0xff] }
0x1081   :  { %v1565_v40 = vmul.f32 0.5, %v1564_v38 }
0x1083   :  { %v1566_v27 = vsub.f32 1.5, %v1565_v40 }
0x1085   :  { %v1567_v41 = vmul.f32 %v4088_v29, %v1566_v27  ;;  %v4234_v27 = vld [vmem:[%s5741_s4 + $0x8] sm:$0x3f] }
0x1087   :  { %v1571_v63 = vsel %vm1570_vm11, %v4088_v29, %v1567_v41  ;;  %v1721_v29 = vpack.c.bf16 %v4233_v28, %v4232_v4  ;;  %v1660_v41 = vperm.slane %v4234_v27, 5  ;;  %v3920_v27 = vld [vmem:[%s5739_s2 + $0x54] sm:$0xf0] }
0x1088   :  { %v1574_v42 = vmul.f32 %v1571_v63, %v4926_v47  ;;  %v3725_v63 = vld [vmem:[%s5743_s6 + $0x14] sm:$0x1] }
0x1089   :  { %1747 = vmatpush.bf16.msra.mxu0 %v1721_v29 }
0x108a   :  { %v1578_v44 = vmul.f32 %v1575_v8, %v1574_v42  ;;  %v1794_v42 = vld [vmem:[%s5744_s7 + $0x8] sm:$0xff] }
0x108b   :  { %1803 = vperm.xlu1 %3955, %v1794_v42  }
0x108c   :  { %v1582_v46 = vadd.f32 %v1579_v20, %v1578_v44  ;;  %3730 = vmatmul.msk.bf16.vlgmr.msra.gmra.mxu0 %vm202_vm14, %v3916_v39  ;;  %v1795_v44 = vld [vmem:[%s5744_s7 + $0x10] sm:$0x3] }
0x108d   :  { %1808 = vperm.xlu0 %3956, %v1795_v44   ;;  %v3745_v44 = vld [vmem:[%s5739_s2 + $0x40] sm:$0xf] }
0x108e   :  { %v1584_v48 = vpack.c.bf16 %v1582_v46, %v1582_v46 }
0x1090   :  { %3696 = vmatmul.msk.bf16.gmra.mxu1 %vm42_vm0, %v1584_v48  ;;  %v1728_v48 = vunpack.c.l.b16 %v3725_v63 }
0x10ec   :  { %v1613_v47 = vpop.f32.mrf.mxu1 }
0x10ed   :  { %v1614_v53 = vadd.f32 %v3958_v32, %v1613_v47 }
0x10ef   :  { %v1625_v55 = vmul.f32 0.044715, %v1614_v53  ;;  %v1622_v7 = vmul.f32 0.5, %v1614_v53 }
0x10f1   :  { %v1628_v56 = vmul.f32 %v1625_v55, %v1614_v53 }
0x10f3   :  { %v1631_v57 = vmul.f32 %v1628_v56, %v1614_v53 }
0x10f4   :  { %v1615_v58 = vpop.f32.mrf.mxu1 }
0x10f5   :  { %v1634_v59 = vadd.f32 %v1631_v57, %v1614_v53  ;;  %v1616_v60 = vadd.f32 %v3958_v32, %v1615_v58 }
0x10f7   :  { %v1626_v61 = vmul.f32 0.044715, %v1616_v60  ;;  %v1637_v2 = vmul.f32 0.7978846, %v1634_v59  ;;  %v1623_v45 = vmul.f32 0.5, %v1616_v60 }
0x10f9   :  { %v1629_v3 = vmul.f32 %v1626_v61, %v1616_v60  ;;  %4089 = vtanh.f32 %v1637_v2  ;;  %v3915_v61 = vld [vmem:[%s5743_s6] sm:$0xff] }
0x10fb   :  { %v1632_v52 = vmul.f32 %v1629_v3, %v1616_v60 }
0x10fd   :  { %v1635_v31 = vadd.f32 %v1632_v52, %v1616_v60 }
0x10ff   :  { %v1638_v35 = vmul.f32 0.7978846, %v1635_v31  ;;  %v4090_v34 = vpop.eup %4089 }
0x1100   :  { %v1643_v6 = vadd.f32 1.0, %v4090_v34  ;;  %v1799_v34 = vpop.permute.xlu2 %1798 }
0x1101   :  { %4091 = vtanh.f32 %v1638_v35 }
0x1102   :  { %v1646_v10 = vmul.f32 %v1643_v6, %v1622_v7 }
0x1107   :  { %v4092_v36 = vpop.eup %4091 }
0x1108   :  { %v1644_v9 = vadd.f32 1.0, %v4092_v36 }
0x1109   :  { %v1749_v3 = vpop.f32.mrf.mxu0 }
0x110a   :  { %v1647_v49 = vmul.f32 %v1644_v9, %v1623_v45  ;;  %v1804_v9 = vpop.permute.xlu1 %1803 }
0x110c   :  { %v1649_v11 = vpack.c.bf16 %v1647_v49, %v1646_v10 }
0x110d   :  { %v1618_v30 = vpop.f32.mrf.mxu1 }
0x110e   :  { %v1619_v13 = vadd.f32 %v3958_v32, %v1618_v30  ;;  %3721 = vmatmul.msk.bf16.vlgmr.msrb.gmra.mxu3 %vm5772_vm6, %v1649_v11  ;;  %v1730_v32 = vpack.c.b16 %v1728_v48, %v1728_v48 }
0x1110   :  { %v1627_v62 = vmul.f32 0.044715, %v1619_v13  ;;  %v1624_v20 = vmul.f32 0.5, %v1619_v13  ;;  %3731 = vmatmul.msk.bf16.gmra.mxu0 %vm202_vm14, %v1730_v32 }
0x1112   :  { %v1630_v5 = vmul.f32 %v1627_v62, %v1619_v13 }
0x1114   :  { %v1633_v8 = vmul.f32 %v1630_v5, %v1619_v13 }
0x1115   :  { %v1620_v22 = vpop.f32.mrf.mxu1 }
0x1116   :  { %v1636_v15 = vadd.f32 %v1633_v8, %v1619_v13  ;;  %v1809_v13 = vpop.permute.xlu0 %1808 }
0x1118   :  { %v1639_v17 = vmul.f32 0.7978846, %v1636_v15 }
0x111a   :  { %4093 = vtanh.f32 %v1639_v17 }
0x1120   :  { %v4094_v18 = vpop.eup %4093 }
0x1121   :  { %v1645_v23 = vadd.f32 1.0, %v4094_v18 }
0x1123   :  { %v1648_v24 = vmul.f32 %v1645_v23, %v1624_v20 }
0x1125   :  { %v1650_v16 = vpack.c.bf16 %v1648_v24, %v1648_v24 }
0x1127   :  { %3722 = vmatmul.msk.bf16.gmra.mxu3 %vm5773_vm7, %v1650_v16 }
0x1191   :  { %v1700_v38 = vpop.f32.mrf.mxu3 }
0x1192   :  { %v1701_v53 = vadd.f32 %v1700_v38, %v1660_v41 }
0x1194   :  { %v1709_v58 = vadd.f32 %v1701_v53, %v4904_v54  ;;  %v1751_v54 = vpop.f32.mrf.mxu0 }
0x1199   :  { %v1702_v40 = vpop.f32.mrf.mxu3 }
0x119a   :  { %v1703_v51 = vadd.f32 %v1702_v40, %v1660_v41  ;;  %v3749_v40 = vld [vmem:[%s5739_s2 + $0x50] sm:$0xf] }
0x119c   :  { %v1710_v56 = vadd.f32 %v1703_v51, %v4909_v26  ;;  %v1754_v52 = vpop.f32.mrf.mxu0 }
0x119e   :  { %v1715_v60 = vpack.c.bf16 %v1710_v56, %v1709_v58 }
0x11a4   :  { %v1756_v31 = vpop.f32.mrf.mxu0 }
0x11aa   :  { %v1705_v46 = vpop.f32.mrf.mxu3 }
0x11ab   :  { %v1706_v37 = vadd.f32 %v1705_v46, %v1660_v41  ;;  %v5041_v41 = vor.u32 %v3920_v27, %v3749_v40  ;;  %v3918_v46 = vld [vmem:[%s5739_s2 + $0x44] sm:$0xf0] }
0x11ac   :  { %v5051_v33 = vor.u32 %v3918_v46, %v3745_v44 }
0x11ad   :  { %v1711_v47 = vadd.f32 %v1706_v37, %v4914_v1  ;;  %v1714_v1 = vld [vmem:[%s5743_s6 + $0x8] sm:$0x1]  ;;  %1921 = vmatpush.bf16.msra.mxu1 %v5041_v41 }
0x11ae   :  { %v1763_v2 = vunpack.c.l.b16 %v1714_v1 }
0x11af   :  { %v1716_v55 = vpack.c.bf16 %v1711_v47, %v1711_v47 }
0x11b0   :  { %v1765_v26 = vpack.c.b16 %v1763_v2, %v1763_v2 }
0x11b1   :  { %v1773_v57 = vsel %vm250_vm13, %v1716_v55, 0  ;;  %1922 = vmatpush.bf16.msra.mxu1 %v5051_v33 }
0x11b2   :  { %v1707_v59 = vpop.f32.mrf.mxu3  ;;  %1781 = vmatpush.bf16.msra.mxu2 %v1773_v57 }
0x11b6   :  { %1782 = vmatpush.bf16.msra.mxu2 %v1715_v60 }
0x11b9   :  { %3736 = vmatmul.msk.bf16.vlgmr.msra.gmra.mxu2 %vm202_vm14, %v3915_v61 }
0x11c9   :  { %3737 = vmatmul.msk.bf16.gmra.mxu2 %vm202_vm14, %v1765_v26  ;;  %v5059_v26 = vld [vmem:[%s5741_s4 + $0x10] sm:$0x3f] }
0x123c   :  { %v1784_v35 = vpop.f32.mrf.mxu2 }
0x123d   :  { %v1785_v6 = vadd.f32 %v1784_v35, %v1749_v3  ;;  %v1887_v35 = vperm.slane %v5059_v26, 0 }
0x123f   :  { %v5010_v36 = vadd.f32 %v1799_v34, %v1785_v6 }
0x1241   :  { %v1821_v7 = vsel %vm42_vm0, %v5010_v36, 0.0 }
0x1242   :  { %1822 = vadd.xlane.f32.xlu2 %v1821_v7 }
0x1244   :  { %v1786_v45 = vpop.f32.mrf.mxu2 }
0x1245   :  { %v1787_v10 = vadd.f32 %v1786_v45, %v1751_v54 }
0x1247   :  { %v5014_v49 = vadd.f32 %v1804_v9, %v1787_v10  ;;  %v1891_v10 = vperm.slane %v5059_v26, 1 }
0x1249   :  { %v1824_v11 = vsel %vm42_vm0, %v5014_v49, 0.0 }
0x124a   :  { %1825 = vadd.xlane.f32.xlu1 %v1824_v11 }
0x124c   :  { %v1789_v30 = vpop.f32.mrf.mxu2 }
0x124d   :  { %v1790_v62 = vadd.f32 %v1789_v30, %v1754_v52 }
0x124f   :  { %v5018_v5 = vadd.f32 %v1809_v13, %v1790_v62 }
0x1251   :  { %v1827_v8 = vsel %vm49_vm1, %v5018_v5, 0.0 }
0x1252   :  { %1828 = vadd.xlane.f32.xlu0 %v1827_v8 }
0x1254   :  { %v1791_v22 = vpop.f32.mrf.mxu2 }
0x12b5   :  { %v1823_v15 = vpop.xlane.xlu2 %1822 }
0x12b6   :  { %v1830_v17 = vmul.f32 %v1823_v15, %v4354_v12 }
0x12b8   :  { %v1833_v18 = vsub.f32 %v5010_v36, %v1830_v17 }
0x12ba   :  { %v1836_v20 = vmul.f32 %v1833_v18, %v1833_v18 }
0x12bc   :  { %v1839_v23 = vsel %vm42_vm0, %v1836_v20, 0.0 }
0x12bd   :  { %1840 = vadd.xlane.f32.xlu2 %v1839_v23  ;;  %v1826_v24 = vpop.xlane.xlu1 %1825 }
0x12be   :  { %v1831_v16 = vmul.f32 %v1826_v24, %v4354_v12 }
0x12c0   :  { %v1834_v43 = vsub.f32 %v5014_v49, %v1831_v16 }
0x12c2   :  { %v1837_v21 = vmul.f32 %v1834_v43, %v1834_v43 }
0x12c4   :  { %v1842_v25 = vsel %vm42_vm0, %v1837_v21, 0.0 }
0x12c5   :  { %1843 = vadd.xlane.f32.xlu1 %v1842_v25  ;;  %v1829_v4 = vpop.xlane.xlu0 %1828 }
0x12c6   :  { %v1832_v28 = vmul.f32 %v1829_v4, %v4354_v12 }
0x12c8   :  { %v5030_v29 = vsub.f32 %v5018_v5, %v1832_v28 }
0x12ca   :  { %v1838_v39 = vmul.f32 %v5030_v29, %v5030_v29 }
0x12cc   :  { %v1845_v38 = vsel %vm49_vm1, %v1838_v39, 0.0 }
0x12cd   :  { %1846 = vadd.xlane.f32.xlu2 %v1845_v38 }
0x1330   :  { %v1841_v63 = vpop.xlane.xlu2 %1840 }
0x1331   :  { %v1848_v42 = vmul.f32 %v1841_v63, %v4354_v12 }
0x1333   :  { %v1851_v48 = vadd.f32 1e-05, %v1848_v42 }
0x1335   :  { %4095 = vrsqrt.f32 %v1851_v48  ;;  %vm1860_vm9 = vweird.f32 %v1851_v48 }
0x1338   :  { %v1844_v50 = vpop.xlane.xlu1 %1843 }
0x1339   :  { %v1849_v37 = vmul.f32 %v1844_v50, %v4354_v12 }
0x133b   :  { %v4096_v51 = vpop.eup %4095  ;;  %v1852_v32 = vadd.f32 1e-05, %v1849_v37 }
0x133c   :  { %v1855_v47 = vmul.f32 %v4096_v51, %v1851_v48  ;;  %vm1861_vm8 = vweird.f32 %v4096_v51 }
0x133d   :  { %4097 = vrsqrt.f32 %v1852_v32  ;;  %vm1862_vm10 = vmor %vm1860_vm9, %vm1861_vm8  ;;  %vm1870_vm6 = vweird.f32 %v1852_v32 }
0x133e   :  { %v1856_v53 = vmul.f32 %v4096_v51, %v1855_v47 }
0x1340   :  { %v1857_v55 = vmul.f32 0.5, %v1856_v53  ;;  %v1847_v56 = vpop.xlane.xlu2 %1846 }
0x1341   :  { %v1850_v57 = vmul.f32 %v1847_v56, %v4354_v12 }
0x1342   :  { %v1858_v58 = vsub.f32 1.5, %v1857_v55 }
0x1343   :  { %v4098_v59 = vpop.eup %4097  ;;  %v1853_v60 = vadd.f32 1e-05, %v1850_v57 }
0x1344   :  { %v1859_v61 = vmul.f32 %v4096_v51, %v1858_v58  ;;  %v1865_v1 = vmul.f32 %v4098_v59, %v1852_v32  ;;  %vm1871_vm11 = vweird.f32 %v4098_v59 }
0x1345   :  { %4099 = vrsqrt.f32 %v1853_v60  ;;  %vm1872_vm7 = vmor %vm1870_vm6, %vm1871_vm11  ;;  %vm1880_vm9 = vweird.f32 %v1853_v60  ;;  %vm5777_vm11 = vcmask 123968   ;;  %vm5778_vm6 = vcmask 189568  }
0x1346   :  { %v1866_v2 = vmul.f32 %v4098_v59, %v1865_v1  ;;  %v1863_v3 = vsel %vm1862_vm10, %v4096_v51, %v1859_v61 }
0x1347   :  { %v1884_v34 = vmul.f32 %v1863_v3, %v1833_v18 }
0x1348   :  { %v1867_v54 = vmul.f32 0.5, %v1866_v2 }
0x1349   :  { %v1888_v11 = vmul.f32 %v1887_v35, %v1884_v34 }
0x134a   :  { %v1868_v52 = vsub.f32 1.5, %v1867_v54 }
0x134b   :  { %v4100_v31 = vpop.eup %4099  ;;  %v1892_v22 = vadd.f32 %v1891_v10, %v1888_v11 }
0x134c   :  { %v1869_v6 = vmul.f32 %v4098_v59, %v1868_v52  ;;  %v1875_v7 = vmul.f32 %v4100_v31, %v1853_v60  ;;  %vm1881_vm8 = vweird.f32 %v4100_v31 }
0x134d   :  { %vm1882_vm10 = vmor %vm1880_vm9, %vm1881_vm8 }
0x134e   :  { %v1873_v45 = vsel %vm1872_vm7, %v4098_v59, %v1869_v6  ;;  %v1876_v9 = vmul.f32 %v4100_v31, %v1875_v7  ;;  %v4235_v6 = vld [vmem:[%s5738_s1] sm:$0xff]  ;;  %vm5779_vm7 = vcmask 255168  }
0x134f   :  { %v1885_v30 = vmul.f32 %v1873_v45, %v1834_v43 }
0x1350   :  { %v1877_v13 = vmul.f32 0.5, %v1876_v9 }
0x1351   :  { %v1889_v62 = vmul.f32 %v1887_v35, %v1885_v30 }
0x1352   :  { %v1878_v8 = vsub.f32 1.5, %v1877_v13  ;;  %v4236_v13 = vld [vmem:[%s5738_s1 + $0x8] sm:$0xff] }
0x1353   :  { %v1893_v15 = vadd.f32 %v1891_v10, %v1889_v62 }
0x1354   :  { %v1879_v17 = vmul.f32 %v4100_v31, %v1878_v8 }
0x1355   :  { %v1895_v20 = vpack.c.bf16 %v1893_v15, %v1892_v22 }
0x1356   :  { %v1883_v18 = vsel %vm1882_vm10, %v4100_v31, %v1879_v17  ;;  %v4237_v17 = vld [vmem:[%s5738_s1 + $0x10] sm:$0x3] }
0x1357   :  { %3751 = vmatmul.msk.bf16.vlgmr.msra.gmra.mxu1 %vm42_vm0, %v1895_v20  ;;  %v1886_v23 = vmul.f32 %v1883_v18, %v5030_v29 }
0x1359   :  { %v1890_v24 = vmul.f32 %v1887_v35, %v1886_v23 }
0x135b   :  { %v1894_v16 = vadd.f32 %v1891_v10, %v1890_v24 }
0x135d   :  { %v1896_v21 = vpack.c.bf16 %v1894_v16, %v1894_v16 }
0x1367   :  { %3752 = vmatmul.msk.bf16.gmra.mxu1 %vm42_vm0, %v1896_v21 }
0x13d4   :  { %v1924_v43 = vpop.f32.mrf.mxu1 }
0x13dc   :  { %v1926_v25 = vpop.f32.mrf.mxu1 }
0x13dd   :  { %v5066_v4 = vpack.c.bf16 %v1926_v25, %v1924_v43 }
0x13df   :  { %1937 = vrot.lane.b32.xlu0 %v5066_v4, %s4270_s21 }
0x13e4   :  { %v1929_v28 = vpop.f32.mrf.mxu1 }
0x13e5   :  { %v5070_v39 = vpack.c.bf16 %v1929_v28, %v1929_v28 }
0x13e7   :  { %2167 = vrot.lane.b32.xlu0 %v5070_v39, %s4274_s9  ;;  %2047 = vrot.lane.b32.xlu2 %v5070_v39, %s4271_s22 }
0x13e8   :  { %1939 = vrot.lane.b32.xlu1 %v5070_v39, %s4270_s21 }
0x13ec   :  { %v1931_v29 = vpop.f32.mrf.mxu1 }
0x13ef   :  { %2165 = vrot.lane.b32.xlu0 %v5066_v4, %s4274_s9  ;;  %2045 = vrot.lane.b32.xlu2 %v5066_v4, %s4271_s22 }
0x13f0   :  { %2041 = vrot.lane.b32.xlu1 %v5066_v4, %s4273_s24 }
0x13f7   :  { %2281 = vrot.lane.b32.xlu0 %v5066_v4, %s4276_s11  ;;  %2043 = vrot.lane.b32.xlu2 %v5070_v39, %s4273_s24 }
0x13f8   :  { %2287 = vrot.lane.b32.xlu1 %v5070_v39, %s4275_s10 }
0x13ff   :  { %2114 = vrot.lane.b32.xlu0 %v5066_v4, %s5762_s13  ;;  %2285 = vrot.lane.b32.xlu2 %v5066_v4, %s4275_s10 }
0x1400   :  { %2161 = vrot.lane.b32.xlu1 %v5066_v4, %s4277_s12 }
0x1407   :  { %2116 = vrot.lane.b32.xlu0 %v5070_v39, %s5762_s13  ;;  %2163 = vrot.lane.b32.xlu2 %v5070_v39, %s4277_s12 }
0x1408   :  { %2283 = vrot.lane.b32.xlu1 %v5070_v39, %s4276_s11 }
0x140f   :  { %2006 = vrot.lane.b32.xlu2 %v5066_v4, %s5764_s23 }
0x1410   :  { %2008 = vrot.lane.b32.xlu1 %v5070_v39, %s5764_s23 }
0x1441   :  { %v2048_v38 = vpop.permute.xlu2 %2047 }
0x1442   :  { %v2059_v40 = vsel %vm171_vm12, %v2048_v38, 0 }
0x1443   :  { %2067 = vmatpush.bf16.xpose.msrb.mxu2 %v2059_v40 }
0x1449   :  { %v2046_v27 = vpop.permute.xlu2 %2045 }
0x144a   :  { %v2056_v63 = vsel %vm171_vm12, %v2046_v27, 0 }
0x144b   :  { %2068 = vmatpush.bf16.xpose.msrb.mxu2 %v2056_v63 }
0x1451   :  { %v1938_v42 = vpop.permute.xlu0 %1937  ;;  %v2044_v47 = vpop.permute.xlu2 %2043 }
0x1452   :  { %v1948_v51 = vsel %vm171_vm12, %v1938_v42, 0 }
0x1459   :  { %v2168_v44 = vpop.permute.xlu0 %2167  ;;  %v2286_v58 = vpop.permute.xlu2 %2285 }
0x145a   :  { %v1940_v46 = vpop.permute.xlu1 %1939  ;;  %v2179_v32 = vsel %vm171_vm12, %v2168_v44, 0  ;;  %v2296_v61 = vsel %vm171_vm12, %v2286_v58, 0 }
0x145b   :  { %v1951_v48 = vsel %vm171_vm12, %v1940_v46, 0 }
0x145c   :  { %1959 = vmatpush.bf16.xpose.msra.mxu3 %v1951_v48 }
0x1461   :  { %v2166_v50 = vpop.permute.xlu0 %2165  ;;  %v2164_v54 = vpop.permute.xlu2 %2163 }
0x1462   :  { %v2042_v37 = vpop.permute.xlu1 %2041  ;;  %v2176_v57 = vsel %vm171_vm12, %v2166_v50, 0 }
0x1463   :  { %3757 = vmatmul.msk.bf16.vlgmr.msrb.gmra.mxu2 %vm171_vm12, %v2042_v37 }
0x1464   :  { %1960 = vmatpush.bf16.xpose.msra.mxu3 %v1948_v51 }
0x1469   :  { %v2282_v53 = vpop.permute.xlu0 %2281  ;;  %v2007_v35 = vpop.permute.xlu2 %2006 }
0x146a   :  { %v2288_v55 = vpop.permute.xlu1 %2287 }
0x146b   :  { %v2299_v56 = vsel %vm171_vm12, %v2288_v55, 0  ;;  %3753 = vmatmul.msk.bf16.vlgmr.msra.gmra.mxu3 %vm171_vm12, %v5066_v4 }
0x146c   :  { %2187 = vmatpush.bf16.xpose.msrb.mxu3 %v2179_v32  ;;  %2307 = vmatpush.bf16.xpose.msra.mxu2 %v2299_v56 }
0x1471   :  { %v2115_v59 = vpop.permute.xlu0 %2114 }
0x1472   :  { %v2162_v60 = vpop.permute.xlu1 %2161 }
0x1473   :  { %3758 = vmatmul.msk.bf16.gmra.mxu2 %vm171_vm12, %v2044_v47 }
0x1474   :  { %2188 = vmatpush.bf16.xpose.msrb.mxu3 %v2176_v57  ;;  %2308 = vmatpush.bf16.xpose.msra.mxu2 %v2296_v61 }
0x1479   :  { %v2117_v1 = vpop.permute.xlu0 %2116 }
0x147a   :  { %v2284_v2 = vpop.permute.xlu1 %2283  ;;  %v2126_v3 = vsel %vm250_vm13, %v2117_v1, 0 }
0x147b   :  { %3754 = vmatmul.msk.bf16.gmra.mxu3 %vm171_vm12, %v5070_v39  ;;  %2134 = vmatpush.bf16.msrb.mxu1 %v2126_v3 }
0x147f   :  { %2135 = vmatpush.bf16.msrb.mxu1 %v2115_v59 }
0x1482   :  { %v2009_v52 = vpop.permute.xlu1 %2008 }
0x1483   :  { %v2018_v31 = vsel %vm250_vm13, %v2009_v52, 0  ;;  %3765 = vmatmul.msk.bf16.vlgmr.msra.gmra.mxu2 %vm171_vm12, %v2282_v53 }
0x1484   :  { %2026 = vmatpush.bf16.msrb.mxu0 %v2018_v31 }
0x1488   :  { %2027 = vmatpush.bf16.msrb.mxu0 %v2007_v35 }
0x148b   :  { %3761 = vmatmul.msk.bf16.vlgmr.msrb.gmra.mxu3 %vm171_vm12, %v2162_v60 }
0x1493   :  { %3766 = vmatmul.msk.bf16.gmra.mxu2 %vm171_vm12, %v2284_v2 }
0x149b   :  { %3762 = vmatmul.msk.bf16.gmra.mxu3 %vm171_vm12, %v2164_v54 }
0x14e6   :  { %v2070_v34 = vpop.f32.mrf.mxu2 }
0x14e7   :  { %v2071_v7 = vadd.f32 %v4235_v6, %v2070_v34 }
0x14e9   :  { %v2079_v45 = vsel %vm202_vm14, %v2071_v7, -inf }
0x14ea   :  { %2080 = vmax.xlane.f32.xlu1 %v2079_v45 }
0x14ee   :  { %v1962_v9 = vpop.f32.mrf.mxu3  ;;  %v2072_v10 = vpop.f32.mrf.mxu2 }
0x14ef   :  { %v1963_v11 = vadd.f32 %v4235_v6, %v1962_v9  ;;  %v5134_v62 = vadd.f32 %v4236_v13, %v2072_v10 }
0x14f1   :  { %v1971_v30 = vsel %vm202_vm14, %v1963_v11, -inf  ;;  %v2082_v24 = vsel %vm202_vm14, %v5134_v62, -inf }
0x14f2   :  { %1972 = vmax.xlane.f32.xlu0 %v1971_v30 }
0x14f6   :  { %v1964_v8 = vpop.f32.mrf.mxu3  ;;  %v2075_v22 = vpop.f32.mrf.mxu2 }
0x14f7   :  { %v1965_v15 = vadd.f32 %v4236_v13, %v1964_v8  ;;  %v5139_v20 = vadd.f32 %v4237_v17, %v2075_v22 }
0x14f9   :  { %v2085_v18 = vsel %vm209_vm15, %v5139_v20, -inf  ;;  %v1974_v23 = vsel %vm202_vm14, %v1965_v15, -inf }
0x14fa   :  { %2086 = vmax.xlane.f32.xlu1 %v2085_v18  ;;  %1975 = vmax.xlane.f32.xlu2 %v1974_v23 }
0x14fb   :  { %2083 = vmax.xlane.f32.xlu0 %v2082_v24 }
0x14fe   :  { %v1967_v16 = vpop.f32.mrf.mxu3  ;;  %v2077_v21 = vpop.f32.mrf.mxu2 }
0x14ff   :  { %v1968_v43 = vadd.f32 %v4237_v17, %v1967_v16 }
0x1501   :  { %v1977_v25 = vsel %vm209_vm15, %v1968_v43, -inf }
0x1502   :  { %1978 = vmax.xlane.f32.xlu2 %v1977_v25 }
0x1506   :  { %v1969_v28 = vpop.f32.mrf.mxu3  ;;  %v2310_v29 = vpop.f32.mrf.mxu2 }
0x1507   :  { %v5147_v38 = vadd.f32 %v4235_v6, %v2310_v29 }
0x1509   :  { %v2319_v40 = vsel %vm202_vm14, %v5147_v38, -inf }
0x150a   :  { %2320 = vmax.xlane.f32.xlu1 %v2319_v40 }
0x150e   :  { %v2190_v27 = vpop.f32.mrf.mxu3  ;;  %v2312_v63 = vpop.f32.mrf.mxu2 }
0x150f   :  { %2236 = vrot.lane.b32.xlu0 %v5070_v39, %s5774_s20  ;;  %v5161_v53 = vadd.f32 %v4235_v6, %v2190_v27  ;;  %v5165_v56 = vadd.f32 %v4236_v13, %v2312_v63 }
0x1511   :  { %v2199_v55 = vsel %vm202_vm14, %v5161_v53, -inf  ;;  %v2322_v57 = vsel %vm202_vm14, %v5165_v56, -inf }
0x1516   :  { %v2192_v42 = vpop.f32.mrf.mxu3  ;;  %v2315_v44 = vpop.f32.mrf.mxu2 }
0x1517   :  { %v5153_v46 = vadd.f32 %v4236_v13, %v2192_v42  ;;  %v5155_v48 = vadd.f32 %v4237_v17, %v2315_v44 }
0x1519   :  { %v2202_v50 = vsel %vm202_vm14, %v5153_v46, -inf  ;;  %v2325_v37 = vsel %vm209_vm15, %v5155_v48, -inf }
0x151a   :  { %2203 = vmax.xlane.f32.xlu2 %v2202_v50  ;;  %2326 = vmax.xlane.f32.xlu1 %v2325_v37 }
0x151e   :  { %v2195_v51 = vpop.f32.mrf.mxu3  ;;  %v2317_v32 = vpop.f32.mrf.mxu2 }
0x151f   :  { %v5169_v58 = vadd.f32 %v4237_v17, %v2195_v51 }
0x1521   :  { %v2205_v59 = vsel %vm209_vm15, %v5169_v58, -inf }
0x1526   :  { %v2197_v47 = vpop.f32.mrf.mxu3 }
0x1539   :  { %2200 = vmax.xlane.f32.xlu0 %v2199_v55 }
0x1541   :  { %2323 = vmax.xlane.f32.xlu0 %v2322_v57 }
0x1549   :  { %2206 = vmax.xlane.f32.xlu0 %v2205_v59 }
0x155d   :  { %v2081_v60 = vpop.xlane.xlu1 %2080 }
0x155e   :  { %v2088_v61 = vsub.f32 %v2071_v7, %v2081_v60 }
0x1560   :  { %v2091_v1 = vmul.f32 1.442695, %v2088_v61 }
0x1562   :  { %4101 = vpow2.f32 %v2091_v1 }
0x1565   :  { %v1973_v2 = vpop.xlane.xlu0 %1972 }
0x1566   :  { %v1980_v3 = vsub.f32 %v1963_v11, %v1973_v2 }
0x1568   :  { %v5173_v54 = vpop.eup %4101  ;;  %v1983_v52 = vmul.f32 1.442695, %v1980_v3 }
0x1569   :  { %v2097_v31 = vsel %vm202_vm14, %v5173_v54, 0.0 }
0x156a   :  { %4103 = vpow2.f32 %v1983_v52  ;;  %2098 = vadd.xlane.f32.xlu0 %v2097_v31 }
0x156d   :  { %v1976_v35 = vpop.xlane.xlu2 %1975  ;;  %v2087_v34 = vpop.xlane.xlu1 %2086 }
0x156e   :  { %v1981_v6 = vsub.f32 %v1965_v15, %v1976_v35  ;;  %v2084_v45 = vpop.xlane.xlu0 %2083  ;;  %v2090_v30 = vsub.f32 %v5139_v20, %v2087_v34 }
0x156f   :  { %v2089_v9 = vsub.f32 %v5134_v62, %v2084_v45 }
0x1570   :  { %v5178_v10 = vpop.eup %4103  ;;  %v1985_v7 = vmul.f32 1.442695, %v1981_v6  ;;  %v2095_v8 = vmul.f32 1.442695, %v2090_v30 }
0x1571   :  { %v2093_v11 = vmul.f32 1.442695, %v2089_v9  ;;  %v1989_v13 = vsel %vm202_vm14, %v5178_v10, 0.0 }
0x1572   :  { %1990 = vadd.xlane.f32.xlu2 %v1989_v13  ;;  %4105 = vpow2.f32 %v1985_v7 }
0x1573   :  { %4107 = vpow2.f32 %v2093_v11 }
0x1574   :  { %4109 = vpow2.f32 %v2095_v8 }
0x1575   :  { %v1979_v22 = vpop.xlane.xlu2 %1978 }
0x1576   :  { %v1982_v17 = vsub.f32 %v1968_v43, %v1979_v22 }
0x1578   :  { %v1987_v18 = vmul.f32 1.442695, %v1982_v17  ;;  %v5183_v15 = vpop.eup %4105 }
0x1579   :  { %v5185_v62 = vpop.eup %4107  ;;  %v1992_v20 = vsel %vm202_vm14, %v5183_v15, 0.0 }
0x157a   :  { %4111 = vpow2.f32 %v1987_v18  ;;  %1993 = vadd.xlane.f32.xlu1 %v1992_v20  ;;  %v2100_v23 = vsel %vm202_vm14, %v5185_v62, 0.0  ;;  %v5192_v21 = vpop.eup %4109 }
0x157b   :  { %2101 = vadd.xlane.f32.xlu2 %v2100_v23  ;;  %v2103_v27 = vsel %vm209_vm15, %v5192_v21, 0.0 }
0x157d   :  { %v2321_v24 = vpop.xlane.xlu1 %2320 }
0x157e   :  { %v2328_v16 = vsub.f32 %v5147_v38, %v2321_v24 }
0x1580   :  { %v5194_v43 = vpop.eup %4111  ;;  %v2331_v25 = vmul.f32 1.442695, %v2328_v16 }
0x1581   :  { %v2237_v28 = vpop.permute.xlu0 %2236  ;;  %v1995_v29 = vsel %vm209_vm15, %v5194_v43, 0.0 }
0x1582   :  { %4113 = vpow2.f32 %v2331_v25  ;;  %v2246_v40 = vsel %vm250_vm13, %v2237_v28, 0  ;;  %1996 = vadd.xlane.f32.xlu1 %v1995_v29 }
0x1583   :  { %2254 = vmatpush.bf16.msra.mxu0 %v2246_v40  ;;  %2104 = vadd.xlane.f32.xlu2 %v2103_v27 }
0x1588   :  { %v5201_v63 = vpop.eup %4113 }
0x1589   :  { %v2337_v38 = vsel %vm202_vm14, %v5201_v63, 0.0 }
0x158a   :  { %2338 = vadd.xlane.f32.xlu1 %v2337_v38  ;;  %v2654_v38 = vpack.c.bf16 %v4652_v0, %v4652_v0 }
0x158d   :  { %v2204_v42 = vpop.xlane.xlu2 %2203  ;;  %v2327_v52 = vpop.xlane.xlu1 %2326 }
0x158e   :  { %v2209_v44 = vsub.f32 %v5153_v46, %v2204_v42 }
0x1590   :  { %v2213_v50 = vmul.f32 1.442695, %v2209_v44 }
0x1592   :  { %4115 = vpow2.f32 %v2213_v50 }
0x1598   :  { %v5206_v37 = vpop.eup %4115 }
0x1599   :  { %v2220_v51 = vsel %vm202_vm14, %v5206_v37, 0.0 }
0x159a   :  { %2221 = vadd.xlane.f32.xlu0 %v2220_v51 }
0x15a3   :  { %2356 = vrot.lane.b32.xlu1 %v5070_v39, %s5775_s25 }
0x15ac   :  { %v2201_v32 = vpop.xlane.xlu0 %2200 }
0x15ad   :  { %v2208_v47 = vsub.f32 %v5161_v53, %v2201_v32 }
0x15ae   :  { %2354 = vrot.lane.b32.xlu0 %v5066_v4, %s5775_s25 }
0x15af   :  { %v2211_v55 = vmul.f32 1.442695, %v2208_v47 }
0x15b1   :  { %4117 = vpow2.f32 %v2211_v55 }
0x15b4   :  { %v2324_v46 = vpop.xlane.xlu0 %2323 }
0x15b5   :  { %v2329_v57 = vsub.f32 %v5165_v56, %v2324_v46  ;;  %v2330_v56 = vsub.f32 %v5155_v48, %v2327_v52 }
0x15b7   :  { %v5216_v59 = vpop.eup %4117  ;;  %v2333_v60 = vmul.f32 1.442695, %v2329_v57  ;;  %v2335_v35 = vmul.f32 1.442695, %v2330_v56 }
0x15b8   :  { %v2217_v61 = vsel %vm202_vm14, %v5216_v59, 0.0 }
0x15b9   :  { %4119 = vpow2.f32 %v2333_v60  ;;  %2218 = vadd.xlane.f32.xlu2 %v2217_v61 }
0x15bc   :  { %v2207_v39 = vpop.xlane.xlu0 %2206 }
0x15bd   :  { %v2210_v1 = vsub.f32 %v5169_v58, %v2207_v39 }
0x15bf   :  { %v5221_v53 = vpop.eup %4119  ;;  %v2215_v2 = vmul.f32 1.442695, %v2210_v1 }
0x15c0   :  { %v2340_v3 = vsel %vm202_vm14, %v5221_v53, 0.0 }
0x15c1   :  { %2341 = vadd.xlane.f32.xlu2 %v2340_v3  ;;  %4121 = vpow2.f32 %v2215_v2 }
0x15c2   :  { %4123 = vpow2.f32 %v2335_v35 }
0x15c7   :  { %v5226_v31 = vpop.eup %4121 }
0x15c8   :  { %v2223_v34 = vsel %vm209_vm15, %v5226_v31, 0.0  ;;  %v5230_v58 = vpop.eup %4123 }
0x15c9   :  { %v2343_v6 = vsel %vm209_vm15, %v5230_v58, 0.0 }
0x15cd   :  { %2224 = vadd.xlane.f32.xlu1 %v2223_v34 }
0x15d8   :  { %2344 = vadd.xlane.f32.xlu0 %v2343_v6 }
0x15d9   :  { %2234 = vrot.lane.b32.xlu2 %v5066_v4, %s5774_s20 }
0x15dd   :  { %v2099_v9 = vpop.xlane.xlu0 %2098 }
0x15e5   :  { %v1991_v45 = vpop.xlane.xlu2 %1990 }
0x15e6   :  { %4125 = vrcp.f32 %v1991_v45 }
0x15e7   :  { %4127 = vrcp.f32 %v2099_v9 }
0x15ec   :  { %2409 = vrot.lane.b32.xlu0 %v5041_v41, %s5776_s26  ;;  %v4126_v30 = vpop.eup %4125 }
0x15ed   :  { %v1994_v48 = vpop.xlane.xlu1 %1993  ;;  %v4128_v11 = vpop.eup %4127  ;;  %v2001_v22 = vmul.f32 %v4126_v30, %v5178_v10 }
0x15ee   :  { %4129 = vrcp.f32 %v1994_v48  ;;  %v2102_v7 = vpop.xlane.xlu2 %2101  ;;  %v2109_v4 = vmul.f32 %v4128_v11, %v5173_v54 }
0x15ef   :  { %4131 = vrcp.f32 %v2102_v7 }
0x15f4   :  { %v4130_v13 = vpop.eup %4129 }
0x15f5   :  { %v4132_v8 = vpop.eup %4131  ;;  %v2002_v17 = vmul.f32 %v4130_v13, %v5183_v15  ;;  %v1997_v41 = vpop.xlane.xlu1 %1996 }
0x15f6   :  { %v2110_v18 = vmul.f32 %v4132_v8, %v5185_v62  ;;  %v2105_v24 = vpop.xlane.xlu2 %2104  ;;  %4133 = vrcp.f32 %v1997_v41 }
0x15f7   :  { %v2004_v20 = vpack.c.bf16 %v2002_v17, %v2001_v22  ;;  %4135 = vrcp.f32 %v2105_v24 }
0x15f8   :  { %v2112_v23 = vpack.c.bf16 %v2110_v18, %v2109_v4 }
0x15f9   :  { %3755 = vmatmul.msk.bf16.vlgmr.msrb.gmra.mxu0 %vm202_vm14, %v2004_v20 }
0x15fa   :  { %3759 = vmatmul.msk.bf16.vlgmr.msrb.gmra.mxu1 %vm202_vm14, %v2112_v23 }
0x15fc   :  { %v4134_v16 = vpop.eup %4133 }
0x15fd   :  { %v4136_v25 = vpop.eup %4135  ;;  %v2003_v10 = vmul.f32 %v4134_v16, %v5194_v43  ;;  %v2339_v62 = vpop.xlane.xlu1 %2338  ;;  %v2670_v43 = vsel %vm250_vm13, %v2654_v38, 0 }
0x15fe   :  { %v2111_v15 = vmul.f32 %v4136_v25, %v5192_v21  ;;  %v2653_v21 = vpack.c.bf16 %v4647_v19, %v4642_v14 }
0x15ff   :  { %v2005_v28 = vpack.c.bf16 %v2003_v10, %v2003_v10 }
0x1600   :  { %v2113_v54 = vpack.c.bf16 %v2111_v15, %v2111_v15 }
0x1609   :  { %3756 = vmatmul.msk.bf16.gmra.mxu0 %vm202_vm14, %v2005_v28 }
0x160a   :  { %3760 = vmatmul.msk.bf16.gmra.mxu1 %vm202_vm14, %v2113_v54 }
0x160d   :  { %v2222_v27 = vpop.xlane.xlu0 %2221 }
0x1615   :  { %v2357_v29 = vpop.permute.xlu1 %2356 }
0x1616   :  { %v2366_v40 = vsel %vm250_vm13, %v2357_v29, 0 }
0x1617   :  { %2374 = vmatpush.bf16.msra.mxu1 %v2366_v40  ;;  %v2406_v40 = vperm.slane %v5059_v26, 4 }
0x1620   :  { %v2355_v42 = vpop.permute.xlu0 %2354 }
0x1621   :  { %2375 = vmatpush.bf16.msra.mxu1 %v2355_v42 }
0x1625   :  { %2678 = vmatpush.bf16.msrb.mxu1 %v2670_v43 }
0x1629   :  { %2679 = vmatpush.bf16.msrb.mxu1 %v2653_v21 }
0x162c   :  { %v2219_v44 = vpop.xlane.xlu2 %2218 }
0x162d   :  { %4137 = vrcp.f32 %v2219_v44 }
0x162e   :  { %4139 = vrcp.f32 %v2339_v62 }
0x162f   :  { %4141 = vrcp.f32 %v2222_v27 }
0x1633   :  { %v4138_v51 = vpop.eup %4137 }
0x1634   :  { %v2342_v50 = vpop.xlane.xlu2 %2341  ;;  %v4140_v32 = vpop.eup %4139  ;;  %v2229_v0 = vmul.f32 %v4138_v51, %v5216_v59 }
0x1635   :  { %4143 = vrcp.f32 %v2342_v50  ;;  %v4142_v47 = vpop.eup %4141  ;;  %v2349_v46 = vmul.f32 %v4140_v32, %v5201_v63 }
0x1636   :  { %v2230_v57 = vmul.f32 %v4142_v47, %v5206_v37 }
0x1638   :  { %v2232_v19 = vpack.c.bf16 %v2230_v57, %v2229_v0 }
0x163b   :  { %v4144_v55 = vpop.eup %4143 }
0x163c   :  { %v2350_v60 = vmul.f32 %v4144_v55, %v5221_v53  ;;  %v2235_v14 = vpop.permute.xlu2 %2234 }
0x163d   :  { %2255 = vmatpush.bf16.msra.mxu0 %v2235_v14 }
0x163e   :  { %v2352_v61 = vpack.c.bf16 %v2350_v60, %v2349_v46 }
0x1640   :  { %3763 = vmatmul.msk.bf16.vlgmr.msra.gmra.mxu0 %vm202_vm14, %v2232_v19  ;;  %3767 = vmatmul.msk.bf16.vlgmr.msra.gmra.mxu1 %vm202_vm14, %v2352_v61  ;;  %v2225_v39 = vpop.xlane.xlu1 %2224 }
0x1641   :  { %4145 = vrcp.f32 %v2225_v39 }
0x1647   :  { %v4146_v1 = vpop.eup %4145 }
0x1648   :  { %v2231_v59 = vmul.f32 %v4146_v1, %v5226_v31 }
0x164a   :  { %v2233_v63 = vpack.c.bf16 %v2231_v59, %v2231_v59 }
0x164b   :  { %v2345_v2 = vpop.xlane.xlu0 %2344 }
0x164c   :  { %4147 = vrcp.f32 %v2345_v2 }
0x1650   :  { %3764 = vmatmul.msk.bf16.gmra.mxu0 %vm202_vm14, %v2233_v63 }
0x1652   :  { %v4148_v37 = vpop.eup %4147 }
0x1653   :  { %v2351_v53 = vmul.f32 %v4148_v37, %v5230_v58 }
0x1655   :  { %v2353_v3 = vpack.c.bf16 %v2351_v53, %v2351_v53 }
0x1657   :  { %3768 = vmatmul.msk.bf16.gmra.mxu1 %vm202_vm14, %v2353_v3  ;;  %v3826_v3 = vld [vmem:[%s5744_s7 + $0x18] sm:$0xff] }
0x165e   :  { %v2410_v20 = vpop.permute.xlu0 %2409 }
0x165f   :  { %2425 = vmatpush.bf16.msra.mxu3 %v2410_v20 }
0x1676   :  { %v2029_v52 = vpop.f32.mrf.mxu0 }
0x1677   :  { %2038 = vst.msk [vmem:[#allocation2] sm:$0xff] %vm171_vm12, %v2029_v52  ;;  %v2137_v56 = vpop.f32.mrf.mxu1  ;;  %v3827_v52 = vld [vmem:[%s5744_s7 + $0x20] sm:$0xff] }
0x1678   :  { %2149 = vrot.lane.b32.xlu2 %v2137_v56, %s5766_s29  ;;  %v3828_v56 = vld [vmem:[%s5744_s7 + $0x28] sm:$0x3] }
0x167e   :  { %v2031_v35 = vpop.f32.mrf.mxu0 }
0x167f   :  { %2039 = vst.msk [vmem:[#allocation2 + $0x8] sm:$0xff] %vm171_vm12, %v2031_v35  ;;  %v2139_v31 = vpop.f32.mrf.mxu1  ;;  %v3919_v35 = vld [vmem:[%s5739_s2 + $0x54] sm:$0xf] }
0x1680   :  { %2151 = vrot.lane.b32.xlu2 %v2139_v31, %s5766_s29  ;;  %v3776_v31 = vld [vmem:[%s5739_s2 + $0x58] sm:$0xf0] }
0x1686   :  { %v2034_v34 = vpop.f32.mrf.mxu0 }
0x1687   :  { %2040 = vst.msk [vmem:[#allocation2 + $0x10] sm:$0x3] %vm274_vm2, %v2034_v34  ;;  %v2142_v6 = vpop.f32.mrf.mxu1  ;;  %v3779_v34 = vor.u32 %v3919_v35, %v3776_v31 }
0x1689   :  { %2541 = vmatpush.bf16.msrb.mxu0 %v3779_v34 }
0x168e   :  { %v2036_v58 = vpop.f32.mrf.mxu0 }
0x168f   :  { %v2144_v45 = vpop.f32.mrf.mxu1 }
0x1690   :  { %v3917_v45 = vld [vmem:[%s5739_s2 + $0x44] sm:$0xf] }
0x16bd   :  { %v2257_v9 = vpop.f32.mrf.mxu0  ;;  %v2377_v48 = vpop.f32.mrf.mxu1 }
0x16be   :  { %2269 = vrot.lane.b32.xlu2 %v2257_v9, %s5767_s30  ;;  %v3772_v9 = vld [vmem:[%s5739_s2 + $0x48] sm:$0xf0] }
0x16c5   :  { %v2259_v7 = vpop.f32.mrf.mxu0  ;;  %v2379_v30 = vpop.f32.mrf.mxu1 }
0x16c6   :  { %2391 = vrot.lane.b32.xlu1 %v2379_v30, %s5768_s16  ;;  %2389 = vrot.lane.b32.xlu2 %v2377_v48, %s5768_s16 }
0x16cd   :  { %v2262_v11 = vpop.f32.mrf.mxu0 }
0x16ce   :  { %2271 = vrot.lane.b32.xlu2 %v2259_v7, %s5767_s30  ;;  %v3775_v7 = vor.u32 %v3917_v45, %v3772_v9 }
0x16d0   :  { %2542 = vmatpush.bf16.msrb.mxu0 %v3775_v7 }
0x16d2   :  { %v2150_v13 = vpop.permute.xlu2 %2149 }
0x16d3   :  { %2158 = vst.msk [vmem:[#allocation2] sm:$0xff] %vm393_vm3, %v2150_v13 }
0x16d4   :  { %v2382_v8 = vpop.f32.mrf.mxu1 }
0x16d5   :  { %v2264_v22 = vpop.f32.mrf.mxu0  ;;  %2393 = vrot.lane.b32.xlu0 %v2382_v8, %s5768_s16 }
0x16d6   :  { %2407 = vrot.lane.b32.xlu2 %v5051_v33, %s5776_s26 }
0x16da   :  { %v2152_v17 = vpop.permute.xlu2 %2151 }
0x16db   :  { %2159 = vst.msk [vmem:[#allocation2 + $0x8] sm:$0xff] %vm393_vm3, %v2152_v17 }
0x16dc   :  { %v2384_v4 = vpop.f32.mrf.mxu1 }
0x16de   :  { %2153 = vrot.lane.b32.xlu2 %v2142_v6, %s5766_s29 }
0x16e6   :  { %2273 = vrot.lane.b32.xlu2 %v2262_v11, %s5767_s30 }
0x1718   :  { %v2270_v18 = vpop.permute.xlu2 %2269 }
0x1719   :  { %2278 = vst.msk [vmem:[#allocation2] sm:$0xff] %vm515_vm4, %v2270_v18 }
0x1720   :  { %v2390_v41 = vpop.permute.xlu2 %2389 }
0x1721   :  { %2398 = vst.msk [vmem:[#allocation2] sm:$0xff] %vm637_vm5, %v2390_v41 }
0x1728   :  { %v2272_v23 = vpop.permute.xlu2 %2271  ;;  %v2401_v10 = vld [vmem:[#allocation2] sm:$0xff] }
0x1729   :  { %2279 = vst.msk [vmem:[#allocation2 + $0x8] sm:$0xff] %vm515_vm4, %v2272_v23 }
0x1730   :  { %v2408_v33 = vpop.permute.xlu2 %2407 }
0x1731   :  { %2426 = vmatpush.bf16.msra.mxu3 %v2408_v33 }
0x1738   :  { %v2392_v24 = vpop.permute.xlu1 %2391  ;;  %v2154_v16 = vpop.permute.xlu2 %2153 }
0x1739   :  { %2399 = vst.msk [vmem:[#allocation2 + $0x8] sm:$0xff] %vm637_vm5, %v2392_v24 }
0x173a   :  { %2160 = vst.msk [vmem:[#allocation2 + $0x10] sm:$0x3] %vm5777_vm11, %v2154_v16 }
0x1740   :  { %v2274_v25 = vpop.permute.xlu2 %2273  ;;  %v2402_v15 = vld [vmem:[#allocation2 + $0x8] sm:$0xff] }
0x1741   :  { %2280 = vst.msk [vmem:[#allocation2 + $0x10] sm:$0x3] %vm5778_vm6, %v2274_v25  ;;  %v2404_v28 = vpack.c.bf16 %v2402_v15, %v2401_v10 }
0x1743   :  { %3769 = vmatmul.msk.bf16.vlgmr.msra.gmra.mxu3 %vm42_vm0, %v2404_v28 }
0x1747   :  { %v2394_v54 = vpop.permute.xlu0 %2393 }
0x1748   :  { %2400 = vst.msk [vmem:[#allocation2 + $0x10] sm:$0x3] %vm5779_vm7, %v2394_v54 }
0x174f   :  { %v2403_v62 = vld [vmem:[#allocation2 + $0x10] sm:$0x3] }
0x1750   :  { %v2405_v29 = vpack.c.bf16 %v2403_v62, %v2403_v62  ;;  %v2506_v62 = vperm.slane %v5059_v26, 2 }
0x1753   :  { %3770 = vmatmul.msk.bf16.gmra.mxu3 %vm42_vm0, %v2405_v29 }
0x17c6   :  { %v2428_v27 = vpop.f32.mrf.mxu3 }
0x17c7   :  { %v2429_v38 = vadd.f32 %v2428_v27, %v2406_v40 }
0x17c9   :  { %v5291_v42 = vadd.f32 %v2429_v38, %v5010_v36 }
0x17cb   :  { %v2440_v43 = vsel %vm42_vm0, %v5291_v42, 0.0 }
0x17cc   :  { %2441 = vadd.xlane.f32.xlu1 %v2440_v43 }
0x17ce   :  { %v2430_v21 = vpop.f32.mrf.mxu3 }
0x17cf   :  { %v2431_v44 = vadd.f32 %v2430_v21, %v2406_v40  ;;  %v2510_v21 = vperm.slane %v5059_v26, 3 }
0x17d1   :  { %v5296_v50 = vadd.f32 %v2431_v44, %v5014_v49 }
0x17d3   :  { %v2443_v51 = vsel %vm42_vm0, %v5296_v50, 0.0 }
0x17d4   :  { %2444 = vadd.xlane.f32.xlu2 %v2443_v51 }
0x17d6   :  { %v2433_v32 = vpop.f32.mrf.mxu3 }
0x17d7   :  { %v2434_v47 = vadd.f32 %v2433_v32, %v2406_v40 }
0x17d9   :  { %v5301_v0 = vadd.f32 %v2434_v47, %v5018_v5 }
0x17db   :  { %v2446_v36 = vsel %vm49_vm1, %v5301_v0, 0.0 }
0x17dc   :  { %2447 = vadd.xlane.f32.xlu0 %v2446_v36 }
0x17de   :  { %v2435_v55 = vpop.f32.mrf.mxu3 }
0x183f   :  { %v2442_v46 = vpop.xlane.xlu1 %2441 }
0x1840   :  { %v2449_v57 = vmul.f32 %v2442_v46, %v4354_v12 }
0x1842   :  { %v2452_v49 = vsub.f32 %v5291_v42, %v2449_v57 }
0x1844   :  { %v2455_v60 = vmul.f32 %v2452_v49, %v2452_v49 }
0x1846   :  { %v2458_v14 = vsel %vm42_vm0, %v2455_v60, 0.0 }
0x1847   :  { %2459 = vadd.xlane.f32.xlu2 %v2458_v14  ;;  %v2445_v19 = vpop.xlane.xlu2 %2444 }
0x1848   :  { %v2450_v61 = vmul.f32 %v2445_v19, %v4354_v12 }
0x184a   :  { %v5310_v5 = vsub.f32 %v5296_v50, %v2450_v61 }
0x184c   :  { %v2456_v39 = vmul.f32 %v5310_v5, %v5310_v5 }
0x184e   :  { %v2461_v1 = vsel %vm42_vm0, %v2456_v39, 0.0  ;;  %v3923_v39 = vld [vmem:[%s5740_s3 + $0x50] sm:$0xff] }
0x184f   :  { %v2448_v59 = vpop.xlane.xlu0 %2447  ;;  %2462 = vadd.xlane.f32.xlu1 %v2461_v1  ;;  %v3922_v1 = vld [vmem:[%s5740_s3 + $0x48] sm:$0xff] }
0x1850   :  { %v2451_v2 = vmul.f32 %v2448_v59, %v4354_v12  ;;  %v3959_v59 = vld [vmem:[%s5742_s5 + $0x2] ss:$0 sm:$0xff] }
0x1852   :  { %v5317_v63 = vsub.f32 %v5301_v0, %v2451_v2  ;;  %v3921_v2 = vld [vmem:[%s5740_s3 + $0x40] sm:$0xff] }
0x1854   :  { %v2457_v37 = vmul.f32 %v5317_v63, %v5317_v63 }
0x1856   :  { %v2464_v53 = vsel %vm49_vm1, %v2457_v37, 0.0 }
0x1857   :  { %2465 = vadd.xlane.f32.xlu0 %v2464_v53 }
0x185f   :  { %2731 = vperm.xlu2 %3954, %v3826_v3  }
0x1868   :  { %2736 = vperm.xlu1 %3955, %v3827_v52  }
0x186b   :  { %2741 = vperm.xlu0 %3956, %v3828_v56  }
0x18ba   :  { %v2460_v6 = vpop.xlane.xlu2 %2459 }
0x18bb   :  { %v2467_v58 = vmul.f32 %v2460_v6, %v4354_v12 }
0x18bd   :  { %v2470_v48 = vadd.f32 1e-05, %v2467_v58 }
0x18bf   :  { %4149 = vrsqrt.f32 %v2470_v48  ;;  %vm2479_vm9 = vweird.f32 %v2470_v48 }
0x18c2   :  { %v2463_v30 = vpop.xlane.xlu1 %2462 }
0x18c3   :  { %v2468_v11 = vmul.f32 %v2463_v30, %v4354_v12 }
0x18c5   :  { %v4150_v13 = vpop.eup %4149  ;;  %v2471_v8 = vadd.f32 1e-05, %v2468_v11 }
0x18c6   :  { %v2474_v22 = vmul.f32 %v4150_v13, %v2470_v48  ;;  %vm2480_vm8 = vweird.f32 %v4150_v13 }
0x18c7   :  { %4151 = vrsqrt.f32 %v2471_v8  ;;  %vm2481_vm10 = vmor %vm2479_vm9, %vm2480_vm8  ;;  %vm2489_vm6 = vweird.f32 %v2471_v8 }
0x18c8   :  { %v2475_v17 = vmul.f32 %v4150_v13, %v2474_v22 }
0x18ca   :  { %v2476_v4 = vmul.f32 0.5, %v2475_v17  ;;  %v2466_v18 = vpop.xlane.xlu0 %2465 }
0x18cb   :  { %v2469_v20 = vmul.f32 %v2466_v18, %v4354_v12 }
0x18cc   :  { %v2477_v41 = vsub.f32 1.5, %v2476_v4 }
0x18cd   :  { %v4152_v23 = vpop.eup %4151  ;;  %v2472_v33 = vadd.f32 1e-05, %v2469_v20 }
0x18ce   :  { %v2478_v24 = vmul.f32 %v4150_v13, %v2477_v41  ;;  %v2484_v16 = vmul.f32 %v4152_v23, %v2471_v8  ;;  %vm2490_vm11 = vweird.f32 %v4152_v23 }
0x18cf   :  { %4153 = vrsqrt.f32 %v2472_v33  ;;  %vm2491_vm7 = vmor %vm2489_vm6, %vm2490_vm11  ;;  %vm2499_vm9 = vweird.f32 %v2472_v33  ;;  %vm5780_vm11 = vcmask 523264  }
0x18d0   :  { %v2485_v25 = vmul.f32 %v4152_v23, %v2484_v16  ;;  %v2482_v10 = vsel %vm2481_vm10, %v4150_v13, %v2478_v24  ;;  %vm5781_vm6 = vmmov %vm5780_vm11 }
0x18d1   :  { %v2503_v29 = vmul.f32 %v2482_v10, %v2452_v49 }
0x18d2   :  { %v2486_v15 = vmul.f32 0.5, %v2485_v25 }
0x18d3   :  { %v2507_v44 = vmul.f32 %v2506_v62, %v2503_v29 }
0x18d4   :  { %v2487_v28 = vsub.f32 1.5, %v2486_v15 }
0x18d5   :  { %v4154_v54 = vpop.eup %4153  ;;  %v2511_v55 = vadd.f32 %v2510_v21, %v2507_v44  ;;  %v3813_v44 = vld [vmem:[%s5743_s6 + $0x2c] sm:$0x1] }
0x18d6   :  { %v2488_v40 = vmul.f32 %v4152_v23, %v2487_v28  ;;  %v2494_v27 = vmul.f32 %v4154_v54, %v2472_v33  ;;  %vm2500_vm8 = vweird.f32 %v4154_v54 }
0x18d7   :  { %vm2501_vm10 = vmor %vm2499_vm9, %vm2500_vm8 }
0x18d8   :  { %v2492_v38 = vsel %vm2491_vm7, %v4152_v23, %v2488_v40  ;;  %v2495_v43 = vmul.f32 %v4154_v54, %v2494_v27  ;;  %v3926_v40 = vld [vmem:[%s5743_s6 + $0x24] sm:$0xff] }
0x18d9   :  { %v2504_v51 = vmul.f32 %v2492_v38, %v5310_v5  ;;  %v3924_v5 = vld [vmem:[%s5740_s3 + $0x58] sm:$0xff]  ;;  %3818 = vmatmul.msk.bf16.vlgmr.msrb.gmra.mxu1 %vm202_vm14, %v3926_v40  ;;  %v3836_v40 = vld [vmem:[%s5739_s2 + $0x60] sm:$0xf] }
0x18da   :  { %v2496_v32 = vmul.f32 0.5, %v2495_v43  ;;  %2626 = vmatpush.bf16.msrb.mxu2 %v3924_v5  ;;  %v4238_v43 = vld [vmem:[%s5741_s4 + $0x10] sm:$0x3f]  ;;  %v3925_v5 = vld [vmem:[%s5743_s6 + $0x18] sm:$0xff] }
0x18db   :  { %v2508_v47 = vmul.f32 %v2506_v62, %v2504_v51 }
0x18dc   :  { %v2497_v36 = vsub.f32 1.5, %v2496_v32  ;;  %v2660_v32 = vunpack.c.l.b16 %v3813_v44 }
0x18dd   :  { %v2512_v46 = vadd.f32 %v2510_v21, %v2508_v47 }
0x18de   :  { %v2498_v57 = vmul.f32 %v4154_v54, %v2497_v36  ;;  %2627 = vmatpush.bf16.msrb.mxu2 %v3923_v39 }
0x18df   :  { %v2514_v49 = vpack.c.bf16 %v2512_v46, %v2511_v55  ;;  %v2662_v55 = vpack.c.b16 %v2660_v32, %v2660_v32 }
0x18e0   :  { %v2502_v60 = vsel %vm2501_vm10, %v4154_v54, %v2498_v57 }
0x18e1   :  { %3780 = vmatmul.msk.bf16.vlgmr.msrb.gmra.mxu0 %vm42_vm0, %v2514_v49  ;;  %v2505_v14 = vmul.f32 %v2502_v60, %v5317_v63 }
0x18e2   :  { %2628 = vmatpush.bf16.msrb.mxu2 %v3922_v1 }
0x18e3   :  { %v2509_v19 = vmul.f32 %v2506_v62, %v2505_v14 }
0x18e5   :  { %v2513_v26 = vadd.f32 %v2510_v21, %v2509_v19  ;;  %v2591_v21 = vperm.slane %v4238_v43, 5 }
0x18e6   :  { %2629 = vmatpush.bf16.msrb.mxu2 %v3921_v2 }
0x18e7   :  { %v2515_v61 = vpack.c.bf16 %v2513_v26, %v2513_v26 }
0x18e9   :  { %3819 = vmatmul.msk.bf16.gmra.mxu1 %vm202_vm14, %v2662_v55 }
0x18f1   :  { %3781 = vmatmul.msk.bf16.gmra.mxu0 %vm42_vm0, %v2515_v61 }
0x1956   :  { %v2681_v1 = vpop.f32.mrf.mxu1 }
0x195e   :  { %v2544_v63 = vpop.f32.mrf.mxu0 }
0x195f   :  { %v2545_v37 = vadd.f32 %v3959_v59, %v2544_v63 }
0x1961   :  { %v2556_v53 = vmul.f32 0.044715, %v2545_v37  ;;  %v2553_v23 = vmul.f32 0.5, %v2545_v37 }
0x1963   :  { %v2559_v3 = vmul.f32 %v2556_v53, %v2545_v37  ;;  %v2732_v53 = vpop.permute.xlu2 %2731 }
0x1965   :  { %v2562_v52 = vmul.f32 %v2559_v3, %v2545_v37 }
0x1966   :  { %v2546_v56 = vpop.f32.mrf.mxu0 }
0x1967   :  { %v2565_v35 = vadd.f32 %v2562_v52, %v2545_v37  ;;  %v2547_v31 = vadd.f32 %v3959_v59, %v2546_v56 }
0x1969   :  { %v2557_v34 = vmul.f32 0.044715, %v2547_v31  ;;  %v2568_v6 = vmul.f32 0.7978846, %v2565_v35  ;;  %v2554_v33 = vmul.f32 0.5, %v2547_v31 }
0x196b   :  { %v2560_v58 = vmul.f32 %v2557_v34, %v2547_v31  ;;  %4155 = vtanh.f32 %v2568_v6 }
0x196d   :  { %v2563_v45 = vmul.f32 %v2560_v58, %v2547_v31 }
0x196e   :  { %v2549_v9 = vpop.f32.mrf.mxu0 }
0x196f   :  { %v2566_v48 = vadd.f32 %v2563_v45, %v2547_v31  ;;  %v2550_v7 = vadd.f32 %v3959_v59, %v2549_v9  ;;  %v2737_v31 = vpop.permute.xlu1 %2736  ;;  %v2742_v9 = vpop.permute.xlu0 %2741 }
0x1971   :  { %v2569_v30 = vmul.f32 0.7978846, %v2566_v48  ;;  %v2558_v11 = vmul.f32 0.044715, %v2550_v7  ;;  %v4156_v8 = vpop.eup %4155  ;;  %v2555_v54 = vmul.f32 0.5, %v2550_v7 }
0x1972   :  { %v2574_v18 = vadd.f32 1.0, %v4156_v8 }
0x1973   :  { %4157 = vtanh.f32 %v2569_v30  ;;  %v2561_v13 = vmul.f32 %v2558_v11, %v2550_v7 }
0x1974   :  { %v2577_v16 = vmul.f32 %v2574_v18, %v2553_v23 }
0x1975   :  { %v2564_v22 = vmul.f32 %v2561_v13, %v2550_v7 }
0x1976   :  { %v2551_v17 = vpop.f32.mrf.mxu0 }
0x1977   :  { %v2567_v4 = vadd.f32 %v2564_v22, %v2550_v7 }
0x1979   :  { %v4158_v20 = vpop.eup %4157  ;;  %v2570_v41 = vmul.f32 0.7978846, %v2567_v4 }
0x197a   :  { %v2575_v24 = vadd.f32 1.0, %v4158_v20 }
0x197b   :  { %4159 = vtanh.f32 %v2570_v41 }
0x197c   :  { %v2578_v25 = vmul.f32 %v2575_v24, %v2554_v33 }
0x197e   :  { %v2580_v10 = vpack.c.bf16 %v2578_v25, %v2577_v16 }
0x1980   :  { %3806 = vmatmul.msk.bf16.vlgmr.msrb.gmra.mxu2 %vm5780_vm11, %v2580_v10 }
0x1981   :  { %v4160_v15 = vpop.eup %4159 }
0x1982   :  { %v2576_v28 = vadd.f32 1.0, %v4160_v15  ;;  %v3840_v15 = vld [vmem:[%s5739_s2 + $0x70] sm:$0xf] }
0x1984   :  { %v2579_v62 = vmul.f32 %v2576_v28, %v2555_v54  ;;  %v3930_v28 = vld [vmem:[%s5739_s2 + $0x74] sm:$0xf0] }
0x1985   :  { %v5423_v54 = vor.u32 %v3930_v28, %v3840_v15 }
0x1986   :  { %v2581_v29 = vpack.c.bf16 %v2579_v62, %v2579_v62 }
0x1987   :  { %2854 = vmatpush.bf16.msra.mxu0 %v5423_v54 }
0x1990   :  { %3807 = vmatmul.msk.bf16.gmra.mxu2 %vm5781_vm6, %v2581_v29 }
0x1a03   :  { %v2631_v27 = vpop.f32.mrf.mxu2 }
0x1a04   :  { %v2632_v57 = vadd.f32 %v2631_v27, %v2591_v21  ;;  %v3928_v27 = vld [vmem:[%s5739_s2 + $0x64] sm:$0xf0] }
0x1a05   :  { %v5433_v43 = vor.u32 %v3928_v27, %v3836_v40 }
0x1a06   :  { %v2640_v19 = vadd.f32 %v2632_v57, %v5291_v42  ;;  %v2683_v42 = vpop.f32.mrf.mxu1 }
0x1a07   :  { %2855 = vmatpush.bf16.msra.mxu0 %v5433_v43 }
0x1a0b   :  { %v2633_v38 = vpop.f32.mrf.mxu2 }
0x1a0c   :  { %v2634_v36 = vadd.f32 %v2633_v38, %v2591_v21 }
0x1a0e   :  { %v2641_v60 = vadd.f32 %v2634_v36, %v5296_v50  ;;  %v2686_v59 = vpop.f32.mrf.mxu1 }
0x1a10   :  { %v2647_v61 = vpack.c.bf16 %v2641_v60, %v2640_v19 }
0x1a13   :  { %v2636_v51 = vpop.f32.mrf.mxu2 }
0x1a14   :  { %v2637_v47 = vadd.f32 %v2636_v51, %v2591_v21 }
0x1a16   :  { %v2642_v46 = vadd.f32 %v2637_v47, %v5301_v0  ;;  %v3810_v0 = vld [vmem:[%s5743_s6 + $0x20] sm:$0x1]  ;;  %v2688_v2 = vpop.f32.mrf.mxu1 }
0x1a17   :  { %v2695_v39 = vunpack.c.l.b16 %v3810_v0 }
0x1a18   :  { %v2648_v49 = vpack.c.bf16 %v2642_v46, %v2642_v46 }
0x1a19   :  { %v2697_v50 = vpack.c.b16 %v2695_v39, %v2695_v39 }
0x1a1a   :  { %v2705_v14 = vsel %vm250_vm13, %v2648_v49, 0 }
0x1a1b   :  { %v2638_v26 = vpop.f32.mrf.mxu2  ;;  %2713 = vmatpush.bf16.msrb.mxu3 %v2705_v14 }
0x1a1f   :  { %2714 = vmatpush.bf16.msrb.mxu3 %v2647_v61 }
0x1a22   :  { %3824 = vmatmul.msk.bf16.vlgmr.msrb.gmra.mxu3 %vm202_vm14, %v3925_v5  ;;  %v5441_v5 = vld [vmem:[%s5741_s4 + $0x18] sm:$0x3f] }
0x1a32   :  { %3825 = vmatmul.msk.bf16.gmra.mxu3 %vm202_vm14, %v2697_v50 }
0x1aa5   :  { %v2716_v63 = vpop.f32.mrf.mxu3 }
0x1aa6   :  { %v2717_v37 = vadd.f32 %v2716_v63, %v2681_v1 }
0x1aa8   :  { %v5392_v3 = vadd.f32 %v2732_v53, %v2717_v37 }
0x1aaa   :  { %v2754_v52 = vsel %vm42_vm0, %v5392_v3, 0.0 }
0x1aab   :  { %2755 = vadd.xlane.f32.xlu2 %v2754_v52  ;;  %v2824_v52 = vperm.slane %v5441_v5, 1 }
0x1aad   :  { %v2718_v56 = vpop.f32.mrf.mxu3 }
0x1aae   :  { %v2719_v35 = vadd.f32 %v2718_v56, %v2683_v42  ;;  %v2820_v42 = vperm.slane %v5441_v5, 0 }
0x1ab0   :  { %v5396_v34 = vadd.f32 %v2737_v31, %v2719_v35 }
0x1ab2   :  { %v2757_v6 = vsel %vm42_vm0, %v5396_v34, 0.0 }
0x1ab3   :  { %2758 = vadd.xlane.f32.xlu0 %v2757_v6 }
0x1ab5   :  { %v2721_v58 = vpop.f32.mrf.mxu3 }
0x1ab6   :  { %v2722_v45 = vadd.f32 %v2721_v58, %v2686_v59 }
0x1ab8   :  { %v5400_v48 = vadd.f32 %v2742_v9, %v2722_v45 }
0x1aba   :  { %v2760_v7 = vsel %vm49_vm1, %v5400_v48, 0.0 }
0x1abb   :  { %2761 = vadd.xlane.f32.xlu1 %v2760_v7 }
0x1abd   :  { %v2723_v30 = vpop.f32.mrf.mxu3 }
0x1b1e   :  { %v2756_v11 = vpop.xlane.xlu2 %2755 }
0x1b1f   :  { %v2763_v13 = vmul.f32 %v2756_v11, %v4354_v12 }
0x1b21   :  { %v2766_v8 = vsub.f32 %v5392_v3, %v2763_v13 }
0x1b23   :  { %v2769_v22 = vmul.f32 %v2766_v8, %v2766_v8 }
0x1b25   :  { %v2772_v17 = vsel %vm42_vm0, %v2769_v22, 0.0 }
0x1b26   :  { %v2759_v4 = vpop.xlane.xlu0 %2758  ;;  %2773 = vadd.xlane.f32.xlu2 %v2772_v17 }
0x1b27   :  { %v2764_v18 = vmul.f32 %v2759_v4, %v4354_v12 }
0x1b29   :  { %v2767_v20 = vsub.f32 %v5396_v34, %v2764_v18 }
0x1b2b   :  { %v2770_v41 = vmul.f32 %v2767_v20, %v2767_v20 }
0x1b2d   :  { %v2775_v23 = vsel %vm42_vm0, %v2770_v41, 0.0 }
0x1b2e   :  { %v2762_v33 = vpop.xlane.xlu1 %2761  ;;  %2776 = vadd.xlane.f32.xlu0 %v2775_v23 }
0x1b2f   :  { %v2765_v24 = vmul.f32 %v2762_v33, %v4354_v12 }
0x1b31   :  { %v5412_v16 = vsub.f32 %v5400_v48, %v2765_v24 }
0x1b33   :  { %v2771_v25 = vmul.f32 %v5412_v16, %v5412_v16 }
0x1b35   :  { %v2778_v10 = vsel %vm49_vm1, %v2771_v25, 0.0 }
0x1b36   :  { %2779 = vadd.xlane.f32.xlu1 %v2778_v10 }
0x1b99   :  { %v2774_v62 = vpop.xlane.xlu2 %2773 }
0x1b9a   :  { %v2781_v29 = vmul.f32 %v2774_v62, %v4354_v12 }
0x1b9c   :  { %v2784_v38 = vadd.f32 1e-05, %v2781_v29 }
0x1b9e   :  { %4161 = vrsqrt.f32 %v2784_v38  ;;  %vm2793_vm8 = vweird.f32 %v2784_v38 }
0x1ba1   :  { %v2777_v21 = vpop.xlane.xlu0 %2776 }
0x1ba2   :  { %v2782_v44 = vmul.f32 %v2777_v21, %v4354_v12 }
0x1ba4   :  { %v4162_v51 = vpop.eup %4161  ;;  %v2785_v32 = vadd.f32 1e-05, %v2782_v44 }
0x1ba5   :  { %v2788_v47 = vmul.f32 %v4162_v51, %v2784_v38  ;;  %vm2794_vm7 = vweird.f32 %v4162_v51 }
0x1ba6   :  { %4163 = vrsqrt.f32 %v2785_v32  ;;  %vm2795_vm9 = vmor %vm2793_vm8, %vm2794_vm7  ;;  %vm2803_vm11 = vweird.f32 %v2785_v32 }
0x1ba7   :  { %v2789_v36 = vmul.f32 %v4162_v51, %v2788_v47 }
0x1ba9   :  { %v2790_v55 = vmul.f32 0.5, %v2789_v36  ;;  %v2780_v46 = vpop.xlane.xlu1 %2779 }
0x1baa   :  { %v2783_v57 = vmul.f32 %v2780_v46, %v4354_v12 }
0x1bab   :  { %v2791_v49 = vsub.f32 1.5, %v2790_v55 }
0x1bac   :  { %v4164_v60 = vpop.eup %4163  ;;  %v2786_v14 = vadd.f32 1e-05, %v2783_v57 }
0x1bad   :  { %v2792_v19 = vmul.f32 %v4162_v51, %v2791_v49  ;;  %v2798_v26 = vmul.f32 %v4164_v60, %v2785_v32  ;;  %vm2804_vm10 = vweird.f32 %v4164_v60 }
0x1bae   :  { %4165 = vrsqrt.f32 %v2786_v14  ;;  %vm2805_vm6 = vmor %vm2803_vm11, %vm2804_vm10  ;;  %vm2813_vm8 = vweird.f32 %v2786_v14 }
0x1baf   :  { %v2799_v61 = vmul.f32 %v4164_v60, %v2798_v26  ;;  %v2796_v0 = vsel %vm2795_vm9, %v4162_v51, %v2792_v19 }
0x1bb0   :  { %v2817_v59 = vmul.f32 %v2796_v0, %v2766_v8 }
0x1bb1   :  { %v2800_v39 = vmul.f32 0.5, %v2799_v61  ;;  %v4239_v61 = vld [vmem:[%s5738_s1] sm:$0xff] }
0x1bb2   :  { %v2821_v56 = vmul.f32 %v2820_v42, %v2817_v59 }
0x1bb3   :  { %v2801_v50 = vsub.f32 1.5, %v2800_v39 }
0x1bb4   :  { %v4166_v1 = vpop.eup %4165  ;;  %v2825_v45 = vadd.f32 %v2824_v52, %v2821_v56 }
0x1bb5   :  { %v2802_v2 = vmul.f32 %v4164_v60, %v2801_v50  ;;  %v2808_v63 = vmul.f32 %v4166_v1, %v2786_v14  ;;  %vm2814_vm7 = vweird.f32 %v4166_v1 }
0x1bb6   :  { %vm2815_vm9 = vmor %vm2813_vm8, %vm2814_vm7  ;;  %vm5787_vm8 = vcmask 523264  }
0x1bb7   :  { %v2806_v37 = vsel %vm2805_vm6, %v4164_v60, %v2802_v2  ;;  %v2809_v53 = vmul.f32 %v4166_v1, %v2808_v63 }
0x1bb8   :  { %v2818_v35 = vmul.f32 %v2806_v37, %v2767_v20 }
0x1bb9   :  { %v2810_v31 = vmul.f32 0.5, %v2809_v53 }
0x1bba   :  { %v2822_v6 = vmul.f32 %v2820_v42, %v2818_v35 }
0x1bbb   :  { %v2811_v58 = vsub.f32 1.5, %v2810_v31 }
0x1bbc   :  { %v2826_v9 = vadd.f32 %v2824_v52, %v2822_v6 }
0x1bbd   :  { %v2812_v7 = vmul.f32 %v4166_v1, %v2811_v58 }
0x1bbe   :  { %v2828_v30 = vpack.c.bf16 %v2826_v9, %v2825_v45 }
0x1bbf   :  { %v2816_v11 = vsel %vm2815_vm9, %v4166_v1, %v2812_v7  ;;  %v4240_v1 = vld [vmem:[%s5738_s1 + $0x8] sm:$0xff]  ;;  %vm5788_vm9 = vmmov %vm5787_vm8 }
0x1bc0   :  { %3842 = vmatmul.msk.bf16.vlgmr.msra.gmra.mxu0 %vm42_vm0, %v2828_v30  ;;  %v2819_v13 = vmul.f32 %v2816_v11, %v5412_v16 }
0x1bc2   :  { %v2823_v8 = vmul.f32 %v2820_v42, %v2819_v13 }
0x1bc4   :  { %v2827_v22 = vadd.f32 %v2824_v52, %v2823_v8 }
0x1bc6   :  { %v2829_v17 = vpack.c.bf16 %v2827_v22, %v2827_v22  ;;  %v4241_v22 = vld [vmem:[%s5738_s1 + $0x10] sm:$0x3] }
0x1bd0   :  { %3843 = vmatmul.msk.bf16.gmra.mxu0 %vm42_vm0, %v2829_v17 }
0x1c3d   :  { %v2857_v4 = vpop.f32.mrf.mxu0 }
0x1c45   :  { %v2859_v18 = vpop.f32.mrf.mxu0 }
0x1c46   :  { %v5448_v20 = vpack.c.bf16 %v2859_v18, %v2857_v4 }
0x1c48   :  { %2870 = vrot.lane.b32.xlu1 %v5448_v20, %s4270_s21 }
0x1c4d   :  { %v2862_v41 = vpop.f32.mrf.mxu0 }
0x1c4e   :  { %v5452_v23 = vpack.c.bf16 %v2862_v41, %v2862_v41 }
0x1c50   :  { %3100 = vrot.lane.b32.xlu1 %v5452_v23, %s4274_s9  ;;  %2980 = vrot.lane.b32.xlu0 %v5452_v23, %s4271_s22 }
0x1c51   :  { %2872 = vrot.lane.b32.xlu2 %v5452_v23, %s4270_s21  ;;  %s5782_s21 = smov 64  }
0x1c55   :  { %v2864_v33 = vpop.f32.mrf.mxu0 }
0x1c58   :  { %3098 = vrot.lane.b32.xlu1 %v5448_v20, %s4274_s9  ;;  %2978 = vrot.lane.b32.xlu0 %v5448_v20, %s4271_s22 }
0x1c59   :  { %2974 = vrot.lane.b32.xlu2 %v5448_v20, %s4273_s24 }
0x1c60   :  { %3214 = vrot.lane.b32.xlu1 %v5448_v20, %s4276_s11  ;;  %2976 = vrot.lane.b32.xlu0 %v5452_v23, %s4273_s24 }
0x1c61   :  { %3220 = vrot.lane.b32.xlu2 %v5452_v23, %s4275_s10 }
0x1c68   :  { %3218 = vrot.lane.b32.xlu0 %v5448_v20, %s4275_s10  ;;  %s4287_s10 = smov 128  }
0x1c69   :  { %3094 = vrot.lane.b32.xlu2 %v5448_v20, %s4277_s12 }
0x1c70   :  { %3096 = vrot.lane.b32.xlu0 %v5452_v23, %s4277_s12 }
0x1c71   :  { %3216 = vrot.lane.b32.xlu2 %v5452_v23, %s4276_s11  ;;  %s5783_s11 = smov 56  }
0x1c79   :  { %2941 = vrot.lane.b32.xlu2 %v5452_v23, %s5782_s21 }
0x1cab   :  { %v2873_v24 = vpop.permute.xlu2 %2872 }
0x1cac   :  { %v2884_v16 = vsel %vm171_vm12, %v2873_v24, 0 }
0x1cad   :  { %2892 = vmatpush.bf16.xpose.msra.mxu2 %v2884_v16 }
0x1cb3   :  { %v2975_v25 = vpop.permute.xlu2 %2974 }
0x1cba   :  { %v2871_v10 = vpop.permute.xlu1 %2870 }
0x1cbb   :  { %v2881_v15 = vsel %vm171_vm12, %v2871_v10, 0  ;;  %v3221_v28 = vpop.permute.xlu2 %3220 }
0x1cbc   :  { %2893 = vmatpush.bf16.xpose.msra.mxu2 %v2881_v15  ;;  %v3232_v36 = vsel %vm171_vm12, %v3221_v28, 0 }
0x1cc2   :  { %v3101_v62 = vpop.permute.xlu1 %3100  ;;  %v2981_v29 = vpop.permute.xlu0 %2980 }
0x1cc3   :  { %v3112_v40 = vsel %vm171_vm12, %v3101_v62, 0  ;;  %v2992_v27 = vsel %vm171_vm12, %v2981_v29, 0  ;;  %v3095_v38 = vpop.permute.xlu2 %3094  ;;  %3844 = vmatmul.msk.bf16.vlgmr.msra.gmra.mxu2 %vm171_vm12, %v5448_v20 }
0x1cc4   :  { %3000 = vmatpush.bf16.xpose.msra.mxu3 %v2992_v27  ;;  %3120 = vmatpush.bf16.xpose.msrb.mxu2 %v3112_v40 }
0x1cca   :  { %v3099_v21 = vpop.permute.xlu1 %3098  ;;  %v2979_v44 = vpop.permute.xlu0 %2978 }
0x1ccb   :  { %v3109_v51 = vsel %vm171_vm12, %v3099_v21, 0  ;;  %v2989_v32 = vsel %vm171_vm12, %v2979_v44, 0  ;;  %v3217_v47 = vpop.permute.xlu2 %3216 }
0x1ccc   :  { %3001 = vmatpush.bf16.xpose.msra.mxu3 %v2989_v32  ;;  %3121 = vmatpush.bf16.xpose.msrb.mxu2 %v3109_v51 }
0x1cd2   :  { %v2977_v55 = vpop.permute.xlu0 %2976  ;;  %v3215_v14 = vpop.permute.xlu1 %3214 }
0x1cd3   :  { %v2942_v46 = vpop.permute.xlu2 %2941  ;;  %3845 = vmatmul.msk.bf16.gmra.mxu2 %vm171_vm12, %v5452_v23  ;;  %3848 = vmatmul.msk.bf16.vlgmr.msra.gmra.mxu3 %vm171_vm12, %v2975_v25 }
0x1cd4   :  { %3240 = vmatpush.bf16.xpose.msrb.mxu3 %v3232_v36  ;;  %v2951_v57 = vsel %vm250_vm13, %v2942_v46, 0 }
0x1cd5   :  { %2959 = vmatpush.bf16.msra.mxu1 %v2951_v57 }
0x1cda   :  { %v3219_v49 = vpop.permute.xlu0 %3218 }
0x1cdb   :  { %v3229_v60 = vsel %vm171_vm12, %v3219_v49, 0 }
0x1cdc   :  { %3241 = vmatpush.bf16.xpose.msrb.mxu3 %v3229_v60 }
0x1ce2   :  { %v3097_v19 = vpop.permute.xlu0 %3096 }
0x1ce3   :  { %3849 = vmatmul.msk.bf16.gmra.mxu3 %vm171_vm12, %v2977_v55  ;;  %3852 = vmatmul.msk.bf16.vlgmr.msrb.gmra.mxu2 %vm171_vm12, %v3095_v38 }
0x1cf3   :  { %3853 = vmatmul.msk.bf16.gmra.mxu2 %vm171_vm12, %v3097_v19  ;;  %3856 = vmatmul.msk.bf16.vlgmr.msrb.gmra.mxu3 %vm171_vm12, %v3215_v14 }
0x1d03   :  { %3857 = vmatmul.msk.bf16.gmra.mxu3 %vm171_vm12, %v3217_v47 }
0x1d46   :  { %v2895_v26 = vpop.f32.mrf.mxu2 }
0x1d47   :  { %v2896_v0 = vadd.f32 %v4239_v61, %v2895_v26 }
0x1d49   :  { %v2904_v39 = vsel %vm202_vm14, %v2896_v0, -inf }
0x1d4a   :  { %2905 = vmax.xlane.f32.xlu1 %v2904_v39 }
0x1d4e   :  { %v2897_v50 = vpop.f32.mrf.mxu2 }
0x1d4f   :  { %v2898_v42 = vadd.f32 %v4240_v1, %v2897_v50 }
0x1d51   :  { %v2907_v59 = vsel %vm202_vm14, %v2898_v42, -inf }
0x1d52   :  { %2908 = vmax.xlane.f32.xlu0 %v2907_v59 }
0x1d56   :  { %v2900_v2 = vpop.f32.mrf.mxu2  ;;  %v3003_v63 = vpop.f32.mrf.mxu3 }
0x1d57   :  { %v3004_v37 = vadd.f32 %v4239_v61, %v3003_v63  ;;  %v2901_v17 = vadd.f32 %v4241_v22, %v2900_v2 }
0x1d59   :  { %v3012_v53 = vsel %vm202_vm14, %v3004_v37, -inf  ;;  %v2910_v18 = vsel %vm209_vm15, %v2901_v17, -inf }
0x1d5a   :  { %3013 = vmax.xlane.f32.xlu2 %v3012_v53 }
0x1d5e   :  { %v2902_v52 = vpop.f32.mrf.mxu2  ;;  %v3005_v56 = vpop.f32.mrf.mxu3 }
0x1d5f   :  { %v3006_v35 = vadd.f32 %v4240_v1, %v3005_v56 }
0x1d61   :  { %v3015_v31 = vsel %vm202_vm14, %v3006_v35, -inf }
0x1d62   :  { %3016 = vmax.xlane.f32.xlu1 %v3015_v31 }
0x1d66   :  { %2939 = vrot.lane.b32.xlu0 %v5448_v20, %s5782_s21  ;;  %v3008_v6 = vpop.f32.mrf.mxu3  ;;  %v3123_v58 = vpop.f32.mrf.mxu2  ;;  %s4286_s21 = smov [#allocation3]  }
0x1d67   :  { %v5523_v33 = vadd.f32 %v4241_v22, %v3008_v6  ;;  %v5535_v28 = vadd.f32 %v4239_v61, %v3123_v58  ;;  %s3583_s22 = sshll.u32 %s4286_s21, 4  ;;  %s3584_s22 = int_to_ptr.vmem [resolvable:$true] %s3583_s22 }
0x1d69   :  { %v3018_v16 = vsel %vm209_vm15, %v5523_v33, -inf  ;;  %v3132_v29 = vsel %vm202_vm14, %v5535_v28, -inf }
0x1d6e   :  { %v3010_v45 = vpop.f32.mrf.mxu3  ;;  %v3125_v9 = vpop.f32.mrf.mxu2 }
0x1d6f   :  { %v5521_v41 = vadd.f32 %v4240_v1, %v3125_v9 }
0x1d71   :  { %v3135_v24 = vsel %vm202_vm14, %v5521_v41, -inf }
0x1d72   :  { %3047 = vrot.lane.b32.xlu2 %v5448_v20, %s5783_s11 }
0x1d76   :  { %v3128_v7 = vpop.f32.mrf.mxu2  ;;  %v3243_v30 = vpop.f32.mrf.mxu3 }
0x1d77   :  { %v5531_v10 = vadd.f32 %v4239_v61, %v3243_v30  ;;  %v5541_v40 = vadd.f32 %v4241_v22, %v3128_v7 }
0x1d79   :  { %v3252_v62 = vsel %vm202_vm14, %v5531_v10, -inf  ;;  %v3138_v38 = vsel %vm209_vm15, %v5541_v40, -inf }
0x1d7b   :  { %3049 = vrot.lane.b32.xlu1 %v5452_v23, %s5783_s11 }
0x1d7e   :  { %v3130_v11 = vpop.f32.mrf.mxu2  ;;  %v3245_v13 = vpop.f32.mrf.mxu3 }
0x1d7f   :  { %v5543_v27 = vadd.f32 %v4240_v1, %v3245_v13 }
0x1d81   :  { %v3255_v21 = vsel %vm202_vm14, %v5543_v27, -inf }
0x1d86   :  { %v3248_v8 = vpop.f32.mrf.mxu3 }
0x1d87   :  { %v5529_v25 = vadd.f32 %v4241_v22, %v3248_v8 }
0x1d89   :  { %v3258_v15 = vsel %vm209_vm15, %v5529_v25, -inf }
0x1d8e   :  { %v3250_v4 = vpop.f32.mrf.mxu3 }
0x1d90   :  { %2911 = vmax.xlane.f32.xlu0 %v2910_v18 }
0x1d98   :  { %3136 = vmax.xlane.f32.xlu0 %v3135_v24 }
0x1d9b   :  { %3019 = vmax.xlane.f32.xlu2 %v3018_v16 }
0x1da0   :  { %3259 = vmax.xlane.f32.xlu0 %v3258_v15 }
0x1da3   :  { %3253 = vmax.xlane.f32.xlu2 %v3252_v62 }
0x1da5   :  { %3133 = vmax.xlane.f32.xlu1 %v3132_v29 }
0x1dab   :  { %3139 = vmax.xlane.f32.xlu2 %v3138_v38 }
0x1dad   :  { %3256 = vmax.xlane.f32.xlu1 %v3255_v21 }
0x1dbd   :  { %v2906_v44 = vpop.xlane.xlu1 %2905 }
0x1dbe   :  { %v2913_v51 = vsub.f32 %v2896_v0, %v2906_v44 }
0x1dc0   :  { %v2916_v32 = vmul.f32 1.442695, %v2913_v51 }
0x1dc2   :  { %4167 = vpow2.f32 %v2916_v32 }
0x1dc5   :  { %v2909_v47 = vpop.xlane.xlu0 %2908 }
0x1dc6   :  { %v2914_v36 = vsub.f32 %v2898_v42, %v2909_v47 }
0x1dc8   :  { %v5549_v55 = vpop.eup %4167  ;;  %v2918_v46 = vmul.f32 1.442695, %v2914_v36 }
0x1dc9   :  { %v2922_v57 = vsel %vm202_vm14, %v5549_v55, 0.0 }
0x1dca   :  { %4169 = vpow2.f32 %v2918_v46  ;;  %2923 = vadd.xlane.f32.xlu0 %v2922_v57 }
0x1dcd   :  { %v3014_v49 = vpop.xlane.xlu2 %3013 }
0x1dce   :  { %v3021_v60 = vsub.f32 %v3004_v37, %v3014_v49 }
0x1dd0   :  { %v5553_v14 = vpop.eup %4169  ;;  %v3024_v19 = vmul.f32 1.442695, %v3021_v60 }
0x1dd1   :  { %v2925_v26 = vsel %vm202_vm14, %v5553_v14, 0.0 }
0x1dd2   :  { %4171 = vpow2.f32 %v3024_v19  ;;  %2926 = vadd.xlane.f32.xlu2 %v2925_v26 }
0x1dd5   :  { %v3017_v61 = vpop.xlane.xlu1 %3016  ;;  %v3048_v53 = vpop.permute.xlu2 %3047 }
0x1dd6   :  { %v3022_v0 = vsub.f32 %v3006_v35, %v3017_v61 }
0x1dd8   :  { %v5557_v39 = vpop.eup %4171  ;;  %v3026_v50 = vmul.f32 1.442695, %v3022_v0  ;;  %v2940_v1 = vpop.permute.xlu0 %2939 }
0x1dd9   :  { %2960 = vmatpush.bf16.msra.mxu1 %v2940_v1  ;;  %v3030_v42 = vsel %vm202_vm14, %v5557_v39, 0.0 }
0x1dda   :  { %4173 = vpow2.f32 %v3026_v50  ;;  %3031 = vadd.xlane.f32.xlu1 %v3030_v42 }
0x1de0   :  { %v5561_v59 = vpop.eup %4173 }
0x1de1   :  { %v3033_v2 = vsel %vm202_vm14, %v5561_v59, 0.0 }
0x1de2   :  { %3034 = vadd.xlane.f32.xlu0 %v3033_v2 }
0x1ded   :  { %v3050_v63 = vpop.permute.xlu1 %3049 }
0x1dee   :  { %v3059_v37 = vsel %vm250_vm13, %v3050_v63, 0 }
0x1def   :  { %3067 = vmatpush.bf16.msrb.mxu0 %v3059_v37 }
0x1df3   :  { %3068 = vmatpush.bf16.msrb.mxu0 %v3048_v53 }
0x1e03   :  { %v2912_v52 = vpop.xlane.xlu0 %2911 }
0x1e04   :  { %v2915_v56 = vsub.f32 %v2901_v17, %v2912_v52 }
0x1e06   :  { %v2920_v35 = vmul.f32 1.442695, %v2915_v56 }
0x1e08   :  { %4175 = vpow2.f32 %v2920_v35 }
0x1e0b   :  { %v3137_v31 = vpop.xlane.xlu0 %3136 }
0x1e0c   :  { %v3142_v6 = vsub.f32 %v5521_v41, %v3137_v31 }
0x1e0e   :  { %v5567_v58 = vpop.eup %4175  ;;  %v3146_v45 = vmul.f32 1.442695, %v3142_v6  ;;  %v3020_v9 = vpop.xlane.xlu2 %3019 }
0x1e0f   :  { %v3023_v7 = vsub.f32 %v5523_v33, %v3020_v9  ;;  %v2928_v30 = vsel %vm209_vm15, %v5567_v58, 0.0 }
0x1e10   :  { %4177 = vpow2.f32 %v3146_v45  ;;  %2929 = vadd.xlane.f32.xlu0 %v2928_v30 }
0x1e11   :  { %v3028_v11 = vmul.f32 1.442695, %v3023_v7 }
0x1e13   :  { %4179 = vpow2.f32 %v3028_v11 }
0x1e16   :  { %v5572_v13 = vpop.eup %4177  ;;  %v3254_v8 = vpop.xlane.xlu2 %3253 }
0x1e17   :  { %v3261_v22 = vsub.f32 %v5531_v10, %v3254_v8  ;;  %v3153_v17 = vsel %vm202_vm14, %v5572_v13, 0.0 }
0x1e18   :  { %3154 = vadd.xlane.f32.xlu2 %v3153_v17  ;;  %v3134_v4 = vpop.xlane.xlu1 %3133 }
0x1e19   :  { %v5577_v18 = vpop.eup %4179  ;;  %v3264_v41 = vmul.f32 1.442695, %v3261_v22  ;;  %v3141_v33 = vsub.f32 %v5535_v28, %v3134_v4 }
0x1e1a   :  { %v3036_v24 = vsel %vm209_vm15, %v5577_v18, 0.0 }
0x1e1b   :  { %4181 = vpow2.f32 %v3264_v41  ;;  %v3144_v16 = vmul.f32 1.442695, %v3141_v33  ;;  %3037 = vadd.xlane.f32.xlu1 %v3036_v24 }
0x1e1d   :  { %4183 = vpow2.f32 %v3144_v16 }
0x1e1e   :  { %v3140_v32 = vpop.xlane.xlu2 %3139 }
0x1e1f   :  { %v3143_v46 = vsub.f32 %v5541_v40, %v3140_v32 }
0x1e20   :  { %v3257_v15 = vpop.xlane.xlu1 %3256 }
0x1e21   :  { %v5582_v62 = vpop.eup %4181  ;;  %v3262_v10 = vsub.f32 %v5543_v27, %v3257_v15  ;;  %v3260_v27 = vpop.xlane.xlu0 %3259  ;;  %v3148_v49 = vmul.f32 1.442695, %v3143_v46 }
0x1e22   :  { %v3270_v29 = vsel %vm202_vm14, %v5582_v62, 0.0 }
0x1e23   :  { %v5587_v38 = vpop.eup %4183  ;;  %v3266_v21 = vmul.f32 1.442695, %v3262_v10  ;;  %3271 = vadd.xlane.f32.xlu0 %v3270_v29 }
0x1e24   :  { %v3150_v28 = vsel %vm202_vm14, %v5587_v38, 0.0 }
0x1e25   :  { %4185 = vpow2.f32 %v3266_v21  ;;  %3151 = vadd.xlane.f32.xlu1 %v3150_v28 }
0x1e2b   :  { %v5591_v44 = vpop.eup %4185 }
0x1e2c   :  { %v3273_v51 = vsel %vm202_vm14, %v5591_v44, 0.0 }
0x1e2d   :  { %3274 = vadd.xlane.f32.xlu1 %v3273_v51 }
0x1e30   :  { %3169 = vrot.lane.b32.xlu2 %v5452_v23, %s5774_s20 }
0x1e37   :  { %3289 = vrot.lane.b32.xlu0 %v5452_v23, %s5775_s25 }
0x1e3d   :  { %v2924_v47 = vpop.xlane.xlu0 %2923 }
0x1e3e   :  { %4187 = vrcp.f32 %v2924_v47 }
0x1e3f   :  { %3287 = vrot.lane.b32.xlu0 %v5448_v20, %s5775_s25 }
0x1e44   :  { %v4188_v57 = vpop.eup %4187 }
0x1e45   :  { %v2927_v36 = vpop.xlane.xlu2 %2926  ;;  %v2934_v19 = vmul.f32 %v4188_v57, %v5549_v55 }
0x1e46   :  { %4189 = vrcp.f32 %v2927_v36  ;;  %3167 = vrot.lane.b32.xlu1 %v5448_v20, %s5774_s20  ;;  %v3263_v20 = vsub.f32 %v5529_v25, %v3260_v27 }
0x1e47   :  { %4191 = vpow2.f32 %v3148_v49 }
0x1e48   :  { %v3268_v55 = vmul.f32 1.442695, %v3263_v20 }
0x1e4c   :  { %v4190_v60 = vpop.eup %4189 }
0x1e4d   :  { %v2935_v23 = vmul.f32 %v4190_v60, %v5553_v14  ;;  %v3032_v61 = vpop.xlane.xlu1 %3031  ;;  %v5607_v0 = vpop.eup %4191 }
0x1e4e   :  { %4193 = vrcp.f32 %v3032_v61  ;;  %v3156_v40 = vsel %vm209_vm15, %v5607_v0, 0.0 }
0x1e4f   :  { %v2937_v26 = vpack.c.bf16 %v2935_v23, %v2934_v19 }
0x1e51   :  { %3846 = vmatmul.msk.bf16.vlgmr.msra.gmra.mxu1 %vm202_vm14, %v2937_v26 }
0x1e54   :  { %v4194_v1 = vpop.eup %4193 }
0x1e55   :  { %v3035_v50 = vpop.xlane.xlu0 %3034  ;;  %v3042_v14 = vmul.f32 %v4194_v1, %v5557_v39 }
0x1e56   :  { %4195 = vrcp.f32 %v3035_v50 }
0x1e57   :  { %4197 = vpow2.f32 %v3268_v55 }
0x1e59   :  { %3157 = vadd.xlane.f32.xlu2 %v3156_v40 }
0x1e5c   :  { %v4196_v42 = vpop.eup %4195 }
0x1e5d   :  { %v3043_v2 = vmul.f32 %v4196_v42, %v5561_v59  ;;  %v4198_v37 = vpop.eup %4197 }
0x1e5e   :  { %v3276_v53 = vsel %vm209_vm15, %v4198_v37, 0.0 }
0x1e5f   :  { %v3045_v63 = vpack.c.bf16 %v3043_v2, %v3042_v14 }
0x1e61   :  { %3850 = vmatmul.msk.bf16.vlgmr.msrb.gmra.mxu0 %vm202_vm14, %v3045_v63 }
0x1e69   :  { %3277 = vadd.xlane.f32.xlu0 %v3276_v53 }
0x1e7d   :  { %3340 = vrot.lane.b32.xlu0 %v5433_v43, %s5776_s26 }
0x1e83   :  { %v2930_v25 = vpop.xlane.xlu0 %2929 }
0x1e84   :  { %4199 = vrcp.f32 %v2930_v25 }
0x1e8a   :  { %v4200_v52 = vpop.eup %4199 }
0x1e8b   :  { %v2936_v56 = vmul.f32 %v4200_v52, %v5567_v58  ;;  %v3155_v35 = vpop.xlane.xlu2 %3154 }
0x1e8d   :  { %v2938_v39 = vpack.c.bf16 %v2936_v56, %v2936_v56 }
0x1e8e   :  { %v3038_v31 = vpop.xlane.xlu1 %3037 }
0x1e8f   :  { %4201 = vrcp.f32 %v3038_v31  ;;  %3847 = vmatmul.msk.bf16.gmra.mxu1 %vm202_vm14, %v2938_v39 }
0x1e93   :  { %v3170_v59 = vpop.permute.xlu2 %3169 }
0x1e94   :  { %v3179_v6 = vsel %vm250_vm13, %v3170_v59, 0 }
0x1e95   :  { %v4202_v45 = vpop.eup %4201  ;;  %3187 = vmatpush.bf16.msrb.mxu1 %v3179_v6 }
0x1e96   :  { %v3044_v9 = vmul.f32 %v4202_v45, %v5577_v18  ;;  %v3272_v30 = vpop.xlane.xlu0 %3271 }
0x1e98   :  { %v3046_v7 = vpack.c.bf16 %v3044_v9, %v3044_v9  ;;  %v3152_v43 = vpop.xlane.xlu1 %3151  ;;  %v3339_v9 = vperm.slane %v5441_v5, 4 }
0x1e9a   :  { %3851 = vmatmul.msk.bf16.gmra.mxu0 %vm202_vm14, %v3046_v7 }
0x1ea0   :  { %v3275_v11 = vpop.xlane.xlu1 %3274 }
0x1ea1   :  { %4203 = vrcp.f32 %v3275_v11 }
0x1ea2   :  { %4205 = vrcp.f32 %v3272_v30 }
0x1ea3   :  { %4207 = vrcp.f32 %v3152_v43 }
0x1ea4   :  { %4209 = vrcp.f32 %v3155_v35 }
0x1ea7   :  { %v4204_v22 = vpop.eup %4203 }
0x1ea8   :  { %v4206_v17 = vpop.eup %4205  ;;  %v3283_v4 = vmul.f32 %v4204_v22, %v5591_v44 }
0x1ea9   :  { %v3290_v58 = vpop.permute.xlu0 %3289  ;;  %v3282_v18 = vmul.f32 %v4206_v17, %v5582_v62  ;;  %v4208_v33 = vpop.eup %4207 }
0x1eaa   :  { %v3299_v8 = vsel %vm250_vm13, %v3290_v58, 0  ;;  %v4210_v16 = vpop.eup %4209  ;;  %v3162_v15 = vmul.f32 %v4208_v33, %v5587_v38  ;;  %vm5785_vm13 = vcmask 189568  }
0x1eab   :  { %3307 = vmatpush.bf16.msra.mxu0 %v3299_v8  ;;  %v3285_v24 = vpack.c.bf16 %v3283_v4, %v3282_v18  ;;  %v3163_v10 = vmul.f32 %v4210_v16, %v5572_v13 }
0x1ead   :  { %v3165_v21 = vpack.c.bf16 %v3163_v10, %v3162_v15 }
0x1eb1   :  { %v3288_v41 = vpop.permute.xlu0 %3287 }
0x1eb2   :  { %3308 = vmatpush.bf16.msra.mxu0 %v3288_v41 }
0x1eb5   :  { %3858 = vmatmul.msk.bf16.vlgmr.msra.gmra.mxu0 %vm202_vm14, %v3285_v24 }
0x1eb8   :  { %v3168_v29 = vpop.permute.xlu1 %3167 }
0x1eb9   :  { %3188 = vmatpush.bf16.msrb.mxu1 %v3168_v29 }
0x1ebc   :  { %3854 = vmatmul.msk.bf16.vlgmr.msrb.gmra.mxu1 %vm202_vm14, %v3165_v21 }
0x1ecc   :  { %v3158_v28 = vpop.xlane.xlu2 %3157 }
0x1ecd   :  { %4211 = vrcp.f32 %v3158_v28 }
0x1ece   :  { %v2962_v44 = vpop.f32.mrf.mxu1 }
0x1ecf   :  { %2971 = vst.msk [vmem:[#allocation2] sm:$0xff] %vm171_vm12, %v2962_v44 }
0x1ed3   :  { %v4212_v62 = vpop.eup %4211 }
0x1ed4   :  { %v3164_v51 = vmul.f32 %v4212_v62, %v5607_v0 }
0x1ed6   :  { %v2964_v27 = vpop.f32.mrf.mxu1  ;;  %v3166_v32 = vpack.c.bf16 %v3164_v51, %v3164_v51 }
0x1ed7   :  { %2972 = vst.msk [vmem:[#allocation2 + $0x8] sm:$0xff] %vm171_vm12, %v2964_v27  ;;  %vm5784_vm12 = vcmask 123968  }
0x1ed8   :  { %3855 = vmatmul.msk.bf16.gmra.mxu1 %vm202_vm14, %v3166_v32 }
0x1edc   :  { %v3278_v13 = vpop.xlane.xlu0 %3277 }
0x1edd   :  { %4213 = vrcp.f32 %v3278_v13 }
0x1ede   :  { %v3070_v38 = vpop.f32.mrf.mxu0 }
0x1edf   :  { %3082 = vrot.lane.b32.xlu1 %v3070_v38, %s5766_s29  ;;  %v3929_v38 = vld [vmem:[%s5739_s2 + $0x74] sm:$0xf] }
0x1ee3   :  { %v4214_v47 = vpop.eup %4213 }
0x1ee4   :  { %v3284_v36 = vmul.f32 %v4214_v47, %v4198_v37  ;;  %v3867_v47 = vld [vmem:[%s5739_s2 + $0x78] sm:$0xf0] }
0x1ee6   :  { %v3072_v46 = vpop.f32.mrf.mxu0  ;;  %v3286_v57 = vpack.c.bf16 %v3284_v36, %v3284_v36  ;;  %v3870_v36 = vor.u32 %v3929_v38, %v3867_v47 }
0x1ee7   :  { %3084 = vrot.lane.b32.xlu1 %v3072_v46, %s5766_s29 }
0x1ee8   :  { %3859 = vmatmul.msk.bf16.gmra.mxu0 %vm202_vm14, %v3286_v57  ;;  %vm5786_vm14 = vcmask 255168   ;;  %3474 = vmatpush.bf16.msra.mxu1 %v3870_v36 }
0x1eef   :  { %v3341_v25 = vpop.permute.xlu0 %3340 }
0x1f0c   :  { %v2967_v49 = vpop.f32.mrf.mxu1 }
0x1f0d   :  { %2973 = vst.msk [vmem:[#allocation2 + $0x10] sm:$0x3] %vm274_vm2, %v2967_v49  ;;  %v3927_v49 = vld [vmem:[%s5739_s2 + $0x64] sm:$0xf] }
0x1f14   :  { %v2969_v60 = vpop.f32.mrf.mxu1 }
0x1f15   :  { %v3863_v60 = vld [vmem:[%s5739_s2 + $0x68] sm:$0xf0] }
0x1f17   :  { %v3075_v19 = vpop.f32.mrf.mxu0 }
0x1f1f   :  { %v3077_v23 = vpop.f32.mrf.mxu0 }
0x1f20   :  { %v3866_v23 = vor.u32 %v3927_v49, %v3863_v60 }
0x1f22   :  { %3475 = vmatpush.bf16.msra.mxu1 %v3866_v23 }
0x1f32   :  { %v3310_v26 = vpop.f32.mrf.mxu0 }
0x1f39   :  { %v3190_v61 = vpop.f32.mrf.mxu1 }
0x1f3a   :  { %3202 = vrot.lane.b32.xlu1 %v3190_v61, %s5767_s30  ;;  %v3312_v0 = vpop.f32.mrf.mxu0 }
0x1f3b   :  { %3324 = vrot.lane.b32.xlu2 %v3312_v0, %s5768_s16 }
0x1f41   :  { %v3192_v50 = vpop.f32.mrf.mxu1 }
0x1f42   :  { %3322 = vrot.lane.b32.xlu1 %v3310_v26, %s5768_s16 }
0x1f4a   :  { %3204 = vrot.lane.b32.xlu1 %v3192_v50, %s5767_s30 }
0x1f51   :  { %v3083_v20 = vpop.permute.xlu1 %3082 }
0x1f52   :  { %3091 = vst.msk [vmem:[#allocation2] sm:$0xff] %vm393_vm3, %v3083_v20  ;;  %3342 = vrot.lane.b32.xlu1 %v5423_v54, %s5776_s26 }
0x1f55   :  { %v3195_v40 = vpop.f32.mrf.mxu1 }
0x1f59   :  { %v3085_v1 = vpop.permute.xlu1 %3084 }
0x1f5a   :  { %3092 = vst.msk [vmem:[#allocation2 + $0x8] sm:$0xff] %vm393_vm3, %v3085_v1  ;;  %3086 = vrot.lane.b32.xlu1 %v3075_v19, %s5766_s29 }
0x1f5d   :  { %v3197_v55 = vpop.f32.mrf.mxu1 }
0x1f62   :  { %3206 = vrot.lane.b32.xlu1 %v3195_v40, %s5767_s30 }
0x1f65   :  { %v3315_v42 = vpop.f32.mrf.mxu0 }
0x1f66   :  { %3326 = vrot.lane.b32.xlu2 %v3315_v42, %s5768_s16 }
0x1f6d   :  { %v3317_v14 = vpop.f32.mrf.mxu0 }
0x1f95   :  { %v3325_v37 = vpop.permute.xlu2 %3324 }
0x1fac   :  { %v3203_v2 = vpop.permute.xlu1 %3202 }
0x1fad   :  { %3211 = vst.msk [vmem:[#allocation2] sm:$0xff] %vm515_vm4, %v3203_v2 }
0x1fb4   :  { %v3323_v63 = vpop.permute.xlu1 %3322 }
0x1fb5   :  { %3331 = vst.msk [vmem:[#allocation2] sm:$0xff] %vm637_vm5, %v3323_v63 }
0x1fbc   :  { %v3205_v54 = vpop.permute.xlu1 %3204  ;;  %v3334_v56 = vld [vmem:[#allocation2] sm:$0xff] }
0x1fbd   :  { %3212 = vst.msk [vmem:[#allocation2 + $0x8] sm:$0xff] %vm515_vm4, %v3205_v54 }
0x1fbe   :  { %3332 = vst.msk [vmem:[#allocation2 + $0x8] sm:$0xff] %vm637_vm5, %v3325_v37 }
0x1fc0   :  { %v3327_v59 = vpop.permute.xlu2 %3326 }
0x1fc4   :  { %v3343_v53 = vpop.permute.xlu1 %3342 }
0x1fc5   :  { %3358 = vmatpush.bf16.msra.mxu2 %v3343_v53  ;;  %v3335_v52 = vld [vmem:[#allocation2 + $0x8] sm:$0xff] }
0x1fc6   :  { %v3337_v35 = vpack.c.bf16 %v3335_v52, %v3334_v56 }
0x1fc9   :  { %3359 = vmatpush.bf16.msra.mxu2 %v3341_v25 }
0x1fcc   :  { %v3087_v39 = vpop.permute.xlu1 %3086  ;;  %3860 = vmatmul.msk.bf16.vlgmr.msra.gmra.mxu2 %vm42_vm0, %v3337_v35  ;;  %v3439_v35 = vperm.slane %v5441_v5, 2 }
0x1fcd   :  { %3093 = vst.msk [vmem:[#allocation2 + $0x10] sm:$0x3] %vm5784_vm12, %v3087_v39 }
0x1fd4   :  { %v3207_v31 = vpop.permute.xlu1 %3206 }
0x1fd5   :  { %3213 = vst.msk [vmem:[#allocation2 + $0x10] sm:$0x3] %vm5785_vm13, %v3207_v31 }
0x1fd6   :  { %3333 = vst.msk [vmem:[#allocation2 + $0x10] sm:$0x3] %vm5786_vm14, %v3327_v59 }
0x1fdd   :  { %v3336_v6 = vld [vmem:[#allocation2 + $0x10] sm:$0x3] }
0x1fde   :  { %v3338_v45 = vpack.c.bf16 %v3336_v6, %v3336_v6 }
0x1fe0   :  { %3861 = vmatmul.msk.bf16.gmra.mxu2 %vm42_vm0, %v3338_v45  ;;  %v3443_v45 = vperm.slane %v5441_v5, 3 }
0x204f   :  { %v3361_v7 = vpop.f32.mrf.mxu2 }
0x2050   :  { %v3362_v43 = vadd.f32 %v3361_v7, %v3339_v9 }
0x2052   :  { %v5660_v30 = vadd.f32 %v3362_v43, %v5392_v3 }
0x2054   :  { %v3373_v11 = vsel %vm42_vm0, %v5660_v30, 0.0 }
0x2055   :  { %3374 = vadd.xlane.f32.xlu0 %v3373_v11 }
0x2057   :  { %v3363_v58 = vpop.f32.mrf.mxu2 }
0x2058   :  { %v3364_v8 = vadd.f32 %v3363_v58, %v3339_v9 }
0x205a   :  { %v5665_v22 = vadd.f32 %v3364_v8, %v5396_v34 }
0x205c   :  { %v3376_v17 = vsel %vm42_vm0, %v5665_v22, 0.0 }
0x205d   :  { %3377 = vadd.xlane.f32.xlu1 %v3376_v17 }
0x2063   :  { %v3366_v4 = vpop.f32.mrf.mxu2 }
0x2064   :  { %v3367_v18 = vadd.f32 %v3366_v4, %v3339_v9 }
0x2066   :  { %v5670_v41 = vadd.f32 %v3367_v18, %v5400_v48 }
0x2068   :  { %v3379_v3 = vsel %vm49_vm1, %v5670_v41, 0.0 }
0x2069   :  { %3380 = vadd.xlane.f32.xlu2 %v3379_v3 }
0x206b   :  { %v3368_v33 = vpop.f32.mrf.mxu2 }
0x20c8   :  { %v3375_v24 = vpop.xlane.xlu0 %3374 }
0x20c9   :  { %v3382_v16 = vmul.f32 %v3375_v24, %v4354_v12 }
0x20cb   :  { %v3385_v34 = vsub.f32 %v5660_v30, %v3382_v16 }
0x20cd   :  { %v3388_v15 = vmul.f32 %v3385_v34, %v3385_v34 }
0x20cf   :  { %v3391_v10 = vsel %vm42_vm0, %v3388_v15, 0.0  ;;  %v3934_v15 = vld [vmem:[%s5740_s3 + $0x78] sm:$0xff] }
0x20d0   :  { %v3378_v29 = vpop.xlane.xlu1 %3377  ;;  %3392 = vadd.xlane.f32.xlu0 %v3391_v10  ;;  %3559 = vmatpush.bf16.msra.mxu3 %v3934_v15  ;;  %v3933_v10 = vld [vmem:[%s5740_s3 + $0x70] sm:$0xff] }
0x20d1   :  { %v3383_v21 = vmul.f32 %v3378_v29, %v4354_v12  ;;  %v3932_v29 = vld [vmem:[%s5740_s3 + $0x68] sm:$0xff] }
0x20d3   :  { %v3386_v48 = vsub.f32 %v5665_v22, %v3383_v21  ;;  %v3960_v21 = vld [vmem:[%s5742_s5 + $0x3] ss:$0 sm:$0xff] }
0x20d4   :  { %3560 = vmatpush.bf16.msra.mxu3 %v3933_v10 }
0x20d5   :  { %v3389_v28 = vmul.f32 %v3386_v48, %v3386_v48 }
0x20d7   :  { %v3394_v44 = vsel %vm42_vm0, %v3389_v28, 0.0 }
0x20d8   :  { %3395 = vadd.xlane.f32.xlu1 %v3394_v44  ;;  %3561 = vmatpush.bf16.msra.mxu3 %v3932_v29 }
0x20dc   :  { %v3381_v62 = vpop.xlane.xlu2 %3380 }
0x20dd   :  { %v3384_v51 = vmul.f32 %v3381_v62, %v4354_v12 }
0x20df   :  { %v5682_v27 = vsub.f32 %v5670_v41, %v3384_v51 }
0x20e1   :  { %v3390_v32 = vmul.f32 %v5682_v27, %v5682_v27 }
0x20e3   :  { %v3397_v13 = vsel %vm49_vm1, %v3390_v32, 0.0 }
0x20e4   :  { %3398 = vadd.xlane.f32.xlu2 %v3397_v13 }
0x2143   :  { %v3393_v46 = vpop.xlane.xlu0 %3392 }
0x2144   :  { %v3400_v57 = vmul.f32 %v3393_v46, %v4354_v12 }
0x2146   :  { %v3403_v19 = vadd.f32 1e-05, %v3400_v57 }
0x2148   :  { %4215 = vrsqrt.f32 %v3403_v19  ;;  %vm3412_vm2 = vweird.f32 %v3403_v19 }
0x214b   :  { %v3396_v26 = vpop.xlane.xlu1 %3395 }
0x214c   :  { %v3401_v61 = vmul.f32 %v3396_v26, %v4354_v12 }
0x214e   :  { %v4216_v0 = vpop.eup %4215  ;;  %v3404_v50 = vadd.f32 1e-05, %v3401_v61 }
0x214f   :  { %v3407_v20 = vmul.f32 %v4216_v0, %v3403_v19  ;;  %vm3413_vm15 = vweird.f32 %v4216_v0 }
0x2150   :  { %4217 = vrsqrt.f32 %v3404_v50  ;;  %vm3414_vm3 = vmor %vm3412_vm2, %vm3413_vm15  ;;  %vm3422_vm5 = vweird.f32 %v3404_v50 }
0x2151   :  { %v3408_v40 = vmul.f32 %v4216_v0, %v3407_v20 }
0x2153   :  { %v3409_v1 = vmul.f32 0.5, %v3408_v40 }
0x2155   :  { %v3410_v55 = vsub.f32 1.5, %v3409_v1 }
0x2156   :  { %v4218_v42 = vpop.eup %4217 }
0x2157   :  { %v3411_v14 = vmul.f32 %v4216_v0, %v3410_v55  ;;  %v3417_v2 = vmul.f32 %v4218_v42, %v3404_v50  ;;  %v3399_v63 = vpop.xlane.xlu2 %3398  ;;  %vm3423_vm4 = vweird.f32 %v4218_v42 }
0x2158   :  { %v3402_v54 = vmul.f32 %v3399_v63, %v4354_v12  ;;  %vm3424_vm10 = vmor %vm3422_vm5, %vm3423_vm4 }
0x2159   :  { %v3418_v37 = vmul.f32 %v4218_v42, %v3417_v2  ;;  %v3415_v25 = vsel %vm3414_vm3, %v4216_v0, %v3411_v14 }
0x215a   :  { %v3405_v53 = vadd.f32 1e-05, %v3402_v54  ;;  %v3436_v39 = vmul.f32 %v3415_v25, %v3385_v34 }
0x215b   :  { %v3419_v52 = vmul.f32 0.5, %v3418_v37 }
0x215c   :  { %4219 = vrsqrt.f32 %v3405_v53  ;;  %v3440_v12 = vmul.f32 %v3439_v35, %v3436_v39  ;;  %vm3432_vm6 = vweird.f32 %v3405_v53 }
0x215d   :  { %v3420_v56 = vsub.f32 1.5, %v3419_v52 }
0x215e   :  { %v3444_v58 = vadd.f32 %v3443_v45, %v3440_v12 }
0x215f   :  { %v3421_v31 = vmul.f32 %v4218_v42, %v3420_v56 }
0x2161   :  { %v3425_v59 = vsel %vm3424_vm10, %v4218_v42, %v3421_v31  ;;  %v4242_v31 = vld [vmem:[%s5741_s4 + $0x18] sm:$0x3f]  ;;  %s3585_s4 = sshll.u32 %s5745_s8, 4  ;;  %s3586_s4 = int_to_ptr.hbm [resolvable:$true] %s3585_s4 }
0x2162   :  { %v4220_v6 = vpop.eup %4219  ;;  %v3437_v9 = vmul.f32 %v3425_v59, %v3386_v48  ;;  %v3931_v48 = vld [vmem:[%s5740_s3 + $0x60] sm:$0xff]  ;;  %v3524_v59 = vperm.slane %v4242_v31, 5 }
0x2163   :  { %v3427_v7 = vmul.f32 %v4220_v6, %v3405_v53  ;;  %vm3433_vm11 = vweird.f32 %v4220_v6  ;;  %3562 = vmatpush.bf16.msra.mxu3 %v3931_v48 }
0x2164   :  { %v3441_v43 = vmul.f32 %v3439_v35, %v3437_v9  ;;  %vm3434_vm7 = vmor %vm3432_vm6, %vm3433_vm11 }
0x2165   :  { %v3428_v11 = vmul.f32 %v4220_v6, %v3427_v7 }
0x2166   :  { %v3445_v8 = vadd.f32 %v3443_v45, %v3441_v43 }
0x2167   :  { %v3429_v17 = vmul.f32 0.5, %v3428_v11 }
0x2168   :  { %v3447_v4 = vpack.c.bf16 %v3445_v8, %v3444_v58 }
0x2169   :  { %v3430_v18 = vsub.f32 1.5, %v3429_v17 }
0x216a   :  { %3871 = vmatmul.msk.bf16.vlgmr.msra.gmra.mxu1 %vm42_vm0, %v3447_v4 }
0x216b   :  { %v3431_v3 = vmul.f32 %v4220_v6, %v3430_v18 }
0x216d   :  { %v3435_v33 = vsel %vm3434_vm7, %v4220_v6, %v3431_v3 }
0x216e   :  { %v3438_v24 = vmul.f32 %v3435_v33, %v5682_v27 }
0x2170   :  { %v3442_v5 = vmul.f32 %v3439_v35, %v3438_v24 }
0x2172   :  { %v3446_v16 = vadd.f32 %v3443_v45, %v3442_v5 }
0x2174   :  { %v3448_v34 = vpack.c.bf16 %v3446_v16, %v3446_v16 }
0x217a   :  { %3872 = vmatmul.msk.bf16.gmra.mxu1 %vm42_vm0, %v3448_v34 }
0x21e7   :  { %v3477_v28 = vpop.f32.mrf.mxu1 }
0x21e8   :  { %v3478_v44 = vadd.f32 %v3960_v21, %v3477_v28 }
0x21ea   :  { %v3489_v62 = vmul.f32 0.044715, %v3478_v44  ;;  %v3486_v14 = vmul.f32 0.5, %v3478_v44 }
0x21ec   :  { %v3492_v51 = vmul.f32 %v3489_v62, %v3478_v44 }
0x21ee   :  { %v3495_v27 = vmul.f32 %v3492_v51, %v3478_v44 }
0x21ef   :  { %v3479_v32 = vpop.f32.mrf.mxu1 }
0x21f0   :  { %v3498_v13 = vadd.f32 %v3495_v27, %v3478_v44  ;;  %v3480_v38 = vadd.f32 %v3960_v21, %v3479_v32 }
0x21f2   :  { %v3490_v47 = vmul.f32 0.044715, %v3480_v38  ;;  %v3501_v36 = vmul.f32 0.7978846, %v3498_v13  ;;  %v3487_v2 = vmul.f32 0.5, %v3480_v38 }
0x21f4   :  { %v3493_v46 = vmul.f32 %v3490_v47, %v3480_v38  ;;  %4221 = vtanh.f32 %v3501_v36 }
0x21f6   :  { %v3496_v57 = vmul.f32 %v3493_v46, %v3480_v38 }
0x21f7   :  { %v3482_v49 = vpop.f32.mrf.mxu1 }
0x21f8   :  { %v3499_v60 = vadd.f32 %v3496_v57, %v3480_v38  ;;  %v3483_v19 = vadd.f32 %v3960_v21, %v3482_v49 }
0x21fa   :  { %v3502_v23 = vmul.f32 0.7978846, %v3499_v60  ;;  %v3491_v26 = vmul.f32 0.044715, %v3483_v19  ;;  %v4222_v0 = vpop.eup %4221  ;;  %v3488_v56 = vmul.f32 0.5, %v3483_v19 }
0x21fb   :  { %v3507_v1 = vadd.f32 1.0, %v4222_v0 }
0x21fc   :  { %4223 = vtanh.f32 %v3502_v23  ;;  %v3494_v61 = vmul.f32 %v3491_v26, %v3483_v19 }
0x21fd   :  { %v3510_v54 = vmul.f32 %v3507_v1, %v3486_v14 }
0x21fe   :  { %v3497_v50 = vmul.f32 %v3494_v61, %v3483_v19 }
0x21ff   :  { %v3484_v20 = vpop.f32.mrf.mxu1 }
0x2200   :  { %v3500_v40 = vadd.f32 %v3497_v50, %v3483_v19 }
0x2202   :  { %v4224_v55 = vpop.eup %4223  ;;  %v3503_v42 = vmul.f32 0.7978846, %v3500_v40 }
0x2203   :  { %v3508_v63 = vadd.f32 1.0, %v4224_v55 }
0x2204   :  { %4225 = vtanh.f32 %v3503_v42 }
0x2205   :  { %v3511_v37 = vmul.f32 %v3508_v63, %v3487_v2 }
0x2207   :  { %v3513_v53 = vpack.c.bf16 %v3511_v37, %v3510_v54 }
0x2209   :  { %3897 = vmatmul.msk.bf16.vlgmr.msra.gmra.mxu3 %vm5787_vm8, %v3513_v53 }
0x220a   :  { %v4226_v25 = vpop.eup %4225 }
0x220b   :  { %v3509_v52 = vadd.f32 1.0, %v4226_v25 }
0x220d   :  { %v3512_v35 = vmul.f32 %v3509_v52, %v3488_v56 }
0x220f   :  { %v3514_v39 = vpack.c.bf16 %v3512_v35, %v3512_v35 }
0x2219   :  { %3898 = vmatmul.msk.bf16.gmra.mxu3 %vm5788_vm9, %v3514_v39 }
0x228c   :  { %v3564_v6 = vpop.f32.mrf.mxu3 }
0x228d   :  { %v3565_v45 = vadd.f32 %v3564_v6, %v3524_v59 }
0x228f   :  { %v3573_v12 = vadd.f32 %v3565_v45, %v5660_v30 }
0x2291   :  { %3576 = vst.msk [vmem:[#allocation3] sm:$0xff] %vm42_vm0, %v3573_v12 }
0x2294   :  { %v3566_v9 = vpop.f32.mrf.mxu3 }
0x2295   :  { %v3567_v7 = vadd.f32 %v3566_v9, %v3524_v59 }
0x2297   :  { %v3574_v43 = vadd.f32 %v3567_v7, %v5665_v22 }
0x2299   :  { %3577 = vst.msk [vmem:[#allocation3 + $0x8] sm:$0xff] %vm42_vm0, %v3574_v43 }
0x229c   :  { %v3569_v11 = vpop.f32.mrf.mxu3 }
0x229d   :  { %v3570_v58 = vadd.f32 %v3569_v11, %v3524_v59 }
0x229f   :  { %v3575_v8 = vadd.f32 %v3570_v58, %v5670_v41 }
0x22a1   :  { %3578 = vst.msk [vmem:[#allocation3 + $0x10] sm:$0x3] %vm49_vm1, %v3575_v8 }
0x22a2   :  { %3591 = dma.vmem_to_hbm [thread:$0]  %s3584_s22, 384, %s3586_s4, [#allocation4], %s4287_s10, %s4287_s10, %s5766_s29  }
0x22a4   :  { %v3571_v30 = vpop.f32.mrf.mxu3 }
0x22a5   :  { %4267 = dma.done.wait [#allocation4], 384  }
0x22a6   :  { %4268 = vsyncadd [#allocation4], 4294966912 }
0x22a7   :  { %3596 = vsyncpa [#allocation4], 1 }

</bundles_post_ra>
